<compile_context>
chip_gen: v7x
topology: tpu7x:2x2x1
jax: 0.10.0
libtpu: 0.0.40
codegen_flags: <defaults>
</compile_context>

<pallas_src>
import numpy as np
import jax
import jax.numpy as jnp
from jax.experimental import pallas as pl
from jax.experimental.pallas import tpu as pltpu

C = 128          # in_planes == out_planes (module default)
NC = 7           # num_classes
NCP = 128        # lane-padded class dimension (lane-dense logits/output)
NEG = -1e30      # effective -inf for max-pool padding / softmax masking


def _geometry(S1):
    """Static geometry for a residual-conv output of S1 x S1."""
    PW = S1 + 2                      # padded plane width (conv padding = 1)
    NPAD = PW * PW                   # flat padded-plane rows
    W0 = PW + 1                      # first interior flat row
    NW = (S1 - 1) * PW + S1          # contiguous window covering all interior rows
    SP = (S1 + 2 - 3) // 2 + 1       # spatial after 3x3 / stride-2 / pad-1 max-pool
    P7 = SP + 2                      # padded pooled-plane width (conv3 padding = 1)
    N7 = P7 * P7
    C0 = P7 + 1                      # first interior flat row of pooled plane
    CN = (SP - 1) * P7 + SP          # conv3 contiguous window rows
    return PW, NPAD, W0, NW, SP, P7, N7, C0, CN


def _build_kernel(S1):
    PW, NPAD, W0, NW, SP, P7, N7, C0, CN = _geometry(S1)
    SH_DW = [(kh - 1) * PW + (kw - 1) for kh in range(3) for kw in range(3)]
    SH_C3 = [(kh - 1) * P7 + (kw - 1) for kh in range(3) for kw in range(3)]

    def kernel(xs_ref, wres_ref, bn1s_ref, bn1b_ref,
               dw1_ref, pw1_ref, dw2_ref, pw2_ref,
               bn2s_ref, bn2b_ref, w3_ref, b3_ref,
               ring_ref, valid3_ref,
               out_ref,
               pad_a, pad_b, pad_c, hm_ref, pad7):
        f32 = jnp.float32
        bf16 = jnp.bfloat16

        bn1s = bn1s_ref[...]
        bn1b = bn1b_ref[...]
        bn2s = bn2s_ref[...]
        bn2b = bn2b_ref[...]
        ring = ring_ref[...]                      # (NW, C): 1.0 interior, 0.0 pad ring
        in_ring = ring > 0.5

        zero_rows = jnp.zeros((W0, C), f32)
        neg_rows = jnp.full((W0, C), NEG, f32)

        # ---- stage 1: residual 1x1 conv (stride-2/pad-1 sampling done in wrapper) + bn1
        x = xs_ref[pl.ds(W0, NW), :]                                        # (NW, C) bf16
        v = jnp.dot(x, wres_ref[...], preferred_element_type=f32)
        v = v * bn1s + bn1b
        pad_a[pl.ds(W0, NW), :] = v * ring                                  # zero pad ring
        pad_a[pl.ds(0, W0), :] = zero_rows
        pad_a[pl.ds(W0 + NW, W0), :] = zero_rows

        # ---- stage 2: SeparableConv2d #1 (depthwise 3x3 p1 + pointwise) + bn1 + relu
        dw1 = dw1_ref[...]                                                  # (9, C)
        dacc = pad_a[pl.ds(W0 + SH_DW[0], NW), :] * dw1[0:1, :]
        for k in range(1, 9):
            dacc = dacc + pad_a[pl.ds(W0 + SH_DW[k], NW), :] * dw1[k:k + 1, :]
        v = jnp.dot(dacc.astype(bf16), pw1_ref[...], preferred_element_type=f32)
        v = jnp.maximum(v * bn1s + bn1b, 0.0)
        pad_b[pl.ds(W0, NW), :] = v * ring
        pad_b[pl.ds(0, W0), :] = zero_rows
        pad_b[pl.ds(W0 + NW, W0), :] = zero_rows

        # ---- stage 3: SeparableConv2d #2 + bn2 (NEG-padded plane: feeds the max-pool)
        dw2 = dw2_ref[...]
        dacc = pad_b[pl.ds(W0 + SH_DW[0], NW), :] * dw2[0:1, :]
        for k in range(1, 9):
            dacc = dacc + pad_b[pl.ds(W0 + SH_DW[k], NW), :] * dw2[k:k + 1, :]
        v = jnp.dot(dacc.astype(bf16), pw2_ref[...], preferred_element_type=f32)
        v = v * bn2s + bn2b
        pad_c[pl.ds(W0, NW), :] = jnp.where(in_ring, v, NEG)
        pad_c[pl.ds(0, W0), :] = neg_rows
        pad_c[pl.ds(W0 + NW, W0), :] = neg_rows

        # ---- stage 4: MaxPool2d 3x3 / stride 2 / pad 1 -> zero-padded pooled plane
        pad7[...] = jnp.zeros((N7, C), f32)
        for oh in range(SP):                     # height max (3 full plane rows each)
            r0 = pad_c[pl.ds((2 * oh + 0) * PW, PW), :]
            r1 = pad_c[pl.ds((2 * oh + 1) * PW, PW), :]
            r2 = pad_c[pl.ds((2 * oh + 2) * PW, PW), :]
            hm_ref[pl.ds(oh * PW, PW), :] = jnp.maximum(jnp.maximum(r0, r1), r2)
        for oh in range(SP):                     # width max via stride-2 sublane reads
            wa = hm_ref[pl.ds(oh * PW + 0, SP, stride=2), :]
            wb = hm_ref[pl.ds(oh * PW + 1, SP, stride=2), :]
            wc = hm_ref[pl.ds(oh * PW + 2, SP, stride=2), :]
            pad7[pl.ds((oh + 1) * P7 + 1, SP), :] = jnp.maximum(jnp.maximum(wa, wb), wc)

        # ---- stage 5: conv3 (3x3, pad 1, C -> NC lane-padded) as ONE matmul, K = 9*C
        lhs = jnp.concatenate([pad7[pl.ds(C0 + s, CN), :] for s in SH_C3], axis=1)
        logits = jnp.dot(lhs.astype(bf16), w3_ref[...],
                         preferred_element_type=f32) + b3_ref[...]          # (CN, NCP)

        # ---- stage 6: softmax over the SP*SP*NC valid logits (nn.Softmax on .view(B,-1))
        lg = jnp.where(valid3_ref[...] > 0.5, logits, NEG)
        m = jnp.max(lg, axis=(0, 1), keepdims=True)
        e = jnp.exp(lg - m)
        s = jnp.sum(e, axis=(0, 1), keepdims=True)
        out_ref[...] = e * (1.0 / s)             # exact divide keeps prob sums tight

    return kernel


def init_params(key):
    f32, bf16 = jnp.float32, jnp.bfloat16
    ks = jax.random.split(key, 9)

    def nrm(k, shape, scale):
        return jax.random.normal(k, shape, f32) * scale

    w_res = nrm(ks[0], (C, C), 1.0 / jnp.sqrt(float(C)))       # 1x1 residual conv (Cin, Cout)
    dw1 = nrm(ks[1], (9, C), 1.0 / 3.0)                        # depthwise taps (kh*3+kw, C)
    pw1 = nrm(ks[2], (C, C), 1.0 / jnp.sqrt(float(C)))
    dw2 = nrm(ks[3], (9, C), 1.0 / 3.0)
    pw2 = nrm(ks[4], (C, C), 1.0 / jnp.sqrt(float(C)))
    w3 = nrm(ks[5], (9, C, NC), 1.0 / jnp.sqrt(9.0 * C))       # conv3 taps (kh*3+kw, C, NC)
    b3 = nrm(ks[6], (NC,), 0.1)

    # pack conv3 as a single (9*C, NCP) lane-dense matmul operand (+ lane-padded bias)
    w3f = jnp.zeros((9 * C, NCP), f32).at[:, :NC].set(w3.reshape(9 * C, NC))
    b3f = jnp.zeros((1, NCP), f32).at[0, :NC].set(b3)

    def folded_bn(k):
        kg, kb, km, kv = jax.random.split(k, 4)
        gamma = 1.0 + 0.1 * jax.random.normal(kg, (C,), f32)
        beta = 0.1 * jax.random.normal(kb, (C,), f32)
        mean = 0.1 * jax.random.normal(km, (C,), f32)
        var = jax.random.uniform(kv, (C,), f32, minval=0.5, maxval=1.5)
        scale = gamma / jnp.sqrt(var + 1e-5)
        shift = beta - mean * scale
        return scale.reshape(1, C), shift.reshape(1, C)

    bn1s, bn1b = folded_bn(ks[7])
    bn2s, bn2b = folded_bn(ks[8])

    return {
        "w_res": w_res.astype(bf16),
        "dw1": dw1, "pw1": pw1.astype(bf16),
        "dw2": dw2, "pw2": pw2.astype(bf16),
        "w3": w3f.astype(bf16), "b3": b3f,
        "bn1s": bn1s, "bn1b": bn1b, "bn2s": bn2s, "bn2b": bn2b,
    }


@jax.jit
def end_block_forward(x_nchw, params):
    B, Cin, H, W = x_nchw.shape
    x = jnp.transpose(x_nchw, (0, 2, 3, 1)).astype(jnp.float32)      # NHWC

    # Residual Conv2d(1x1, stride=2, padding=1): output (oh, ow) reads input
    # (2*oh-1, 2*ow-1); index -1 falls on the zero padding (pure indexing glue).
    S1 = (H + 2 - 1) // 2 + 1
    sub = x[:, 1::2, 1::2, :]
    xs = jnp.pad(sub, ((0, 0), (1, 0), (1, 0), (0, 0)))              # (B, S1, S1, C)

    PW, NPAD, W0, NW, SP, P7, N7, C0, CN = _geometry(S1)
    # flat padded-plane input (conv1's zero padding ring included), bf16 for the MXU
    xpl = jnp.pad(xs, ((0, 0), (1, 1), (1, 1), (0, 0)))              # (B, PW, PW, C)
    xflat = xpl.reshape(B, NPAD, C).astype(jnp.bfloat16)

    # static masks (computed at trace time; become XLA constants)
    rows = np.arange(W0, W0 + NW)
    ring = (((rows % PW) >= 1) & ((rows % PW) <= S1)).astype(np.float32)
    ring = jnp.asarray(np.broadcast_to(ring[:, None], (NW, C)).copy())
    r7 = np.arange(C0, C0 + CN)
    okrow = ((r7 % P7) >= 1) & ((r7 % P7) <= SP)
    oklane = np.arange(NCP) < NC
    valid3 = jnp.asarray((okrow[:, None] & oklane[None, :]).astype(np.float32))

    kernel = _build_kernel(S1)

    def full(shape):
        n = len(shape)
        return pl.BlockSpec(shape, lambda b, n=n: (0,) * n)

    out33 = pl.pallas_call(
        kernel,
        grid=(B,),
        in_specs=[
            pl.BlockSpec((None, NPAD, C), lambda b: (b, 0, 0)),   # flat padded input
            full((C, C)),                   # w_res (bf16)
            full((1, C)), full((1, C)),     # bn1 scale / shift
            full((9, C)),                   # dw1
            full((C, C)),                   # pw1 (bf16)
            full((9, C)),                   # dw2
            full((C, C)),                   # pw2 (bf16)
            full((1, C)), full((1, C)),     # bn2 scale / shift
            full((9 * C, NCP)),             # conv3 packed weight (bf16)
            full((1, NCP)),                 # conv3 bias (lane-padded)
            full((NW, C)),                  # ring mask
            full((CN, NCP)),                # valid-logit mask
        ],
        out_specs=pl.BlockSpec((None, CN, NCP), lambda b: (b, 0, 0)),
        out_shape=jax.ShapeDtypeStruct((B, CN, NCP), jnp.float32),
        scratch_shapes=[
            pltpu.VMEM((NPAD, C), jnp.float32),     # pad_a (zero-padded plane)
            pltpu.VMEM((NPAD, C), jnp.float32),     # pad_b (zero-padded plane)
            pltpu.VMEM((NPAD, C), jnp.float32),     # pad_c (NEG-padded plane)
            pltpu.VMEM((SP * PW, C), jnp.float32),  # height-pooled rows
            pltpu.VMEM((N7, C), jnp.float32),       # zero-padded pooled plane
        ],
        compiler_params=pltpu.CompilerParams(dimension_semantics=("parallel",)),
    )(xflat, params["w_res"], params["bn1s"], params["bn1b"],
      params["dw1"], params["pw1"], params["dw2"], params["pw2"],
      params["bn2s"], params["bn2b"], params["w3"], params["b3"],
      ring, valid3)

    # gather the SP*SP valid rows / NC valid lanes; restore PyTorch's NCHW flatten order
    idx = (jnp.arange(SP)[:, None] * P7 + jnp.arange(SP)[None, :]).reshape(-1)
    probs = out33[:, idx, :NC].reshape(B, SP, SP, NC)                 # NHWC
    return jnp.transpose(probs, (0, 3, 1, 2)).reshape(B, -1)          # NCHW flatten


if __name__ == "__main__":
    key = jax.random.PRNGKey(0)
    kx, kp = jax.random.split(key)

    B, H, W = 2, 16, 16
    x = jax.random.normal(kx, (B, C, H, W), jnp.float32)   # NCHW, like the PyTorch module
    params = init_params(kp)

    out = jax.block_until_ready(end_block_forward(x, params))

    S1 = (H + 2 - 1) // 2 + 1
    SP = (S1 + 2 - 3) // 2 + 1
    assert out.shape == (B, NC * SP * SP), out.shape
    assert bool(jnp.all(jnp.isfinite(out)))
    assert bool(jnp.all(jnp.abs(jnp.sum(out, axis=1) - 1.0) < 1e-3))   # softmax sums to 1
    print("KERNEL_OK")
</pallas_src>

<mosaic_0001>
module attributes {stable_mosaic.version = 11 : i64} {
  func.func @kernel(%arg0: i32, %arg1: memref<1x121x128xbf16, #tpu.memory_space<vmem>>, %arg2: memref<128x128xbf16, #tpu.memory_space<vmem>>, %arg3: memref<1x128xf32, #tpu.memory_space<vmem>>, %arg4: memref<1x128xf32, #tpu.memory_space<vmem>>, %arg5: memref<9x128xf32, #tpu.memory_space<vmem>>, %arg6: memref<128x128xbf16, #tpu.memory_space<vmem>>, %arg7: memref<9x128xf32, #tpu.memory_space<vmem>>, %arg8: memref<128x128xbf16, #tpu.memory_space<vmem>>, %arg9: memref<1x128xf32, #tpu.memory_space<vmem>>, %arg10: memref<1x128xf32, #tpu.memory_space<vmem>>, %arg11: memref<1152x128xbf16, #tpu.memory_space<vmem>>, %arg12: memref<1x128xf32, #tpu.memory_space<vmem>>, %arg13: memref<97x128xf32, #tpu.memory_space<vmem>>, %arg14: memref<33x128xf32, #tpu.memory_space<vmem>>, %arg15: memref<1x33x128xf32, #tpu.memory_space<vmem>>, %arg16: memref<121x128xf32, #tpu.memory_space<vmem>>, %arg17: memref<121x128xf32, #tpu.memory_space<vmem>>, %arg18: memref<121x128xf32, #tpu.memory_space<vmem>>, %arg19: memref<55x128xf32, #tpu.memory_space<vmem>>, %arg20: memref<49x128xf32, #tpu.memory_space<vmem>>) attributes {dimension_semantics = [#tpu.dimension_semantics<parallel>], iteration_bounds = array<i64: 2>, scalar_prefetch = 0 : i64, scratch_operands = 5 : i64, tpu.core_type = #tpu.core_type<tc>, window_params = [{transform_indices = @transform_0, window_bounds = array<i64: 1, 121, 128>}, {pipeline_mode = #tpu.pipeline_mode<synchronous>, transform_indices = @transform_1, window_bounds = array<i64: 128, 128>}, {pipeline_mode = #tpu.pipeline_mode<synchronous>, transform_indices = @transform_2, window_bounds = array<i64: 1, 128>}, {pipeline_mode = #tpu.pipeline_mode<synchronous>, transform_indices = @transform_3, window_bounds = array<i64: 1, 128>}, {pipeline_mode = #tpu.pipeline_mode<synchronous>, transform_indices = @transform_4, window_bounds = array<i64: 9, 128>}, {pipeline_mode = #tpu.pipeline_mode<synchronous>, transform_indices = @transform_5, window_bounds = array<i64: 128, 128>}, {pipeline_mode = #tpu.pipeline_mode<synchronous>, transform_indices = @transform_6, window_bounds = array<i64: 9, 128>}, {pipeline_mode = #tpu.pipeline_mode<synchronous>, transform_indices = @transform_7, window_bounds = array<i64: 128, 128>}, {pipeline_mode = #tpu.pipeline_mode<synchronous>, transform_indices = @transform_8, window_bounds = array<i64: 1, 128>}, {pipeline_mode = #tpu.pipeline_mode<synchronous>, transform_indices = @transform_9, window_bounds = array<i64: 1, 128>}, {pipeline_mode = #tpu.pipeline_mode<synchronous>, transform_indices = @transform_10, window_bounds = array<i64: 1152, 128>}, {pipeline_mode = #tpu.pipeline_mode<synchronous>, transform_indices = @transform_11, window_bounds = array<i64: 1, 128>}, {pipeline_mode = #tpu.pipeline_mode<synchronous>, transform_indices = @transform_12, window_bounds = array<i64: 97, 128>}, {pipeline_mode = #tpu.pipeline_mode<synchronous>, transform_indices = @transform_13, window_bounds = array<i64: 33, 128>}, {transform_indices = @transform_14, window_bounds = array<i64: 1, 33, 128>}]} {
    %c0 = arith.constant 0 : index
    %c0_0 = arith.constant 0 : index
    %0 = vector.load %arg3[%c0, %c0_0] : memref<1x128xf32, #tpu.memory_space<vmem>>, vector<1x128xf32>
    %c0_1 = arith.constant 0 : index
    %c0_2 = arith.constant 0 : index
    %1 = vector.load %arg4[%c0_1, %c0_2] : memref<1x128xf32, #tpu.memory_space<vmem>>, vector<1x128xf32>
    %c0_3 = arith.constant 0 : index
    %c0_4 = arith.constant 0 : index
    %2 = vector.load %arg9[%c0_3, %c0_4] : memref<1x128xf32, #tpu.memory_space<vmem>>, vector<1x128xf32>
    %c0_5 = arith.constant 0 : index
    %c0_6 = arith.constant 0 : index
    %3 = vector.load %arg10[%c0_5, %c0_6] : memref<1x128xf32, #tpu.memory_space<vmem>>, vector<1x128xf32>
    %c0_7 = arith.constant 0 : index
    %c0_8 = arith.constant 0 : index
    %4 = vector.load %arg13[%c0_7, %c0_8] : memref<97x128xf32, #tpu.memory_space<vmem>>, vector<97x128xf32>
    %cst = arith.constant 5.000000e-01 : f32
    %5 = vector.broadcast %cst : f32 to vector<97x128xf32>
    %6 = arith.cmpf ogt, %4, %5 : vector<97x128xf32>
    %cst_9 = arith.constant 0.000000e+00 : f32
    %7 = vector.broadcast %cst_9 : f32 to vector<12x128xf32>
    %cst_10 = arith.constant -1.000000e+30 : f32
    %8 = vector.broadcast %cst_10 : f32 to vector<12x128xf32>
    %c0_11 = arith.constant 0 : index
    %c12 = arith.constant 12 : index
    %c0_12 = arith.constant 0 : index
    %9 = vector.load %arg1[%c0_11, %c12, %c0_12] : memref<1x121x128xbf16, #tpu.memory_space<vmem>>, vector<1x97x128xbf16>
    %10 = vector.shape_cast %9 : vector<1x97x128xbf16> to vector<97x128xbf16>
    %c0_13 = arith.constant 0 : index
    %c0_14 = arith.constant 0 : index
    %11 = vector.load %arg2[%c0_13, %c0_14] : memref<128x128xbf16, #tpu.memory_space<vmem>>, vector<128x128xbf16>
    %cst_15 = arith.constant dense<0.000000e+00> : vector<97x128xf32>
    %12 = tpu.matmul %10, %11, %cst_15 {dimension_numbers = #tpu.dot_dimension_numbers<[1], [0], [0], [1], [0, 0, 1, 1], [], []>} : vector<97x128xbf16>, vector<128x128xbf16>, vector<97x128xf32> -> vector<97x128xf32>
    %13 = vector.broadcast %0 : vector<1x128xf32> to vector<97x128xf32>
    %14 = arith.mulf %12, %13 : vector<97x128xf32>
    %15 = vector.broadcast %1 : vector<1x128xf32> to vector<97x128xf32>
    %16 = arith.addf %14, %15 : vector<97x128xf32>
    %17 = arith.mulf %16, %4 : vector<97x128xf32>
    %c12_16 = arith.constant 12 : index
    %c0_17 = arith.constant 0 : index
    %18 = vector.load %arg16[%c12_16, %c0_17] : memref<121x128xf32, #tpu.memory_space<vmem>>, vector<97x128xf32>
    tpu.vector_store %arg16[%c12_16, %c0_17], %17 {strides = array<i32>} : memref<121x128xf32, #tpu.memory_space<vmem>>, vector<97x128xf32>,
    %c0_18 = arith.constant 0 : index
    %c0_19 = arith.constant 0 : index
    %19 = vector.load %arg16[%c0_18, %c0_19] : memref<121x128xf32, #tpu.memory_space<vmem>>, vector<12x128xf32>
    tpu.vector_store %arg16[%c0_18, %c0_19], %7 {strides = array<i32>} : memref<121x128xf32, #tpu.memory_space<vmem>>, vector<12x128xf32>,
    %c109 = arith.constant 109 : index
    %c0_20 = arith.constant 0 : index
    %20 = vector.load %arg16[%c109, %c0_20] : memref<121x128xf32, #tpu.memory_space<vmem>>, vector<12x128xf32>
    tpu.vector_store %arg16[%c109, %c0_20], %7 {strides = array<i32>} : memref<121x128xf32, #tpu.memory_space<vmem>>, vector<12x128xf32>,
    %c0_21 = arith.constant 0 : index
    %c0_22 = arith.constant 0 : index
    %21 = vector.load %arg5[%c0_21, %c0_22] : memref<9x128xf32, #tpu.memory_space<vmem>>, vector<9x128xf32>
    %c0_23 = arith.constant 0 : index
    %c0_24 = arith.constant 0 : index
    %22 = vector.load %arg16[%c0_23, %c0_24] : memref<121x128xf32, #tpu.memory_space<vmem>>, vector<97x128xf32>
    %23 = vector.extract_strided_slice %21 {offsets = [0, 0], sizes = [1, 128], strides = [1, 1]} : vector<9x128xf32> to vector<1x128xf32>
    %24 = vector.broadcast %23 : vector<1x128xf32> to vector<97x128xf32>
    %25 = arith.mulf %22, %24 : vector<97x128xf32>
    %c1 = arith.constant 1 : index
    %c0_25 = arith.constant 0 : index
    %26 = vector.load %arg16[%c1, %c0_25] : memref<121x128xf32, #tpu.memory_space<vmem>>, vector<97x128xf32>
    %27 = vector.extract_strided_slice %21 {offsets = [1, 0], sizes = [1, 128], strides = [1, 1]} : vector<9x128xf32> to vector<1x128xf32>
    %28 = vector.broadcast %27 : vector<1x128xf32> to vector<97x128xf32>
    %29 = arith.mulf %26, %28 : vector<97x128xf32>
    %30 = arith.addf %25, %29 : vector<97x128xf32>
    %c2 = arith.constant 2 : index
    %c0_26 = arith.constant 0 : index
    %31 = vector.load %arg16[%c2, %c0_26] : memref<121x128xf32, #tpu.memory_space<vmem>>, vector<97x128xf32>
    %32 = vector.extract_strided_slice %21 {offsets = [2, 0], sizes = [1, 128], strides = [1, 1]} : vector<9x128xf32> to vector<1x128xf32>
    %33 = vector.broadcast %32 : vector<1x128xf32> to vector<97x128xf32>
    %34 = arith.mulf %31, %33 : vector<97x128xf32>
    %35 = arith.addf %30, %34 : vector<97x128xf32>
    %c11 = arith.constant 11 : index
    %c0_27 = arith.constant 0 : index
    %36 = vector.load %arg16[%c11, %c0_27] : memref<121x128xf32, #tpu.memory_space<vmem>>, vector<97x128xf32>
    %37 = vector.extract_strided_slice %21 {offsets = [3, 0], sizes = [1, 128], strides = [1, 1]} : vector<9x128xf32> to vector<1x128xf32>
    %38 = vector.broadcast %37 : vector<1x128xf32> to vector<97x128xf32>
    %39 = arith.mulf %36, %38 : vector<97x128xf32>
    %40 = arith.addf %35, %39 : vector<97x128xf32>
    %c12_28 = arith.constant 12 : index
    %c0_29 = arith.constant 0 : index
    %41 = vector.load %arg16[%c12_28, %c0_29] : memref<121x128xf32, #tpu.memory_space<vmem>>, vector<97x128xf32>
    %42 = vector.extract_strided_slice %21 {offsets = [4, 0], sizes = [1, 128], strides = [1, 1]} : vector<9x128xf32> to vector<1x128xf32>
    %43 = vector.broadcast %42 : vector<1x128xf32> to vector<97x128xf32>
    %44 = arith.mulf %41, %43 : vector<97x128xf32>
    %45 = arith.addf %40, %44 : vector<97x128xf32>
    %c13 = arith.constant 13 : index
    %c0_30 = arith.constant 0 : index
    %46 = vector.load %arg16[%c13, %c0_30] : memref<121x128xf32, #tpu.memory_space<vmem>>, vector<97x128xf32>
    %47 = vector.extract_strided_slice %21 {offsets = [5, 0], sizes = [1, 128], strides = [1, 1]} : vector<9x128xf32> to vector<1x128xf32>
    %48 = vector.broadcast %47 : vector<1x128xf32> to vector<97x128xf32>
    %49 = arith.mulf %46, %48 : vector<97x128xf32>
    %50 = arith.addf %45, %49 : vector<97x128xf32>
    %c22 = arith.constant 22 : index
    %c0_31 = arith.constant 0 : index
    %51 = vector.load %arg16[%c22, %c0_31] : memref<121x128xf32, #tpu.memory_space<vmem>>, vector<97x128xf32>
    %52 = vector.extract_strided_slice %21 {offsets = [6, 0], sizes = [1, 128], strides = [1, 1]} : vector<9x128xf32> to vector<1x128xf32>
    %53 = vector.broadcast %52 : vector<1x128xf32> to vector<97x128xf32>
    %54 = arith.mulf %51, %53 : vector<97x128xf32>
    %55 = arith.addf %50, %54 : vector<97x128xf32>
    %c23 = arith.constant 23 : index
    %c0_32 = arith.constant 0 : index
    %56 = vector.load %arg16[%c23, %c0_32] : memref<121x128xf32, #tpu.memory_space<vmem>>, vector<97x128xf32>
    %57 = vector.extract_strided_slice %21 {offsets = [7, 0], sizes = [1, 128], strides = [1, 1]} : vector<9x128xf32> to vector<1x128xf32>
    %58 = vector.broadcast %57 : vector<1x128xf32> to vector<97x128xf32>
    %59 = arith.mulf %56, %58 : vector<97x128xf32>
    %60 = arith.addf %55, %59 : vector<97x128xf32>
    %c24 = arith.constant 24 : index
    %c0_33 = arith.constant 0 : index
    %61 = vector.load %arg16[%c24, %c0_33] : memref<121x128xf32, #tpu.memory_space<vmem>>, vector<97x128xf32>
    %62 = vector.extract_strided_slice %21 {offsets = [8, 0], sizes = [1, 128], strides = [1, 1]} : vector<9x128xf32> to vector<1x128xf32>
    %63 = vector.broadcast %62 : vector<1x128xf32> to vector<97x128xf32>
    %64 = arith.mulf %61, %63 : vector<97x128xf32>
    %65 = arith.addf %60, %64 : vector<97x128xf32>
    %66 = arith.truncf %65 : vector<97x128xf32> to vector<97x128xbf16>
    %c0_34 = arith.constant 0 : index
    %c0_35 = arith.constant 0 : index
    %67 = vector.load %arg6[%c0_34, %c0_35] : memref<128x128xbf16, #tpu.memory_space<vmem>>, vector<128x128xbf16>
    %cst_36 = arith.constant dense<0.000000e+00> : vector<97x128xf32>
    %68 = tpu.matmul %66, %67, %cst_36 {dimension_numbers = #tpu.dot_dimension_numbers<[1], [0], [0], [1], [0, 0, 1, 1], [], []>} : vector<97x128xbf16>, vector<128x128xbf16>, vector<97x128xf32> -> vector<97x128xf32>
    %69 = vector.broadcast %0 : vector<1x128xf32> to vector<97x128xf32>
    %70 = arith.mulf %68, %69 : vector<97x128xf32>
    %71 = vector.broadcast %1 : vector<1x128xf32> to vector<97x128xf32>
    %72 = arith.addf %70, %71 : vector<97x128xf32>
    %cst_37 = arith.constant 0.000000e+00 : f32
    %73 = vector.broadcast %cst_37 : f32 to vector<97x128xf32>
    %74 = arith.maximumf %72, %73 : vector<97x128xf32>
    %75 = arith.mulf %74, %4 : vector<97x128xf32>
    %c12_38 = arith.constant 12 : index
    %c0_39 = arith.constant 0 : index
    %76 = vector.load %arg17[%c12_38, %c0_39] : memref<121x128xf32, #tpu.memory_space<vmem>>, vector<97x128xf32>
    tpu.vector_store %arg17[%c12_38, %c0_39], %75 {strides = array<i32>} : memref<121x128xf32, #tpu.memory_space<vmem>>, vector<97x128xf32>,
    %c0_40 = arith.constant 0 : index
    %c0_41 = arith.constant 0 : index
    %77 = vector.load %arg17[%c0_40, %c0_41] : memref<121x128xf32, #tpu.memory_space<vmem>>, vector<12x128xf32>
    tpu.vector_store %arg17[%c0_40, %c0_41], %7 {strides = array<i32>} : memref<121x128xf32, #tpu.memory_space<vmem>>, vector<12x128xf32>,
    %c109_42 = arith.constant 109 : index
    %c0_43 = arith.constant 0 : index
    %78 = vector.load %arg17[%c109_42, %c0_43] : memref<121x128xf32, #tpu.memory_space<vmem>>, vector<12x128xf32>
    tpu.vector_store %arg17[%c109_42, %c0_43], %7 {strides = array<i32>} : memref<121x128xf32, #tpu.memory_space<vmem>>, vector<12x128xf32>,
    %c0_44 = arith.constant 0 : index
    %c0_45 = arith.constant 0 : index
    %79 = vector.load %arg7[%c0_44, %c0_45] : memref<9x128xf32, #tpu.memory_space<vmem>>, vector<9x128xf32>
    %c0_46 = arith.constant 0 : index
    %c0_47 = arith.constant 0 : index
    %80 = vector.load %arg17[%c0_46, %c0_47] : memref<121x128xf32, #tpu.memory_space<vmem>>, vector<97x128xf32>
    %81 = vector.extract_strided_slice %79 {offsets = [0, 0], sizes = [1, 128], strides = [1, 1]} : vector<9x128xf32> to vector<1x128xf32>
    %82 = vector.broadcast %81 : vector<1x128xf32> to vector<97x128xf32>
    %83 = arith.mulf %80, %82 : vector<97x128xf32>
    %c1_48 = arith.constant 1 : index
    %c0_49 = arith.constant 0 : index
    %84 = vector.load %arg17[%c1_48, %c0_49] : memref<121x128xf32, #tpu.memory_space<vmem>>, vector<97x128xf32>
    %85 = vector.extract_strided_slice %79 {offsets = [1, 0], sizes = [1, 128], strides = [1, 1]} : vector<9x128xf32> to vector<1x128xf32>
    %86 = vector.broadcast %85 : vector<1x128xf32> to vector<97x128xf32>
    %87 = arith.mulf %84, %86 : vector<97x128xf32>
    %88 = arith.addf %83, %87 : vector<97x128xf32>
    %c2_50 = arith.constant 2 : index
    %c0_51 = arith.constant 0 : index
    %89 = vector.load %arg17[%c2_50, %c0_51] : memref<121x128xf32, #tpu.memory_space<vmem>>, vector<97x128xf32>
    %90 = vector.extract_strided_slice %79 {offsets = [2, 0], sizes = [1, 128], strides = [1, 1]} : vector<9x128xf32> to vector<1x128xf32>
    %91 = vector.broadcast %90 : vector<1x128xf32> to vector<97x128xf32>
    %92 = arith.mulf %89, %91 : vector<97x128xf32>
    %93 = arith.addf %88, %92 : vector<97x128xf32>
    %c11_52 = arith.constant 11 : index
    %c0_53 = arith.constant 0 : index
    %94 = vector.load %arg17[%c11_52, %c0_53] : memref<121x128xf32, #tpu.memory_space<vmem>>, vector<97x128xf32>
    %95 = vector.extract_strided_slice %79 {offsets = [3, 0], sizes = [1, 128], strides = [1, 1]} : vector<9x128xf32> to vector<1x128xf32>
    %96 = vector.broadcast %95 : vector<1x128xf32> to vector<97x128xf32>
    %97 = arith.mulf %94, %96 : vector<97x128xf32>
    %98 = arith.addf %93, %97 : vector<97x128xf32>
    %c12_54 = arith.constant 12 : index
    %c0_55 = arith.constant 0 : index
    %99 = vector.load %arg17[%c12_54, %c0_55] : memref<121x128xf32, #tpu.memory_space<vmem>>, vector<97x128xf32>
    %100 = vector.extract_strided_slice %79 {offsets = [4, 0], sizes = [1, 128], strides = [1, 1]} : vector<9x128xf32> to vector<1x128xf32>
    %101 = vector.broadcast %100 : vector<1x128xf32> to vector<97x128xf32>
    %102 = arith.mulf %99, %101 : vector<97x128xf32>
    %103 = arith.addf %98, %102 : vector<97x128xf32>
    %c13_56 = arith.constant 13 : index
    %c0_57 = arith.constant 0 : index
    %104 = vector.load %arg17[%c13_56, %c0_57] : memref<121x128xf32, #tpu.memory_space<vmem>>, vector<97x128xf32>
    %105 = vector.extract_strided_slice %79 {offsets = [5, 0], sizes = [1, 128], strides = [1, 1]} : vector<9x128xf32> to vector<1x128xf32>
    %106 = vector.broadcast %105 : vector<1x128xf32> to vector<97x128xf32>
    %107 = arith.mulf %104, %106 : vector<97x128xf32>
    %108 = arith.addf %103, %107 : vector<97x128xf32>
    %c22_58 = arith.constant 22 : index
    %c0_59 = arith.constant 0 : index
    %109 = vector.load %arg17[%c22_58, %c0_59] : memref<121x128xf32, #tpu.memory_space<vmem>>, vector<97x128xf32>
    %110 = vector.extract_strided_slice %79 {offsets = [6, 0], sizes = [1, 128], strides = [1, 1]} : vector<9x128xf32> to vector<1x128xf32>
    %111 = vector.broadcast %110 : vector<1x128xf32> to vector<97x128xf32>
    %112 = arith.mulf %109, %111 : vector<97x128xf32>
    %113 = arith.addf %108, %112 : vector<97x128xf32>
    %c23_60 = arith.constant 23 : index
    %c0_61 = arith.constant 0 : index
    %114 = vector.load %arg17[%c23_60, %c0_61] : memref<121x128xf32, #tpu.memory_space<vmem>>, vector<97x128xf32>
    %115 = vector.extract_strided_slice %79 {offsets = [7, 0], sizes = [1, 128], strides = [1, 1]} : vector<9x128xf32> to vector<1x128xf32>
    %116 = vector.broadcast %115 : vector<1x128xf32> to vector<97x128xf32>
    %117 = arith.mulf %114, %116 : vector<97x128xf32>
    %118 = arith.addf %113, %117 : vector<97x128xf32>
    %c24_62 = arith.constant 24 : index
    %c0_63 = arith.constant 0 : index
    %119 = vector.load %arg17[%c24_62, %c0_63] : memref<121x128xf32, #tpu.memory_space<vmem>>, vector<97x128xf32>
    %120 = vector.extract_strided_slice %79 {offsets = [8, 0], sizes = [1, 128], strides = [1, 1]} : vector<9x128xf32> to vector<1x128xf32>
    %121 = vector.broadcast %120 : vector<1x128xf32> to vector<97x128xf32>
    %122 = arith.mulf %119, %121 : vector<97x128xf32>
    %123 = arith.addf %118, %122 : vector<97x128xf32>
    %124 = arith.truncf %123 : vector<97x128xf32> to vector<97x128xbf16>
    %c0_64 = arith.constant 0 : index
    %c0_65 = arith.constant 0 : index
    %125 = vector.load %arg8[%c0_64, %c0_65] : memref<128x128xbf16, #tpu.memory_space<vmem>>, vector<128x128xbf16>
    %cst_66 = arith.constant dense<0.000000e+00> : vector<97x128xf32>
    %126 = tpu.matmul %124, %125, %cst_66 {dimension_numbers = #tpu.dot_dimension_numbers<[1], [0], [0], [1], [0, 0, 1, 1], [], []>} : vector<97x128xbf16>, vector<128x128xbf16>, vector<97x128xf32> -> vector<97x128xf32>
    %127 = vector.broadcast %2 : vector<1x128xf32> to vector<97x128xf32>
    %128 = arith.mulf %126, %127 : vector<97x128xf32>
    %129 = vector.broadcast %3 : vector<1x128xf32> to vector<97x128xf32>
    %130 = arith.addf %128, %129 : vector<97x128xf32>
    %cst_67 = arith.constant -1.000000e+30 : f32
    %131 = vector.broadcast %cst_67 : f32 to vector<97x128xf32>
    %132 = arith.select %6, %130, %131 : vector<97x128xi1>, vector<97x128xf32>
    %c12_68 = arith.constant 12 : index
    %c0_69 = arith.constant 0 : index
    %133 = vector.load %arg18[%c12_68, %c0_69] : memref<121x128xf32, #tpu.memory_space<vmem>>, vector<97x128xf32>
    tpu.vector_store %arg18[%c12_68, %c0_69], %132 {strides = array<i32>} : memref<121x128xf32, #tpu.memory_space<vmem>>, vector<97x128xf32>,
    %c0_70 = arith.constant 0 : index
    %c0_71 = arith.constant 0 : index
    %134 = vector.load %arg18[%c0_70, %c0_71] : memref<121x128xf32, #tpu.memory_space<vmem>>, vector<12x128xf32>
    tpu.vector_store %arg18[%c0_70, %c0_71], %8 {strides = array<i32>} : memref<121x128xf32, #tpu.memory_space<vmem>>, vector<12x128xf32>,
    %c109_72 = arith.constant 109 : index
    %c0_73 = arith.constant 0 : index
    %135 = vector.load %arg18[%c109_72, %c0_73] : memref<121x128xf32, #tpu.memory_space<vmem>>, vector<12x128xf32>
    tpu.vector_store %arg18[%c109_72, %c0_73], %8 {strides = array<i32>} : memref<121x128xf32, #tpu.memory_space<vmem>>, vector<12x128xf32>,
    %cst_74 = arith.constant 0.000000e+00 : f32
    %136 = vector.broadcast %cst_74 : f32 to vector<49x128xf32>
    %c0_75 = arith.constant 0 : index
    %c0_76 = arith.constant 0 : index
    %137 = vector.load %arg20[%c0_75, %c0_76] : memref<49x128xf32, #tpu.memory_space<vmem>>, vector<49x128xf32>
    tpu.vector_store %arg20[%c0_75, %c0_76], %136 {strides = array<i32>} : memref<49x128xf32, #tpu.memory_space<vmem>>, vector<49x128xf32>,
    %c0_77 = arith.constant 0 : index
    %c0_78 = arith.constant 0 : index
    %138 = vector.load %arg18[%c0_77, %c0_78] : memref<121x128xf32, #tpu.memory_space<vmem>>, vector<11x128xf32>
    %c11_79 = arith.constant 11 : index
    %c0_80 = arith.constant 0 : index
    %139 = vector.load %arg18[%c11_79, %c0_80] : memref<121x128xf32, #tpu.memory_space<vmem>>, vector<11x128xf32>
    %c22_81 = arith.constant 22 : index
    %c0_82 = arith.constant 0 : index
    %140 = vector.load %arg18[%c22_81, %c0_82] : memref<121x128xf32, #tpu.memory_space<vmem>>, vector<11x128xf32>
    %141 = arith.maximumf %138, %139 : vector<11x128xf32>
    %142 = arith.maximumf %141, %140 : vector<11x128xf32>
    %c0_83 = arith.constant 0 : index
    %c0_84 = arith.constant 0 : index
    %143 = vector.load %arg19[%c0_83, %c0_84] : memref<55x128xf32, #tpu.memory_space<vmem>>, vector<11x128xf32>
    tpu.vector_store %arg19[%c0_83, %c0_84], %142 {strides = array<i32>} : memref<55x128xf32, #tpu.memory_space<vmem>>, vector<11x128xf32>,
    %c22_85 = arith.constant 22 : index
    %c0_86 = arith.constant 0 : index
    %144 = vector.load %arg18[%c22_85, %c0_86] : memref<121x128xf32, #tpu.memory_space<vmem>>, vector<11x128xf32>
    %c33 = arith.constant 33 : index
    %c0_87 = arith.constant 0 : index
    %145 = vector.load %arg18[%c33, %c0_87] : memref<121x128xf32, #tpu.memory_space<vmem>>, vector<11x128xf32>
    %c44 = arith.constant 44 : index
    %c0_88 = arith.constant 0 : index
    %146 = vector.load %arg18[%c44, %c0_88] : memref<121x128xf32, #tpu.memory_space<vmem>>, vector<11x128xf32>
    %147 = arith.maximumf %144, %145 : vector<11x128xf32>
    %148 = arith.maximumf %147, %146 : vector<11x128xf32>
    %c11_89 = arith.constant 11 : index
    %c0_90 = arith.constant 0 : index
    %149 = vector.load %arg19[%c11_89, %c0_90] : memref<55x128xf32, #tpu.memory_space<vmem>>, vector<11x128xf32>
    tpu.vector_store %arg19[%c11_89, %c0_90], %148 {strides = array<i32>} : memref<55x128xf32, #tpu.memory_space<vmem>>, vector<11x128xf32>,
    %c44_91 = arith.constant 44 : index
    %c0_92 = arith.constant 0 : index
    %150 = vector.load %arg18[%c44_91, %c0_92] : memref<121x128xf32, #tpu.memory_space<vmem>>, vector<11x128xf32>
    %c55 = arith.constant 55 : index
    %c0_93 = arith.constant 0 : index
    %151 = vector.load %arg18[%c55, %c0_93] : memref<121x128xf32, #tpu.memory_space<vmem>>, vector<11x128xf32>
    %c66 = arith.constant 66 : index
    %c0_94 = arith.constant 0 : index
    %152 = vector.load %arg18[%c66, %c0_94] : memref<121x128xf32, #tpu.memory_space<vmem>>, vector<11x128xf32>
    %153 = arith.maximumf %150, %151 : vector<11x128xf32>
    %154 = arith.maximumf %153, %152 : vector<11x128xf32>
    %c22_95 = arith.constant 22 : index
    %c0_96 = arith.constant 0 : index
    %155 = vector.load %arg19[%c22_95, %c0_96] : memref<55x128xf32, #tpu.memory_space<vmem>>, vector<11x128xf32>
    tpu.vector_store %arg19[%c22_95, %c0_96], %154 {strides = array<i32>} : memref<55x128xf32, #tpu.memory_space<vmem>>, vector<11x128xf32>,
    %c66_97 = arith.constant 66 : index
    %c0_98 = arith.constant 0 : index
    %156 = vector.load %arg18[%c66_97, %c0_98] : memref<121x128xf32, #tpu.memory_space<vmem>>, vector<11x128xf32>
    %c77 = arith.constant 77 : index
    %c0_99 = arith.constant 0 : index
    %157 = vector.load %arg18[%c77, %c0_99] : memref<121x128xf32, #tpu.memory_space<vmem>>, vector<11x128xf32>
    %c88 = arith.constant 88 : index
    %c0_100 = arith.constant 0 : index
    %158 = vector.load %arg18[%c88, %c0_100] : memref<121x128xf32, #tpu.memory_space<vmem>>, vector<11x128xf32>
    %159 = arith.maximumf %156, %157 : vector<11x128xf32>
    %160 = arith.maximumf %159, %158 : vector<11x128xf32>
    %c33_101 = arith.constant 33 : index
    %c0_102 = arith.constant 0 : index
    %161 = vector.load %arg19[%c33_101, %c0_102] : memref<55x128xf32, #tpu.memory_space<vmem>>, vector<11x128xf32>
    tpu.vector_store %arg19[%c33_101, %c0_102], %160 {strides = array<i32>} : memref<55x128xf32, #tpu.memory_space<vmem>>, vector<11x128xf32>,
    %c88_103 = arith.constant 88 : index
    %c0_104 = arith.constant 0 : index
    %162 = vector.load %arg18[%c88_103, %c0_104] : memref<121x128xf32, #tpu.memory_space<vmem>>, vector<11x128xf32>
    %c99 = arith.constant 99 : index
    %c0_105 = arith.constant 0 : index
    %163 = vector.load %arg18[%c99, %c0_105] : memref<121x128xf32, #tpu.memory_space<vmem>>, vector<11x128xf32>
    %c110 = arith.constant 110 : index
    %c0_106 = arith.constant 0 : index
    %164 = vector.load %arg18[%c110, %c0_106] : memref<121x128xf32, #tpu.memory_space<vmem>>, vector<11x128xf32>
    %165 = arith.maximumf %162, %163 : vector<11x128xf32>
    %166 = arith.maximumf %165, %164 : vector<11x128xf32>
    %c44_107 = arith.constant 44 : index
    %c0_108 = arith.constant 0 : index
    %167 = vector.load %arg19[%c44_107, %c0_108] : memref<55x128xf32, #tpu.memory_space<vmem>>, vector<11x128xf32>
    tpu.vector_store %arg19[%c44_107, %c0_108], %166 {strides = array<i32>} : memref<55x128xf32, #tpu.memory_space<vmem>>, vector<11x128xf32>,
    %c0_109 = arith.constant 0 : index
    %c0_110 = arith.constant 0 : index
    %168 = tpu.strided_load %arg19[%c0_109, %c0_110] {strides = array<i32: 2, 1>} : memref<55x128xf32, #tpu.memory_space<vmem>>, vector<5x128xf32>
    %c1_111 = arith.constant 1 : index
    %c0_112 = arith.constant 0 : index
    %169 = tpu.strided_load %arg19[%c1_111, %c0_112] {strides = array<i32: 2, 1>} : memref<55x128xf32, #tpu.memory_space<vmem>>, vector<5x128xf32>
    %c2_113 = arith.constant 2 : index
    %c0_114 = arith.constant 0 : index
    %170 = tpu.strided_load %arg19[%c2_113, %c0_114] {strides = array<i32: 2, 1>} : memref<55x128xf32, #tpu.memory_space<vmem>>, vector<5x128xf32>
    %171 = arith.maximumf %168, %169 : vector<5x128xf32>
    %172 = arith.maximumf %171, %170 : vector<5x128xf32>
    %c8 = arith.constant 8 : index
    %c0_115 = arith.constant 0 : index
    %173 = vector.load %arg20[%c8, %c0_115] : memref<49x128xf32, #tpu.memory_space<vmem>>, vector<5x128xf32>
    tpu.vector_store %arg20[%c8, %c0_115], %172 {strides = array<i32>} : memref<49x128xf32, #tpu.memory_space<vmem>>, vector<5x128xf32>,
    %c11_116 = arith.constant 11 : index
    %c0_117 = arith.constant 0 : index
    %174 = tpu.strided_load %arg19[%c11_116, %c0_117] {strides = array<i32: 2, 1>} : memref<55x128xf32, #tpu.memory_space<vmem>>, vector<5x128xf32>
    %c12_118 = arith.constant 12 : index
    %c0_119 = arith.constant 0 : index
    %175 = tpu.strided_load %arg19[%c12_118, %c0_119] {strides = array<i32: 2, 1>} : memref<55x128xf32, #tpu.memory_space<vmem>>, vector<5x128xf32>
    %c13_120 = arith.constant 13 : index
    %c0_121 = arith.constant 0 : index
    %176 = tpu.strided_load %arg19[%c13_120, %c0_121] {strides = array<i32: 2, 1>} : memref<55x128xf32, #tpu.memory_space<vmem>>, vector<5x128xf32>
    %177 = arith.maximumf %174, %175 : vector<5x128xf32>
    %178 = arith.maximumf %177, %176 : vector<5x128xf32>
    %c15 = arith.constant 15 : index
    %c0_122 = arith.constant 0 : index
    %179 = vector.load %arg20[%c15, %c0_122] : memref<49x128xf32, #tpu.memory_space<vmem>>, vector<5x128xf32>
    tpu.vector_store %arg20[%c15, %c0_122], %178 {strides = array<i32>} : memref<49x128xf32, #tpu.memory_space<vmem>>, vector<5x128xf32>,
    %c22_123 = arith.constant 22 : index
    %c0_124 = arith.constant 0 : index
    %180 = tpu.strided_load %arg19[%c22_123, %c0_124] {strides = array<i32: 2, 1>} : memref<55x128xf32, #tpu.memory_space<vmem>>, vector<5x128xf32>
    %c23_125 = arith.constant 23 : index
    %c0_126 = arith.constant 0 : index
    %181 = tpu.strided_load %arg19[%c23_125, %c0_126] {strides = array<i32: 2, 1>} : memref<55x128xf32, #tpu.memory_space<vmem>>, vector<5x128xf32>
    %c24_127 = arith.constant 24 : index
    %c0_128 = arith.constant 0 : index
    %182 = tpu.strided_load %arg19[%c24_127, %c0_128] {strides = array<i32: 2, 1>} : memref<55x128xf32, #tpu.memory_space<vmem>>, vector<5x128xf32>
    %183 = arith.maximumf %180, %181 : vector<5x128xf32>
    %184 = arith.maximumf %183, %182 : vector<5x128xf32>
    %c22_129 = arith.constant 22 : index
    %c0_130 = arith.constant 0 : index
    %185 = vector.load %arg20[%c22_129, %c0_130] : memref<49x128xf32, #tpu.memory_space<vmem>>, vector<5x128xf32>
    tpu.vector_store %arg20[%c22_129, %c0_130], %184 {strides = array<i32>} : memref<49x128xf32, #tpu.memory_space<vmem>>, vector<5x128xf32>,
    %c33_131 = arith.constant 33 : index
    %c0_132 = arith.constant 0 : index
    %186 = tpu.strided_load %arg19[%c33_131, %c0_132] {strides = array<i32: 2, 1>} : memref<55x128xf32, #tpu.memory_space<vmem>>, vector<5x128xf32>
    %c34 = arith.constant 34 : index
    %c0_133 = arith.constant 0 : index
    %187 = tpu.strided_load %arg19[%c34, %c0_133] {strides = array<i32: 2, 1>} : memref<55x128xf32, #tpu.memory_space<vmem>>, vector<5x128xf32>
    %c35 = arith.constant 35 : index
    %c0_134 = arith.constant 0 : index
    %188 = tpu.strided_load %arg19[%c35, %c0_134] {strides = array<i32: 2, 1>} : memref<55x128xf32, #tpu.memory_space<vmem>>, vector<5x128xf32>
    %189 = arith.maximumf %186, %187 : vector<5x128xf32>
    %190 = arith.maximumf %189, %188 : vector<5x128xf32>
    %c29 = arith.constant 29 : index
    %c0_135 = arith.constant 0 : index
    %191 = vector.load %arg20[%c29, %c0_135] : memref<49x128xf32, #tpu.memory_space<vmem>>, vector<5x128xf32>
    tpu.vector_store %arg20[%c29, %c0_135], %190 {strides = array<i32>} : memref<49x128xf32, #tpu.memory_space<vmem>>, vector<5x128xf32>,
    %c44_136 = arith.constant 44 : index
    %c0_137 = arith.constant 0 : index
    %192 = tpu.strided_load %arg19[%c44_136, %c0_137] {strides = array<i32: 2, 1>} : memref<55x128xf32, #tpu.memory_space<vmem>>, vector<5x128xf32>
    %c45 = arith.constant 45 : index
    %c0_138 = arith.constant 0 : index
    %193 = tpu.strided_load %arg19[%c45, %c0_138] {strides = array<i32: 2, 1>} : memref<55x128xf32, #tpu.memory_space<vmem>>, vector<5x128xf32>
    %c46 = arith.constant 46 : index
    %c0_139 = arith.constant 0 : index
    %194 = tpu.strided_load %arg19[%c46, %c0_139] {strides = array<i32: 2, 1>} : memref<55x128xf32, #tpu.memory_space<vmem>>, vector<5x128xf32>
    %195 = arith.maximumf %192, %193 : vector<5x128xf32>
    %196 = arith.maximumf %195, %194 : vector<5x128xf32>
    %c36 = arith.constant 36 : index
    %c0_140 = arith.constant 0 : index
    %197 = vector.load %arg20[%c36, %c0_140] : memref<49x128xf32, #tpu.memory_space<vmem>>, vector<5x128xf32>
    tpu.vector_store %arg20[%c36, %c0_140], %196 {strides = array<i32>} : memref<49x128xf32, #tpu.memory_space<vmem>>, vector<5x128xf32>,
    %c0_141 = arith.constant 0 : index
    %c0_142 = arith.constant 0 : index
    %198 = vector.load %arg20[%c0_141, %c0_142] : memref<49x128xf32, #tpu.memory_space<vmem>>, vector<33x128xf32>
    %c1_143 = arith.constant 1 : index
    %c0_144 = arith.constant 0 : index
    %199 = vector.load %arg20[%c1_143, %c0_144] : memref<49x128xf32, #tpu.memory_space<vmem>>, vector<33x128xf32>
    %c2_145 = arith.constant 2 : index
    %c0_146 = arith.constant 0 : index
    %200 = vector.load %arg20[%c2_145, %c0_146] : memref<49x128xf32, #tpu.memory_space<vmem>>, vector<33x128xf32>
    %c7 = arith.constant 7 : index
    %c0_147 = arith.constant 0 : index
    %201 = vector.load %arg20[%c7, %c0_147] : memref<49x128xf32, #tpu.memory_space<vmem>>, vector<33x128xf32>
    %c8_148 = arith.constant 8 : index
    %c0_149 = arith.constant 0 : index
    %202 = vector.load %arg20[%c8_148, %c0_149] : memref<49x128xf32, #tpu.memory_space<vmem>>, vector<33x128xf32>
    %c9 = arith.constant 9 : index
    %c0_150 = arith.constant 0 : index
    %203 = vector.load %arg20[%c9, %c0_150] : memref<49x128xf32, #tpu.memory_space<vmem>>, vector<33x128xf32>
    %c14 = arith.constant 14 : index
    %c0_151 = arith.constant 0 : index
    %204 = vector.load %arg20[%c14, %c0_151] : memref<49x128xf32, #tpu.memory_space<vmem>>, vector<33x128xf32>
    %c15_152 = arith.constant 15 : index
    %c0_153 = arith.constant 0 : index
    %205 = vector.load %arg20[%c15_152, %c0_153] : memref<49x128xf32, #tpu.memory_space<vmem>>, vector<33x128xf32>
    %c16 = arith.constant 16 : index
    %c0_154 = arith.constant 0 : index
    %206 = vector.load %arg20[%c16, %c0_154] : memref<49x128xf32, #tpu.memory_space<vmem>>, vector<33x128xf32>
    %207 = tpu.concatenate %198, %199, %200, %201, %202, %203, %204, %205, %206 in 1 : vector<33x128xf32>, vector<33x128xf32>, vector<33x128xf32>, vector<33x128xf32>, vector<33x128xf32>, vector<33x128xf32>, vector<33x128xf32>, vector<33x128xf32>, vector<33x128xf32> -> vector<33x1152xf32>
    %208 = arith.truncf %207 : vector<33x1152xf32> to vector<33x1152xbf16>
    %c0_155 = arith.constant 0 : index
    %c0_156 = arith.constant 0 : index
    %209 = vector.load %arg11[%c0_155, %c0_156] : memref<1152x128xbf16, #tpu.memory_space<vmem>>, vector<1152x128xbf16>
    %cst_157 = arith.constant dense<0.000000e+00> : vector<33x128xf32>
    %210 = tpu.matmul %208, %209, %cst_157 {dimension_numbers = #tpu.dot_dimension_numbers<[1], [0], [0], [1], [0, 0, 1, 1], [], []>} : vector<33x1152xbf16>, vector<1152x128xbf16>, vector<33x128xf32> -> vector<33x128xf32>
    %c0_158 = arith.constant 0 : index
    %c0_159 = arith.constant 0 : index
    %211 = vector.load %arg12[%c0_158, %c0_159] : memref<1x128xf32, #tpu.memory_space<vmem>>, vector<1x128xf32>
    %212 = vector.broadcast %211 : vector<1x128xf32> to vector<33x128xf32>
    %213 = arith.addf %210, %212 : vector<33x128xf32>
    %c0_160 = arith.constant 0 : index
    %c0_161 = arith.constant 0 : index
    %214 = vector.load %arg14[%c0_160, %c0_161] : memref<33x128xf32, #tpu.memory_space<vmem>>, vector<33x128xf32>
    %cst_162 = arith.constant 5.000000e-01 : f32
    %215 = vector.broadcast %cst_162 : f32 to vector<33x128xf32>
    %216 = arith.cmpf ogt, %214, %215 : vector<33x128xf32>
    %cst_163 = arith.constant -1.000000e+30 : f32
    %217 = vector.broadcast %cst_163 : f32 to vector<33x128xf32>
    %218 = arith.select %216, %213, %217 : vector<33x128xi1>, vector<33x128xf32>
    %219 = vector.shape_cast %218 : vector<33x128xf32> to vector<1x33x128xf32>
    %cst_164 = arith.constant dense<0xFF800000> : vector<1xf32>
    %220 = vector.multi_reduction <maximumf>, %219, %cst_164 [1, 2] : vector<1x33x128xf32> to vector<1xf32>
    %221 = vector.shape_cast %220 : vector<1xf32> to vector<1x1x1xf32>
    %222 = vector.extract %221[0, 0, 0] : f32 from vector<1x1x1xf32>
    %223 = vector.broadcast %222 : f32 to vector<1x1xf32>
    %224 = vector.broadcast %223 : vector<1x1xf32> to vector<33x128xf32>
    %225 = arith.subf %218, %224 : vector<33x128xf32>
    %226 = math.exp %225 : vector<33x128xf32>
    %227 = vector.shape_cast %226 : vector<33x128xf32> to vector<1x33x128xf32>
    %cst_165 = arith.constant dense<0.000000e+00> : vector<1xf32>
    %228 = vector.multi_reduction <add>, %227, %cst_165 [1, 2] : vector<1x33x128xf32> to vector<1xf32>
    %229 = vector.shape_cast %228 : vector<1xf32> to vector<1x1x1xf32>
    %230 = vector.extract %229[0, 0, 0] : f32 from vector<1x1x1xf32>
    %231 = vector.broadcast %230 : f32 to vector<1x1xf32>
    %cst_166 = arith.constant 1.000000e+00 : f32
    %232 = vector.broadcast %cst_166 : f32 to vector<1x1xf32>
    %233 = arith.divf %232, %231 : vector<1x1xf32>
    %234 = vector.broadcast %233 : vector<1x1xf32> to vector<33x128xf32>
    %235 = arith.mulf %226, %234 : vector<33x128xf32>
    %c0_167 = arith.constant 0 : index
    %c0_168 = arith.constant 0 : index
    %c0_169 = arith.constant 0 : index
    %236 = vector.load %arg15[%c0_167, %c0_168, %c0_169] : memref<1x33x128xf32, #tpu.memory_space<vmem>>, vector<1x33x128xf32>
    %237 = vector.shape_cast %236 : vector<1x33x128xf32> to vector<33x128xf32>
    %238 = vector.shape_cast %235 : vector<33x128xf32> to vector<1x33x128xf32>
    tpu.vector_store %arg15[%c0_167, %c0_168, %c0_169], %238 {strides = array<i32>} : memref<1x33x128xf32, #tpu.memory_space<vmem>>, vector<1x33x128xf32>,
    return
  }
  func.func @transform_0(%arg0: i32) -> (i32, i32, i32) {
    %c0_i32 = arith.constant 0 : i32
    %c0_i32_0 = arith.constant 0 : i32
    %c0_i32_1 = arith.constant 0 : i32
    return %arg0, %c0_i32, %c0_i32_0 : i32, i32, i32
  }
  func.func @transform_1(%arg0: i32) -> (i32, i32) {
    %c0_i32 = arith.constant 0 : i32
    %c0_i32_0 = arith.constant 0 : i32
    %c0_i32_1 = arith.constant 0 : i32
    return %c0_i32, %c0_i32_0 : i32, i32
  }
  func.func @transform_2(%arg0: i32) -> (i32, i32) {
    %c0_i32 = arith.constant 0 : i32
    %c0_i32_0 = arith.constant 0 : i32
    %c0_i32_1 = arith.constant 0 : i32
    return %c0_i32, %c0_i32_0 : i32, i32
  }
  func.func @transform_3(%arg0: i32) -> (i32, i32) {
    %c0_i32 = arith.constant 0 : i32
    %c0_i32_0 = arith.constant 0 : i32
    %c0_i32_1 = arith.constant 0 : i32
    return %c0_i32, %c0_i32_0 : i32, i32
  }
  func.func @transform_4(%arg0: i32) -> (i32, i32) {
    %c0_i32 = arith.constant 0 : i32
    %c0_i32_0 = arith.constant 0 : i32
    %c0_i32_1 = arith.constant 0 : i32
    return %c0_i32, %c0_i32_0 : i32, i32
  }
  func.func @transform_5(%arg0: i32) -> (i32, i32) {
    %c0_i32 = arith.constant 0 : i32
    %c0_i32_0 = arith.constant 0 : i32
    %c0_i32_1 = arith.constant 0 : i32
    return %c0_i32, %c0_i32_0 : i32, i32
  }
  func.func @transform_6(%arg0: i32) -> (i32, i32) {
    %c0_i32 = arith.constant 0 : i32
    %c0_i32_0 = arith.constant 0 : i32
    %c0_i32_1 = arith.constant 0 : i32
    return %c0_i32, %c0_i32_0 : i32, i32
  }
  func.func @transform_7(%arg0: i32) -> (i32, i32) {
    %c0_i32 = arith.constant 0 : i32
    %c0_i32_0 = arith.constant 0 : i32
    %c0_i32_1 = arith.constant 0 : i32
    return %c0_i32, %c0_i32_0 : i32, i32
  }
  func.func @transform_8(%arg0: i32) -> (i32, i32) {
    %c0_i32 = arith.constant 0 : i32
    %c0_i32_0 = arith.constant 0 : i32
    %c0_i32_1 = arith.constant 0 : i32
    return %c0_i32, %c0_i32_0 : i32, i32
  }
  func.func @transform_9(%arg0: i32) -> (i32, i32) {
    %c0_i32 = arith.constant 0 : i32
    %c0_i32_0 = arith.constant 0 : i32
    %c0_i32_1 = arith.constant 0 : i32
    return %c0_i32, %c0_i32_0 : i32, i32
  }
  func.func @transform_10(%arg0: i32) -> (i32, i32) {
    %c0_i32 = arith.constant 0 : i32
    %c0_i32_0 = arith.constant 0 : i32
    %c0_i32_1 = arith.constant 0 : i32
    return %c0_i32, %c0_i32_0 : i32, i32
  }
  func.func @transform_11(%arg0: i32) -> (i32, i32) {
    %c0_i32 = arith.constant 0 : i32
    %c0_i32_0 = arith.constant 0 : i32
    %c0_i32_1 = arith.constant 0 : i32
    return %c0_i32, %c0_i32_0 : i32, i32
  }
  func.func @transform_12(%arg0: i32) -> (i32, i32) {
    %c0_i32 = arith.constant 0 : i32
    %c0_i32_0 = arith.constant 0 : i32
    %c0_i32_1 = arith.constant 0 : i32
    return %c0_i32, %c0_i32_0 : i32, i32
  }
  func.func @transform_13(%arg0: i32) -> (i32, i32) {
    %c0_i32 = arith.constant 0 : i32
    %c0_i32_0 = arith.constant 0 : i32
    %c0_i32_1 = arith.constant 0 : i32
    return %c0_i32, %c0_i32_0 : i32, i32
  }
  func.func @transform_14(%arg0: i32) -> (i32, i32, i32) {
    %c0_i32 = arith.constant 0 : i32
    %c0_i32_0 = arith.constant 0 : i32
    %c0_i32_1 = arith.constant 0 : i32
    return %arg0, %c0_i32, %c0_i32_0 : i32, i32, i32
  }
}

</mosaic_0001>

<bundles_post_ra>
// kernel: end_block_forward.1
= control target key start
LH: loop header
LB: loop body
LE: loop exit
PB: predicated region body
PF: predicated region fallthrough
CT: control target
= control target key end

     0   :  { %s5826_s0 = inlined_call_operand.vmem [shape: bf16[2,121,128], index: 0, kind: input, shape index: {}]   ;;  %s5827_s1 = inlined_call_operand.hbm [shape: bf16[128,128], index: 1, kind: input, shape index: {}]   ;;  %s5828_s2 = inlined_call_operand.hbm [shape: f32[1,128], index: 2, kind: input, shape index: {}]   ;;  %s5829_s3 = inlined_call_operand.hbm [shape: f32[1,128], index: 3, kind: input, shape index: {}]   ;;  %s5830_s4 = inlined_call_operand.hbm [shape: f32[9,128], index: 4, kind: input, shape index: {}]   ;;  %s5831_s5 = inlined_call_operand.hbm [shape: bf16[128,128], index: 5, kind: input, shape index: {}]   ;;  %s5832_s6 = inlined_call_operand.hbm [shape: f32[9,128], index: 6, kind: input, shape index: {}]   ;;  %s5833_s7 = inlined_call_operand.hbm [shape: bf16[128,128], index: 7, kind: input, shape index: {}]   ;;  %s5834_s8 = inlined_call_operand.hbm [shape: f32[1,128], index: 8, kind: input, shape index: {}]   ;;  %s5835_s9 = inlined_call_operand.hbm [shape: f32[1,128], index: 9, kind: input, shape index: {}]   ;;  %s5836_s10 = inlined_call_operand.hbm [shape: bf16[1152,128], index: 10, kind: input, shape index: {}]   ;;  %s5837_s11 = inlined_call_operand.hbm [shape: f32[1,128], index: 11, kind: input, shape index: {}]   ;;  %s5838_s12 = inlined_call_operand.hbm [shape: f32[97,128], index: 12, kind: input, shape index: {}]   ;;  %s5839_s13 = inlined_call_operand.hbm [shape: f32[33,128], index: 13, kind: input, shape index: {}]   ;;  %s5840_s14 = inlined_call_operand.vmem [shape: f32[2,33,128], index: 14, kind: output, shape index: {}]  }
   0x1   :  { %5856 = sst [smem:[#allocation35_spill]] %s5827_s1 }
   0x2   :  { %5857 = sst [smem:[#allocation36_spill]] %s5828_s2 }
   0x3   :  { %5858 = sst [smem:[#allocation37_spill]] %s5830_s4 }
   0x4   :  { %5859 = sst [smem:[#allocation38_spill]] %s5840_s14 }
   0x5   :  { %19 = vsyncpa [#allocation8], 0 }
   0x6   :  { %20 = vsyncpa [#allocation10], 0 }
   0x7   :  { %21 = vsyncpa [#allocation13], 0 }
   0x8   :  { %22 = vsyncpa [#allocation16], 0 }
   0x9   :  { %23 = vsyncpa [#allocation19], 0 }
   0xa   :  { %24 = vsyncpa [#allocation22], 0 }
   0xb   :  { %25 = vsyncpa [#allocation25], 0  ;;  %s4757_s29 = smov 0  }
   0xc LB: > { %5860 = sst [smem:[#allocation34_spill]] %s4660_s29  ;;  %s4662_s30 = smov [#allocation9]   ;;  %s4660_s29 = sphi %s4757_s29, %s31_s29  }
   0xd   : > { %s387_s15 = sshll.u32 %s4662_s30, 4  ;;  %s4763_s16 = sadd.s32 4294967295, %s4660_s29   ;;  %s4768_s15 = int_to_ptr.vmem [resolvable:$true] %s387_s15 }
   0xe   : > { %p3465_p0 = scmp.ge.s32.totalorder %s4660_s29, 1  ;;  %p361_p1 = scmp.lt.s32.totalorder %s4660_s29, 3 }
   0xf   : > { %p5842_p2 = scmp.eq.s32.totalorder %s4763_s16, 0  ;;  %s4663_s18 = smov [#allocation12]  }
  0x10   : > { %p4770_p3 = pnand %p3465_p0, %p361_p1  ;;  %s408_s19 = sshll.u32 %s4663_s18, 4  ;;  %s4776_s19 = int_to_ptr.vmem [resolvable:$true] %s408_s19 }
  0x11   : > { %s4664_s21 = smov [#allocation15]   ;;  %s4665_s23 = smov [#allocation18]  }
  0x12   : > { %s5861_s17 = scalar_select %p4770_p3, 1, 0 }
  0x13   : > { %p4035_p4 = pneg %p4770_p3  ;;  %s434_s22 = sshll.u32 %s4664_s21, 4  ;;  %s4784_s22 = int_to_ptr.vmem [resolvable:$true] %s434_s22 }
  0x14   : > { %s4786_s24 = sshll.u32 %s4665_s23, 4  ;;  %s5863_s2 = sld [smem:[#allocation36_spill]]  ;;  %s462_s24 = int_to_ptr.vmem [resolvable:$true] %s4786_s24 }
  0x15   : > { %p4780_p5 = pnand %p5842_p2, %p4035_p4 }
  0x17   : > { %p4796_p7 = pneg %p4780_p5 }
  0x1a   : > { %s4262_s27 = scalar_lea.hbm %s5863_s2, 16 }
  0x1b   : > { %p4263_p6 = scmp.ne.s32.totalorder %s5863_s2, %s4262_s27  ;;  %p4269_p10 = scmp.lt.u32.totalorder %s4262_s27, %s5863_s2 }
  0x1d   : > { %p4265_p8 = pnand %p4796_p7, %p4263_p6 }
  0x1f   : > { %p4266_p9 = pneg %p4265_p8 }
  0x21   : > { %p4271_p11 = pnand %p4269_p10, %p4266_p9 }
  0x23   : > { %4274 = shalt.err (!%p4271_p11)
}
  0x24   : > { %s4275_s25 = scalar_lea.vmem %s4768_s15, 16  ;;  %s4282_s26 = scalar_lea.vmem %s4768_s15, 32 }
  0x25   : > { %p4276_p12 = scmp.ne.s32.totalorder %s4768_s15, %s4275_s25  ;;  %p4283_p1 = scmp.lt.s32.totalorder %s4768_s15, %s4768_s15 }
  0x26   : > { %p4284_p4 = scmp.lt.s32.totalorder %s4282_s26, %s4275_s25 }
  0x27   : > { %p4278_p13 = pnand %p4276_p12, %p4796_p7 }
  0x28   : > { %p4285_p6 = por %p4284_p4, %p4283_p1 }
  0x29   : > { %p4279_p0 = pneg %p4278_p13 }
  0x2b   : > { %p4286_p8 = pnand %p4285_p6, %p4279_p0 }
  0x2d   : > { %4289 = shalt.err (!%p4286_p8)
}
  0x2e   : > { %4041 = dma.hbm_to_vmem [thread:$0]  (!%p4780_p5), %s5863_s2, 16, %s4768_s15, [#allocation10]  }
  0x2f   : > { %s5865_s4 = sld [smem:[#allocation37_spill]] }
  0x35   : > { %s4290_s23 = scalar_lea.hbm %s5865_s4, 256 }
  0x36   : > { %p4291_p9 = scmp.ne.s32.totalorder %s5865_s4, %s4290_s23  ;;  %p4297_p12 = scmp.lt.u32.totalorder %s4290_s23, %s5865_s4 }
  0x38   : > { %p4293_p10 = pnand %p4291_p9, %p4796_p7 }
  0x3a   : > { %p4294_p11 = pneg %p4293_p10 }
  0x3c   : > { %p4299_p13 = pnand %p4297_p12, %p4294_p11 }
  0x3e   : > { %4302 = shalt.err (!%p4299_p13)
}
  0x3f   : > { %s4303_s15 = scalar_lea.vmem %s4776_s19, 256  ;;  %p4311_p6 = scmp.lt.s32.totalorder %s4776_s19, %s4776_s19 }
  0x40   : > { %p4304_p0 = scmp.ne.s32.totalorder %s4776_s19, %s4303_s15  ;;  %p4312_p8 = scmp.lt.s32.totalorder %s4303_s15, %s4303_s15 }
  0x42   : > { %p4306_p1 = pnand %p4304_p0, %p4796_p7  ;;  %p4313_p9 = por %p4312_p8, %p4311_p6 }
  0x44   : > { %p4307_p4 = pneg %p4306_p1 }
  0x46   : > { %p4314_p10 = pnand %p4313_p9, %p4307_p4 }
  0x48   : > { %4317 = shalt.err (!%p4314_p10)
}
  0x49   : > { %s5844_s14 = smov 128   ;;  %s5850_s29 = smov 8  }
  0x4a   : > { %4047 = dma.hbm_to_vmem [thread:$0]  (!%p4780_p5), %s5865_s4, 256, %s4776_s19, [#allocation13], %s5844_s14, %s5844_s14, %s5850_s29  }
  0x4b   : > { %s4318_s23 = scalar_lea.hbm %s5832_s6, 256 }
  0x4c   : > { %p4319_p11 = scmp.ne.s32.totalorder %s5832_s6, %s4318_s23  ;;  %p4325_p0 = scmp.lt.u32.totalorder %s4318_s23, %s5832_s6 }
  0x4e   : > { %p4321_p12 = pnand %p4319_p11, %p4796_p7 }
  0x50   : > { %p4322_p13 = pneg %p4321_p12 }
  0x52   : > { %p4327_p1 = pnand %p4325_p0, %p4322_p13 }
  0x54   : > { %4330 = shalt.err (!%p4327_p1)
}
  0x55   : > { %s4331_s19 = scalar_lea.vmem %s4784_s22, 256  ;;  %p4339_p9 = scmp.lt.s32.totalorder %s4784_s22, %s4784_s22 }
  0x56   : > { %p4332_p4 = scmp.ne.s32.totalorder %s4784_s22, %s4331_s19  ;;  %p4340_p10 = scmp.lt.s32.totalorder %s4331_s19, %s4331_s19 }
  0x58   : > { %p4334_p6 = pnand %p4332_p4, %p4796_p7  ;;  %p4341_p11 = por %p4340_p10, %p4339_p9 }
  0x5a   : > { %p4335_p8 = pneg %p4334_p6 }
  0x5c   : > { %p4342_p12 = pnand %p4341_p11, %p4335_p8 }
  0x5e   : > { %4345 = shalt.err (!%p4342_p12)
}
  0x5f   : > { %4053 = dma.hbm_to_vmem [thread:$0]  (!%p4780_p5), %s5832_s6, 256, %s4784_s22, [#allocation16], %s5844_s14, %s5844_s14, %s5850_s29  }
  0x60   : > { %s4346_s21 = scalar_lea.hbm %s5834_s8, 16 }
  0x61   : > { %p4347_p13 = scmp.ne.s32.totalorder %s5834_s8, %s4346_s21  ;;  %p4353_p4 = scmp.lt.u32.totalorder %s4346_s21, %s5834_s8 }
  0x63   : > { %p4349_p0 = pnand %p4347_p13, %p4796_p7 }
  0x65   : > { %p4350_p1 = pneg %p4349_p0 }
  0x67   : > { %p4355_p6 = pnand %p4353_p4, %p4350_p1 }
  0x69   : > { %4358 = shalt.err (!%p4355_p6)
}
  0x6a   : > { %s4359_s19 = scalar_lea.vmem %s462_s24, 16  ;;  %s4366_s22 = scalar_lea.vmem %s462_s24, 32 }
  0x6b   : > { %p4360_p8 = scmp.ne.s32.totalorder %s462_s24, %s4359_s19  ;;  %p4367_p11 = scmp.lt.s32.totalorder %s462_s24, %s462_s24 }
  0x6c   : > { %p4368_p12 = scmp.lt.s32.totalorder %s4366_s22, %s4359_s19 }
  0x6d   : > { %p4362_p9 = pnand %p4360_p8, %p4796_p7 }
  0x6e   : > { %p4369_p2 = por %p4368_p12, %p4367_p11 }
  0x6f   : > { %p4363_p10 = pneg %p4362_p9 }
  0x71   : > { %p4370_p3 = pnand %p4369_p2, %p4363_p10 }
  0x73   : > { %4373 = shalt.err (!%p4370_p3)
}
  0x74   : > { %4059 = dma.hbm_to_vmem [thread:$0]  (!%p4780_p5), %s5834_s8, 16, %s462_s24, [#allocation19]  }
  0x75   : > { %s4668_s28 = smov [#allocation21]   ;;  %s4669_s21 = smov [#allocation24]  }
  0x76   : > { %s482_s30 = sshll.u32 %s4668_s28, 4  ;;  %s506_s23 = sshll.u32 %s4669_s21, 4  ;;  %s483_s30 = int_to_ptr.vmem [resolvable:$true] %s482_s30  ;;  %s507_s23 = int_to_ptr.vmem [resolvable:$true] %s506_s23 }
  0x77   : > { %s4374_s15 = scalar_lea.hbm %s5836_s10, 9216 }
  0x78   : > { %p4375_p2 = scmp.ne.s32.totalorder %s5836_s10, %s4374_s15  ;;  %p4381_p0 = scmp.lt.u32.totalorder %s4374_s15, %s5836_s10 }
  0x7a   : > { %p4377_p3 = pnand %p4375_p2, %p4796_p7 }
  0x7c   : > { %p4378_p13 = pneg %p4377_p3 }
  0x7e   : > { %p4383_p1 = pnand %p4381_p0, %p4378_p13 }
  0x80   : > { %4386 = shalt.err (!%p4383_p1)
}
  0x81   : > { %s4387_s24 = scalar_lea.vmem %s483_s30, 9216  ;;  %p4395_p9 = scmp.lt.s32.totalorder %s483_s30, %s483_s30 }
  0x82   : > { %p4388_p4 = scmp.ne.s32.totalorder %s483_s30, %s4387_s24  ;;  %p4396_p10 = scmp.lt.s32.totalorder %s4387_s24, %s4387_s24 }
  0x84   : > { %p4390_p6 = pnand %p4388_p4, %p4796_p7  ;;  %p4397_p11 = por %p4396_p10, %p4395_p9 }
  0x86   : > { %p4391_p8 = pneg %p4390_p6 }
  0x88   : > { %p4398_p12 = pnand %p4397_p11, %p4391_p8 }
  0x8a   : > { %4401 = shalt.err (!%p4398_p12)
}
  0x8b   : > { %s5846_s27 = smov 64   ;;  %s5848_s28 = smov 4  }
  0x8c   : > { %4065 = dma.hbm_to_vmem [thread:$0]  (!%p4780_p5), %s5836_s10, 9216, %s483_s30, [#allocation22], %s5846_s27, %s5846_s27, %s5848_s28  }
  0x8d   : > { %s4402_s15 = scalar_lea.hbm %s5838_s12, 1664 }
  0x8e   : > { %p4403_p2 = scmp.ne.s32.totalorder %s5838_s12, %s4402_s15  ;;  %p4409_p0 = scmp.lt.u32.totalorder %s4402_s15, %s5838_s12 }
  0x90   : > { %p4405_p3 = pnand %p4403_p2, %p4796_p7 }
  0x92   : > { %p4406_p13 = pneg %p4405_p3 }
  0x94   : > { %p4411_p1 = pnand %p4409_p0, %p4406_p13 }
  0x96   : > { %4414 = shalt.err (!%p4411_p1)
}
  0x97   : > { %s4415_s14 = scalar_lea.vmem %s507_s23, 1664  ;;  %p4423_p9 = scmp.lt.s32.totalorder %s507_s23, %s507_s23 }
  0x98   : > { %p4416_p4 = scmp.ne.s32.totalorder %s507_s23, %s4415_s14  ;;  %p4424_p10 = scmp.lt.s32.totalorder %s4415_s14, %s4415_s14 }
  0x9a   : > { %p4418_p6 = pnand %p4416_p4, %p4796_p7  ;;  %p4425_p11 = por %p4424_p10, %p4423_p9 }
  0x9c   : > { %p4419_p8 = pneg %p4418_p6 }
  0x9e   : > { %p4426_p12 = pnand %p4425_p11, %p4419_p8 }
  0xa0   : > { %4429 = shalt.err (!%p4426_p12)
}
  0xa1   : > { %s5866_s30 = smov 128   ;;  %s4672_s26 = smov [#allocation7]  }
  0xa2   : > { %4071 = dma.hbm_to_vmem [thread:$0]  (!%p4780_p5), %s5838_s12, 1664, %s507_s23, [#allocation25], %s5866_s30, %s5866_s30, %s5850_s29  }
  0xa3   : > { %s373_s15 = sshll.u32 %s4672_s26, 4  ;;  %s4673_s19 = smov [#allocation11]   ;;  %s374_s15 = int_to_ptr.vmem [resolvable:$true] %s373_s15 }
  0xa4   : > { %s398_s22 = sshll.u32 %s4673_s19, 4  ;;  %s5867_s1 = sld [smem:[#allocation35_spill]]  ;;  %s399_s22 = int_to_ptr.vmem [resolvable:$true] %s398_s22 }
  0xaa   : > { %s4430_s14 = scalar_lea.hbm %s5867_s1, 1024 }
  0xab   : > { %p4431_p2 = scmp.ne.s32.totalorder %s5867_s1, %s4430_s14  ;;  %p4437_p0 = scmp.lt.u32.totalorder %s4430_s14, %s5867_s1 }
  0xad   : > { %p4433_p3 = pnand %p4431_p2, %p4796_p7 }
  0xaf   : > { %p4434_p13 = pneg %p4433_p3 }
  0xb1   : > { %p4439_p1 = pnand %p4437_p0, %p4434_p13 }
  0xb3   : > { %4442 = shalt.err (!%p4439_p1)
}
  0xb4   : > { %s4443_s23 = scalar_lea.vmem %s374_s15, 1024  ;;  %p4451_p9 = scmp.lt.s32.totalorder %s374_s15, %s374_s15 }
  0xb5   : > { %p4444_p4 = scmp.ne.s32.totalorder %s374_s15, %s4443_s23  ;;  %p4452_p10 = scmp.lt.s32.totalorder %s4443_s23, %s4443_s23 }
  0xb7   : > { %p4446_p6 = pnand %p4444_p4, %p4796_p7  ;;  %p4453_p11 = por %p4452_p10, %p4451_p9 }
  0xb9   : > { %p4447_p8 = pneg %p4446_p6 }
  0xbb   : > { %p4454_p12 = pnand %p4453_p11, %p4447_p8 }
  0xbd   : > { %4457 = shalt.err (!%p4454_p12)
}
  0xbe   : > { %s5868_s27 = smov 4   ;;  %s5869_s28 = smov 64  }
  0xbf   : > { %4038 = dma.hbm_to_vmem [thread:$0]  (!%p4780_p5), %s5867_s1, 1024, %s374_s15, [#allocation8], %s5869_s28, %s5869_s28, %s5868_s27  }
  0xc0   : > { %s4458_s2 = scalar_lea.hbm %s5829_s3, 16 }
  0xc1   : > { %p4459_p2 = scmp.ne.s32.totalorder %s5829_s3, %s4458_s2  ;;  %p4465_p0 = scmp.lt.u32.totalorder %s4458_s2, %s5829_s3 }
  0xc3   : > { %p4461_p3 = pnand %p4459_p2, %p4796_p7 }
  0xc5   : > { %p4462_p13 = pneg %p4461_p3 }
  0xc7   : > { %p4467_p1 = pnand %p4465_p0, %p4462_p13 }
  0xc9   : > { %4470 = shalt.err (!%p4467_p1)
}
  0xca   : > { %s4471_s4 = scalar_lea.vmem %s399_s22, 16  ;;  %s4478_s15 = scalar_lea.vmem %s399_s22, 32 }
  0xcb   : > { %p4472_p4 = scmp.ne.s32.totalorder %s399_s22, %s4471_s4  ;;  %p4479_p9 = scmp.lt.s32.totalorder %s399_s22, %s399_s22 }
  0xcc   : > { %p4480_p10 = scmp.lt.s32.totalorder %s4478_s15, %s4471_s4 }
  0xcd   : > { %p4474_p6 = pnand %p4472_p4, %p4796_p7 }
  0xce   : > { %p4481_p11 = por %p4480_p10, %p4479_p9 }
  0xcf   : > { %p4475_p8 = pneg %p4474_p6 }
  0xd1   : > { %p4482_p12 = pnand %p4481_p11, %p4475_p8 }
  0xd3   : > { %4485 = shalt.err (!%p4482_p12)
}
  0xd4   : > { %4044 = dma.hbm_to_vmem [thread:$0]  (!%p4780_p5), %s5829_s3, 16, %s399_s22, [#allocation10]  }
  0xd5   : > { %s4674_s19 = smov [#allocation14]   ;;  %s4675_s24 = smov [#allocation17]  }
  0xd6   : > { %s421_s2 = sshll.u32 %s4674_s19, 4  ;;  %s447_s14 = sshll.u32 %s4675_s24, 4  ;;  %s422_s2 = int_to_ptr.vmem [resolvable:$true] %s421_s2  ;;  %s448_s14 = int_to_ptr.vmem [resolvable:$true] %s447_s14 }
  0xd7   : > { %s4486_s29 = scalar_lea.hbm %s5831_s5, 1024 }
  0xd8   : > { %p4487_p2 = scmp.ne.s32.totalorder %s5831_s5, %s4486_s29  ;;  %p4493_p0 = scmp.lt.u32.totalorder %s4486_s29, %s5831_s5 }
  0xda   : > { %p4489_p3 = pnand %p4487_p2, %p4796_p7 }
  0xdc   : > { %p4490_p13 = pneg %p4489_p3 }
  0xde   : > { %p4495_p1 = pnand %p4493_p0, %p4490_p13 }
  0xe0   : > { %4498 = shalt.err (!%p4495_p1)
}
  0xe1   : > { %s4499_s22 = scalar_lea.vmem %s422_s2, 1024  ;;  %p4507_p9 = scmp.lt.s32.totalorder %s422_s2, %s422_s2 }
  0xe2   : > { %p4500_p4 = scmp.ne.s32.totalorder %s422_s2, %s4499_s22  ;;  %p4508_p10 = scmp.lt.s32.totalorder %s4499_s22, %s4499_s22 }
  0xe4   : > { %p4502_p6 = pnand %p4500_p4, %p4796_p7  ;;  %p4509_p11 = por %p4508_p10, %p4507_p9 }
  0xe6   : > { %p4503_p8 = pneg %p4502_p6 }
  0xe8   : > { %p4510_p12 = pnand %p4509_p11, %p4503_p8 }
  0xea   : > { %4513 = shalt.err (!%p4510_p12)
}
  0xeb   : > { %4050 = dma.hbm_to_vmem [thread:$0]  (!%p4780_p5), %s5831_s5, 1024, %s422_s2, [#allocation13], %s5869_s28, %s5869_s28, %s5868_s27  }
  0xec   : > { %s4514_s24 = scalar_lea.hbm %s5833_s7, 1024 }
  0xed   : > { %p4515_p2 = scmp.ne.s32.totalorder %s5833_s7, %s4514_s24  ;;  %p4521_p0 = scmp.lt.u32.totalorder %s4514_s24, %s5833_s7 }
  0xef   : > { %p4517_p3 = pnand %p4515_p2, %p4796_p7 }
  0xf1   : > { %p4518_p13 = pneg %p4517_p3 }
  0xf3   : > { %p4523_p1 = pnand %p4521_p0, %p4518_p13 }
  0xf5   : > { %4526 = shalt.err (!%p4523_p1)
}
  0xf6   : > { %s4527_s25 = scalar_lea.vmem %s448_s14, 1024  ;;  %p4535_p9 = scmp.lt.s32.totalorder %s448_s14, %s448_s14 }
  0xf7   : > { %p4528_p4 = scmp.ne.s32.totalorder %s448_s14, %s4527_s25  ;;  %p4536_p10 = scmp.lt.s32.totalorder %s4527_s25, %s4527_s25 }
  0xf9   : > { %p4530_p6 = pnand %p4528_p4, %p4796_p7  ;;  %p4537_p11 = por %p4536_p10, %p4535_p9 }
  0xfb   : > { %p4531_p8 = pneg %p4530_p6 }
  0xfd   : > { %p4538_p12 = pnand %p4537_p11, %p4531_p8 }
  0xff   : > { %4541 = shalt.err (!%p4538_p12)
}
 0x100   : > { %4056 = dma.hbm_to_vmem [thread:$0]  (!%p4780_p5), %s5833_s7, 1024, %s448_s14, [#allocation16], %s5869_s28, %s5869_s28, %s5868_s27  }
 0x101   : > { %s4676_s1 = smov [#allocation20]   ;;  %s4677_s26 = smov [#allocation23]  }
 0x102   : > { %s472_s29 = sshll.u32 %s4676_s1, 4  ;;  %s496_s19 = sshll.u32 %s4677_s26, 4  ;;  %s473_s29 = int_to_ptr.vmem [resolvable:$true] %s472_s29  ;;  %s497_s19 = int_to_ptr.vmem [resolvable:$true] %s496_s19 }
 0x103   : > { %s4542_s23 = scalar_lea.hbm %s5835_s9, 16 }
 0x104   : > { %p4543_p2 = scmp.ne.s32.totalorder %s5835_s9, %s4542_s23  ;;  %p4549_p0 = scmp.lt.u32.totalorder %s4542_s23, %s5835_s9 }
 0x106   : > { %p4545_p3 = pnand %p4543_p2, %p4796_p7 }
 0x108   : > { %p4546_p13 = pneg %p4545_p3 }
 0x10a   : > { %p4551_p1 = pnand %p4549_p0, %p4546_p13 }
 0x10c   : > { %4554 = shalt.err (!%p4551_p1)
}
 0x10d   : > { %s4555_s27 = scalar_lea.vmem %s473_s29, 16  ;;  %s4562_s28 = scalar_lea.vmem %s473_s29, 32 }
 0x10e   : > { %p4556_p4 = scmp.ne.s32.totalorder %s473_s29, %s4555_s27  ;;  %p4563_p9 = scmp.lt.s32.totalorder %s473_s29, %s473_s29 }
 0x10f   : > { %p4564_p10 = scmp.lt.s32.totalorder %s4562_s28, %s4555_s27 }
 0x110   : > { %p4558_p6 = pnand %p4556_p4, %p4796_p7 }
 0x111   : > { %p4565_p11 = por %p4564_p10, %p4563_p9 }
 0x112   : > { %p4559_p8 = pneg %p4558_p6 }
 0x114   : > { %p4566_p12 = pnand %p4565_p11, %p4559_p8 }
 0x116   : > { %4569 = shalt.err (!%p4566_p12)
}
 0x117   : > { %4062 = dma.hbm_to_vmem [thread:$0]  (!%p4780_p5), %s5835_s9, 16, %s473_s29, [#allocation19]  }
 0x118   : > { %s4570_s24 = scalar_lea.hbm %s5837_s11, 16 }
 0x119   : > { %p4571_p2 = scmp.ne.s32.totalorder %s5837_s11, %s4570_s24  ;;  %p4577_p0 = scmp.lt.u32.totalorder %s4570_s24, %s5837_s11 }
 0x11b   : > { %p4573_p3 = pnand %p4571_p2, %p4796_p7 }
 0x11d   : > { %p4574_p13 = pneg %p4573_p3 }
 0x11f   : > { %p4579_p1 = pnand %p4577_p0, %p4574_p13 }
 0x121   : > { %4582 = shalt.err (!%p4579_p1)
}
 0x122   : > { %s4583_s25 = scalar_lea.vmem %s497_s19, 16  ;;  %s4590_s29 = scalar_lea.vmem %s497_s19, 32 }
 0x123   : > { %p4584_p4 = scmp.ne.s32.totalorder %s497_s19, %s4583_s25  ;;  %p4591_p9 = scmp.lt.s32.totalorder %s497_s19, %s497_s19 }
 0x124   : > { %p4592_p10 = scmp.lt.s32.totalorder %s4590_s29, %s4583_s25 }
 0x125   : > { %p4586_p6 = pnand %p4584_p4, %p4796_p7 }
 0x126   : > { %p4593_p11 = por %p4592_p10, %p4591_p9 }
 0x127   : > { %p4587_p8 = pneg %p4586_p6 }
 0x129   : > { %p4594_p12 = pnand %p4593_p11, %p4587_p8 }
 0x12b   : > { %4597 = shalt.err (!%p4594_p12)
}
 0x12c   : > { %4068 = dma.hbm_to_vmem [thread:$0]  (!%p4780_p5), %s5837_s11, 16, %s497_s19, [#allocation22]  }
 0x12d   : > { %s4678_s28 = smov [#allocation26]   ;;  %s4598_s26 = scalar_lea.hbm %s5839_s13, 640 }
 0x12e   : > { %s519_s14 = sshll.u32 %s4678_s28, 4  ;;  %p4599_p2 = scmp.ne.s32.totalorder %s5839_s13, %s4598_s26  ;;  %s520_s14 = int_to_ptr.vmem [resolvable:$true] %s519_s14 }
 0x12f   : > { %p4605_p0 = scmp.lt.u32.totalorder %s4598_s26, %s5839_s13 }
 0x130   : > { %p4601_p3 = pnand %p4599_p2, %p4796_p7 }
 0x132   : > { %p4602_p13 = pneg %p4601_p3 }
 0x134   : > { %p4607_p1 = pnand %p4605_p0, %p4602_p13 }
 0x136   : > { %4610 = shalt.err (!%p4607_p1)
}
 0x137   : > { %s4611_s19 = scalar_lea.vmem %s520_s14, 640  ;;  %p4619_p9 = scmp.lt.s32.totalorder %s520_s14, %s520_s14 }
 0x138   : > { %p4612_p4 = scmp.ne.s32.totalorder %s520_s14, %s4611_s19  ;;  %p4620_p10 = scmp.lt.s32.totalorder %s4611_s19, %s4611_s19 }
 0x13a   : > { %p4614_p6 = pnand %p4612_p4, %p4796_p7  ;;  %p4621_p11 = por %p4620_p10, %p4619_p9 }
 0x13c   : > { %p4615_p8 = pneg %p4614_p6 }
 0x13e   : > { %p4622_p12 = pnand %p4621_p11, %p4615_p8 }
 0x140   : > { %4625 = shalt.err (!%p4622_p12)
}
 0x141   : > { %s5870_s15 = smov 8   ;;  %p5871_p2 = scmp.ne.s32.totalorder %s5861_s17, 0 }
 0x142   : > { %4074 = dma.hbm_to_vmem [thread:$0]  (!%p4780_p5), %s5839_s13, 640, %s520_s14, [#allocation25], %s5866_s30, %s5866_s30, %s5870_s15  }
 0x143   : > { %543 = sbr.rel (%p5871_p2) target bundleno = 1939 (0x793), region = 76  ;;  %p5872_p7 = scmp.eq.s32.totalorder (!%p5871_p2), %s4763_s16, 0 }
 0x14a   : > { %4631 = dma.done.wait (%p5872_p7), [#allocation8], 1024   ;;  %p5873_p3 = pmov %p5872_p7 }
 0x14c   : > { %4633 = vsyncadd (%p5873_p3), [#allocation8], 4294966272  ;;  %p5874_p13 = pmov %p5873_p3 }
 0x14d   : > { %p5875_p0 = pmov %p5873_p3 }
 0x14e   : > { %4635 = dma.done.wait (%p5874_p13), [#allocation10], 32  }
 0x14f   : > { %4637 = vsyncadd (%p5875_p0), [#allocation10], 4294967264  ;;  %p5876_p1 = pmov %p5875_p0 }
 0x150   : > { %p5877_p5 = pmov %p5875_p0 }
 0x151   : > { %4639 = dma.done.wait (%p5876_p1), [#allocation13], 1280  }
 0x152   : > { %4641 = vsyncadd (%p5877_p5), [#allocation13], 4294966016  ;;  %p5878_p4 = pmov %p5875_p0 }
 0x153   : > { %p5879_p6 = pmov %p5875_p0 }
 0x154   : > { %4643 = dma.done.wait (%p5878_p4), [#allocation16], 1280  }
 0x155   : > { %4645 = vsyncadd (%p5879_p6), [#allocation16], 4294966016  ;;  %p5880_p8 = pmov %p5875_p0 }
 0x156   : > { %p5881_p9 = pmov %p5875_p0 }
 0x157   : > { %4647 = dma.done.wait (%p5880_p8), [#allocation19], 32  }
 0x158   : > { %4649 = vsyncadd (%p5881_p9), [#allocation19], 4294967264  ;;  %p5882_p10 = pmov %p5875_p0 }
 0x159   : > { %p5883_p11 = pmov %p5875_p0 }
 0x15a   : > { %4651 = dma.done.wait (%p5882_p10), [#allocation22], 9232  }
 0x15b   : > { %4653 = vsyncadd (%p5883_p11), [#allocation22], 4294958064  ;;  %p5884_p12 = pmov %p5875_p0 }
 0x15c   : > { %p5885_p2 = pmov %p5875_p0 }
 0x15d   : > { %4655 = dma.done.wait (%p5884_p12), [#allocation25], 2304  }
 0x15e   : > { %4657 = vsyncadd (%p5885_p2), [#allocation25], 4294964992  ;;  %v4679_v0 = vmov 0.0   ;;  %vm4680_vm0 = vmmov 0   ;;  %p637_p7 = scmp.lt.s32.totalorder %s4763_s16, 1  ;;  %v4129_v1 = vld [vmem:[#allocation7] sm:$0xff]   ;;  %v980_v40 = vlaneseq }
 0x15f   : > { %3802 = vmatprep.subr.bf16.mxu0 %v4679_v0  ;;  %961 = vst [vmem:[#allocation2] sm:$0xff] %v4679_v0  ;;  %962 = vst [vmem:[#allocation2 + $0x8] sm:$0xf] %v4679_v0  ;;  %3818 = vmatprep.mubr.msk.bf16.mxu0 %vm4680_vm0, %v4679_v0  ;;  %v4130_v2 = vld [vmem:[#allocation7 + $0x8] sm:$0xff]   ;;  %v4131_v3 = vld [vmem:[#allocation7 + $0x10] sm:$0xff]   ;;  %vm740_vm1 = vcmask 1045504  }
 0x160   : > { %963 = vst [vmem:[#allocation2 + $0x6d] sm:$0xff] %v4679_v0  ;;  %964 = vst [vmem:[#allocation2 + $0x75] sm:$0xf] %v4679_v0  ;;  %3846 = vmatprep.subr.bf16.mxu1 %v4679_v0  ;;  %3862 = vmatprep.mubr.msk.bf16.mxu1 %vm4680_vm0, %v4679_v0  ;;  %s5894_s16 = smov (!%p637_p7, %s4763_s16), 1  ;;  %v4132_v4 = vld [vmem:[#allocation7 + $0x18] sm:$0xff]   ;;  %v4133_v10 = vld [vmem:[#allocation7 + $0x20] sm:$0xff]  }
 0x161   : > { %1565 = vst [vmem:[#allocation3] sm:$0xff] %v4679_v0  ;;  %1566 = vst [vmem:[#allocation3 + $0x8] sm:$0xf] %v4679_v0  ;;  %3803 = vmatpush3.bf16.msra.mxu0 %v4129_v1  ;;  %s3609_s17 = sshll.u32 %s5894_s16, 6  ;;  %v4134_v16 = vld [vmem:[#allocation7 + $0x28] sm:$0xff]   ;;  %v4135_v21 = vld [vmem:[#allocation7 + $0x30] sm:$0xff]  }
 0x162   : > { %1567 = vst [vmem:[#allocation3 + $0x6d] sm:$0xff] %v4679_v0  ;;  %1568 = vst [vmem:[#allocation3 + $0x75] sm:$0xf] %v4679_v0  ;;  %3804 = vmatprep.subr.bf16.mxu0 %v4679_v0  ;;  %s641_s30 = scalar_lea.vmem %s5826_s0, %s3609_s17  ;;  %v4136_v22 = vld [vmem:[#allocation7 + $0x38] sm:$0xff]   ;;  %v4146_v31 = vld [vmem:[#allocation14 + $0x10] sm:$0xff]   ;;  %v5166_v41 = vshrl.u32 %v980_v40, 7 }
 0x163   : > { %2172 = vst [vmem:[#allocation6] sm:$0xff] %v4679_v0  ;;  %2173 = vst [vmem:[#allocation6 + $0x8] sm:$0xff] %v4679_v0  ;;  %v4137_v5 = vld [vmem:[%s641_s30 + $0x4] sm:$0xfc]   ;;  %v4138_v6 = vld [vmem:[%s641_s30 + $0xc] sm:$0xff]   ;;  %s3978_s28 = smul.u32 40, %s5894_s16 }
 0x164   : > { %2174 = vst [vmem:[#allocation6 + $0x10] sm:$0xff] %v4679_v0  ;;  %2175 = vst [vmem:[#allocation6 + $0x18] sm:$0xff] %v4679_v0  ;;  %v4139_v7 = vld [vmem:[%s641_s30 + $0x14] sm:$0xff]   ;;  %v4140_v8 = vld [vmem:[%s641_s30 + $0x1c] sm:$0xff]   ;;  %v741_v12 = vrot.slane %v4137_v5, 2  ;;  %v742_v13 = vrot.slane %v4138_v6, 2 }
 0x165   : > { %2176 = vst [vmem:[#allocation6 + $0x20] sm:$0xff] %v4679_v0  ;;  %2177 = vst [vmem:[#allocation6 + $0x28] sm:$0xff] %v4679_v0  ;;  %3805 = vmatpush3.bf16.msra.mxu0 %v4130_v2  ;;  %v4141_v9 = vld [vmem:[%s641_s30 + $0x24] sm:$0xff]   ;;  %v4142_v11 = vld [vmem:[%s641_s30 + $0x2c] sm:$0xff]   ;;  %v744_v14 = vrot.slane %v4139_v7, 2  ;;  %v746_v17 = vrot.slane %v4140_v8, 2 }
 0x166   : > { %2178 = vst [vmem:[#allocation6 + $0x30] sm:$0x1] %v4679_v0  ;;  %3806 = vmatprep.subr.bf16.mxu0 %v4679_v0  ;;  %v4143_v15 = vld [vmem:[%s641_s30 + $0x34] ss:$0 sps:$4 sm:$0x77]   ;;  %v748_v18 = vrot.slane %v4141_v9, 2  ;;  %v743_v23 = vsel %vm740_vm1, %v741_v12, %v742_v13 }
 0x167   : > { %v750_v19 = vrot.slane %v4142_v11, 2  ;;  %v752_v20 = vrot.slane %v4143_v15, 2  ;;  %v745_v24 = vsel %vm740_vm1, %v742_v13, %v744_v14  ;;  %v747_v25 = vsel %vm740_vm1, %v744_v14, %v746_v17  ;;  %v4144_v29 = vld [vmem:[#allocation14] sm:$0xff]   ;;  %v4145_v30 = vld [vmem:[#allocation14 + $0x8] sm:$0xff]   ;;  %v4147_v32 = vld [vmem:[#allocation14 + $0x18] sm:$0xff]   ;;  %s5891_s1 = sld [smem:[#allocation38_spill]] }
 0x168   : > { %v749_v26 = vsel %vm740_vm1, %v746_v17, %v748_v18  ;;  %3847 = vmatpush3.bf16.msra.mxu1 %v4144_v29  ;;  %v4148_v33 = vld [vmem:[#allocation14 + $0x20] sm:$0xff]   ;;  %v4149_v34 = vld [vmem:[#allocation14 + $0x28] sm:$0xff]   ;;  %v4150_v35 = vld [vmem:[#allocation14 + $0x30] sm:$0xff]   ;;  %v982_v43 = vsub.s32 0, %v5166_v41  ;;  %v1012_v44 = vsub.s32 1, %v5166_v41  ;;  %v1055_v54 = vsub.s32 2, %v5166_v41 }
 0x169   : > { %3807 = vmatpush3.bf16.msra.mxu0 %v4131_v3  ;;  %v751_v27 = vsel %vm740_vm1, %v748_v18, %v750_v19  ;;  %v753_v28 = vsel %vm740_vm1, %v750_v19, %v752_v20  ;;  %3848 = vmatprep.subr.bf16.mxu1 %v4679_v0  ;;  %v4151_v36 = vld [vmem:[#allocation14 + $0x38] sm:$0xff]   ;;  %v4152_v37 = vld [vmem:[#allocation17] sm:$0xff]   ;;  %v4154_v39 = vld [vmem:[#allocation17 + $0x10] sm:$0xff]   ;;  %v5854_v5 = vsub.s32 3, %v5166_v41  ;;  %v5855_v12 = vsub.s32 4, %v5166_v41 }
 0x16a   : > { %3808 = vmatprep.subr.bf16.mxu0 %v4679_v0  ;;  %v4153_v38 = vld [vmem:[#allocation17 + $0x8] sm:$0xff]   ;;  %v5168_v42 = vld [vmem:[#allocation9] ss:$0 sm:$0xff]  ;;  %v5172_v45 = vld [vmem:[#allocation11] ss:$0 sm:$0xff]  ;;  %v5853_v18 = vsub.s32 5, %v5166_v41 }
 0x16b   : > { %v5175_v49 = vld [vmem:[#allocation12] sm:$0xff]  ;;  %v997_v58 = vld [vmem:[#allocation2 + $0x1] sm:$0xff]  ;;  %v5209_v8 = vld [vmem:[#allocation24 + $0x10] sm:$0xff] }
 0x16c   : > { %3849 = vmatpush3.bf16.msra.mxu1 %v4145_v30  ;;  %v5177_v50 = vld [vmem:[#allocation24] sm:$0xff]  ;;  %v5182_v52 = vrot.slane %v5175_v49, %v982_v43  ;;  %v5187_v53 = vrot.slane %v5175_v49, %v1012_v44  ;;  %v5192_v59 = vld [vmem:[#allocation24 + $0x8] sm:$0xff]  ;;  %v5201_v1 = vrot.slane %v5175_v49, %v1055_v54  ;;  %v5220_v17 = vrot.slane %v5175_v49, %v5854_v5 }
 0x16d   : > { %3809 = vmatpush3.bf16.msra.mxu0 %v4132_v4  ;;  %3850 = vmatprep.subr.bf16.mxu1 %v4679_v0  ;;  %v1040_v3 = vld [vmem:[#allocation2 + $0x2] sm:$0xff]  ;;  %s646_s26 = scalar_lea.vmem %s5891_s1, %s3978_s28 }
 0x16e   : > { %3810 = vmatprep.subr.bf16.mxu0 %v4679_v0  ;;  %v984_v62 = vmul.f32 0.0, %v5182_v52  ;;  %v1014_v63 = vmul.f32 %v5187_v53, %v997_v58  ;;  %v1057_v11 = vmul.f32 %v5201_v1, %v1040_v3 }
 0x170   : > { %3851 = vmatpush3.bf16.msra.mxu1 %v4146_v31 }
 0x171   : > { %3811 = vmatpush3.bf16.msra.mxu0 %v4133_v10  ;;  %3852 = vmatprep.subr.bf16.mxu1 %v4679_v0  ;;  %v1027_v10 = vadd.f32 %v1014_v63, %v984_v62 }
 0x172   : > { %3812 = vmatprep.subr.bf16.mxu0 %v4679_v0 }
 0x174   : > { %3853 = vmatpush3.bf16.msra.mxu1 %v4147_v32 }
 0x175   : > { %3813 = vmatpush3.bf16.msra.mxu0 %v4134_v16  ;;  %3854 = vmatprep.subr.bf16.mxu1 %v4679_v0  ;;  %v5215_v16 = vld [vmem:[#allocation24 + $0x18] sm:$0xff] }
 0x176   : > { %3814 = vmatprep.subr.bf16.mxu0 %v4679_v0 }
 0x178   : > { %3855 = vmatpush3.bf16.msra.mxu1 %v4148_v33 }
 0x179   : > { %3815 = vmatpush3.bf16.msra.mxu0 %v4135_v21  ;;  %3856 = vmatprep.subr.bf16.mxu1 %v4679_v0  ;;  %v5852_v21 = vsub.s32 6, %v5166_v41 }
 0x17a   : > { %3816 = vmatprep.subr.bf16.mxu0 %v4679_v0 }
 0x17c   : > { %3857 = vmatpush3.bf16.msra.mxu1 %v4149_v34  ;;  %v5238_v34 = vrot.slane %v5175_v49, %v5853_v18 }
 0x17d   : > { %3817 = vmatpush3.bf16.msra.mxu0 %v4136_v22  ;;  %3858 = vmatprep.subr.bf16.mxu1 %v4679_v0 }
 0x17e   : > { %3890 = vmatprep.subr.bf16.mxu0 %v4679_v0 }
 0x180   : > { %3819 = vmatmul.mubr.bf16.vlgmr.msra.gmra.mrb[0].mxu0 %v743_v23  ;;  %3859 = vmatpush3.bf16.msra.mxu1 %v4150_v35  ;;  %v5851_v35 = vsub.s32 7, %v5166_v41 }
 0x181   : > { %3822 = vmatprep.mubr.msk.bf16.mxu0 %vm4680_vm0, %v4679_v0  ;;  %3860 = vmatprep.subr.bf16.mxu1 %v4679_v0 }
 0x182   : > { %3891 = vmatpush3.bf16.msra.mxu0 %v4152_v37 }
 0x183   : > { %3892 = vmatprep.subr.bf16.mxu0 %v4679_v0 }
 0x184   : > { %3861 = vmatpush3.bf16.msra.mxu1 %v4151_v36 }
 0x186   : > { %3893 = vmatpush3.bf16.msra.mxu0 %v4153_v38 }
 0x187   : > { %3894 = vmatprep.subr.bf16.mxu0 %v4679_v0 }
 0x188   : > { %3823 = vmatmul.mubr.bf16.gmra.mrb[4].mxu0 %v745_v24 }
 0x189   : > { %3826 = vmatprep.mubr.msk.bf16.mxu0 %vm4680_vm0, %v4679_v0 }
 0x18a   : > { %3895 = vmatpush3.bf16.msra.mxu0 %v4154_v39 }
 0x18b   : > { %3896 = vmatprep.subr.bf16.mxu0 %v4679_v0 }
 0x190   : > { %3827 = vmatmul.mubr.bf16.gmra.mrb[8].mxu0 %v747_v25  ;;  %v1070_v25 = vadd.f32 %v1057_v11, %v1027_v10 }
 0x191   : > { %3830 = vmatprep.mubr.msk.bf16.mxu0 %vm4680_vm0, %v4679_v0 }
 0x198   : > { %3831 = vmatmul.mubr.bf16.gmra.mrb[12].mxu0 %v749_v26  ;;  %v5229_v26 = vrot.slane %v5175_v49, %v5855_v12 }
 0x199   : > { %3834 = vmatprep.mubr.msk.bf16.mxu0 %vm4680_vm0, %v4679_v0 }
 0x1a0   : > { %3835 = vmatmul.mubr.bf16.gmra.mrb[16].mxu0 %v751_v27 }
 0x1a1   : > { %3838 = vmatprep.mubr.msk.bf16.mxu0 %vm4680_vm0, %v4679_v0 }
 0x1a8   : > { %3839 = vmatmul.mubr.bf16.gmra.mrb[20].mxu0 %v753_v28 }
 0x1a9   : > { %3842 = vmatprep.mubr.msk.bf16.mxu0 %vm4680_vm0, %v4679_v0 }
 0x1b0   : > { %3843 = vmatmul.mubr.bf16.gmra.mrb[24].mxu0 %v752_v20 }
 0x1b1   : > { %3906 = vmatprep.mubr.msk.bf16.mxu0 %vm4680_vm0, %v4679_v0 }
 0x253   : > { %v843_v46 = vpop.f32.mrb[0].mxu0 }
 0x254   : > { %v903_v47 = vmul.f32 %v5168_v42, %v843_v46  ;;  %v3820_v48 = vpop.f32.mrb[1].mxu0 }
 0x255   : > { %v846_v51 = vpop.f32.mrb[2].mxu0 }
 0x256   : > { %v922_v55 = vadd.f32 %v5172_v45, %v903_v47  ;;  %v904_v56 = vmul.f32 %v5168_v42, %v846_v51  ;;  %v3821_v57 = vpop.f32.mrb[3].mxu0  ;;  %v5246_v47 = vrot.slane %v5175_v49, %v5852_v21  ;;  %v5248_v51 = vld [vmem:[#allocation24 + $0x20] sm:$0xff] }
 0x258   : > { %v935_v60 = vmul.f32 %v922_v55, %v5177_v50  ;;  %v923_v61 = vadd.f32 %v5172_v45, %v904_v56 }
 0x25a   : > { %948 = vst [vmem:[#allocation2 + $0xc] sm:$0xff] %v935_v60  ;;  %v5204_v2 = vmul.f32 %v923_v61, %v5192_v59  ;;  %v1143_v57 = vmul.f32 %v5229_v26, %v935_v60  ;;  %v5262_v60 = vrot.slane %v5175_v49, %v5851_v35 }
 0x25b   : > { %v851_v4 = vpop.f32.mrb[4].mxu0 }
 0x25c   : > { %949 = vst [vmem:[#allocation2 + $0x14] sm:$0xff] %v5204_v2  ;;  %v905_v6 = vmul.f32 %v5168_v42, %v851_v4  ;;  %v3824_v7 = vpop.f32.mrb[5].mxu0 }
 0x25d   : > { %v854_v9 = vpop.f32.mrb[6].mxu0 }
 0x25e   : > { %v924_v13 = vadd.f32 %v5172_v45, %v905_v6  ;;  %v906_v14 = vmul.f32 %v5168_v42, %v854_v9  ;;  %v3825_v15 = vpop.f32.mrb[7].mxu0  ;;  %v5256_v9 = vld [vmem:[#allocation24 + $0x28] sm:$0xff] }
 0x260   : > { %v937_v19 = vmul.f32 %v924_v13, %v5209_v8  ;;  %v925_v20 = vadd.f32 %v5172_v45, %v906_v14 }
 0x261   : > { %v968_v22 = vld [vmem:[#allocation2 + $0x8] sm:$0xff] }
 0x262   : > { %v998_v23 = vld [vmem:[#allocation2 + $0x9] sm:$0xff]  ;;  %950 = vst [vmem:[#allocation2 + $0x1c] sm:$0xff] %v937_v19  ;;  %v938_v27 = vmul.f32 %v925_v20, %v5215_v16  ;;  %v985_v28 = vmul.f32 %v5182_v52, %v968_v22  ;;  %v5268_v20 = vld [vmem:[#allocation12 + $0x8] ss:$0 sm:$0xff]  ;;  %v1145_v49 = vmul.f32 %v5229_v26, %v937_v19 }
 0x263   : > { %v1041_v24 = vld [vmem:[#allocation2 + $0xa] sm:$0xff]  ;;  %v1015_v29 = vmul.f32 %v5187_v53, %v998_v23  ;;  %v859_v31 = vpop.f32.mrb[8].mxu0  ;;  %v1084_v32 = vld [vmem:[#allocation2 + $0x13] sm:$0xff]  ;;  %v1144_v23 = vmul.f32 %v5229_v26, %v5204_v2 }
 0x264   : > { %v1083_v30 = vld [vmem:[#allocation2 + $0xb] sm:$0xff]  ;;  %951 = vst [vmem:[#allocation2 + $0x24] sm:$0xff] %v938_v27  ;;  %v907_v37 = vmul.f32 %v5168_v42, %v859_v31  ;;  %v3828_v38 = vpop.f32.mrb[9].mxu0  ;;  %v1058_v40 = vmul.f32 %v5201_v1, %v1041_v24  ;;  %v1101_v6 = vmul.f32 %v5220_v17, %v1084_v32  ;;  %v1146_v31 = vmul.f32 %v5229_v26, %v938_v27 }
 0x265   : > { %v1100_v33 = vmul.f32 %v5220_v17, %v1083_v30  ;;  %v969_v36 = vld [vmem:[#allocation2 + $0x10] sm:$0xff]  ;;  %v1028_v39 = vadd.f32 %v1015_v29, %v985_v28  ;;  %v862_v55 = vpop.f32.mrb[10].mxu0 }
 0x266   : > { %v1169_v46 = vld [vmem:[#allocation2 + $0xd] sm:$0xff]  ;;  %v986_v58 = vmul.f32 %v5182_v52, %v969_v36  ;;  %v926_v62 = vadd.f32 %v5172_v45, %v907_v37  ;;  %v908_v63 = vmul.f32 %v5168_v42, %v862_v55  ;;  %v3829_v3 = vpop.f32.mrb[11].mxu0 }
 0x267   : > { %v999_v48 = vld [vmem:[#allocation2 + $0x11] sm:$0xff]  ;;  %v1113_v56 = vadd.f32 %v1100_v33, %v1070_v25  ;;  %v1071_v4 = vadd.f32 %v1058_v40, %v1028_v39  ;;  %v1186_v11 = vmul.f32 %v5238_v34, %v1169_v46 }
 0x268   : > { %v1016_v61 = vmul.f32 %v5187_v53, %v999_v48  ;;  %v1042_v7 = vld [vmem:[#allocation2 + $0x12] sm:$0xff]  ;;  %v5265_v14 = vmul.f32 %v926_v62, %v5248_v51  ;;  %v927_v15 = vadd.f32 %v5172_v45, %v908_v63 }
 0x269   : > { %v1156_v10 = vadd.f32 %v1143_v57, %v1113_v56  ;;  %v1114_v22 = vadd.f32 %v1101_v6, %v1071_v4  ;;  %v1170_v24 = vld [vmem:[#allocation2 + $0x15] sm:$0xff]  ;;  %v1059_v30 = vmul.f32 %v5201_v1, %v1042_v7  ;;  %v5287_v7 = vld [vmem:[#allocation24 + $0x30] sm:$0xff] }
 0x26a   : > { %v1029_v13 = vadd.f32 %v1016_v61, %v986_v58  ;;  %v1212_v28 = vld [vmem:[#allocation2 + $0x16] sm:$0xff]  ;;  %952 = vst [vmem:[#allocation2 + $0x2c] sm:$0xff] %v5265_v14  ;;  %v5277_v32 = vmul.f32 %v927_v15, %v5256_v9  ;;  %v1187_v36 = vmul.f32 %v5238_v34, %v1170_v24 }
 0x26b   : > { %v1199_v25 = vadd.f32 %v1186_v11, %v1156_v10  ;;  %v1255_v29 = vld [vmem:[#allocation2 + $0x17] sm:$0xff]  ;;  %v1157_v33 = vadd.f32 %v1144_v23, %v1114_v22  ;;  %v1229_v2 = vmul.f32 %v5246_v47, %v1212_v28  ;;  %v867_v40 = vpop.f32.mrb[12].mxu0  ;;  %v1256_v48 = vld [vmem:[#allocation2 + $0x1f] sm:$0xff] }
 0x26c   : > { %v1298_v37 = vld [vmem:[#allocation2 + $0x18] sm:$0xff]  ;;  %v1272_v19 = vmul.f32 %v5262_v60, %v1255_v29  ;;  %v1072_v56 = vadd.f32 %v1059_v30, %v1029_v13  ;;  %953 = vst [vmem:[#allocation2 + $0x34] sm:$0xff] %v5277_v32  ;;  %v909_v57 = vmul.f32 %v5168_v42, %v867_v40  ;;  %v3832_v58 = vpop.f32.mrb[13].mxu0  ;;  %v1299_v3 = vld [vmem:[#allocation2 + $0x20] sm:$0xff]  ;;  %v1273_v11 = vmul.f32 %v5262_v60, %v1256_v48 }
 0x26d   : > { %v1000_v38 = vld [vmem:[#allocation2 + $0x19] sm:$0xff]  ;;  %v987_v27 = vmul.f32 %v1298_v37, %v5182_v52  ;;  %v1200_v61 = vadd.f32 %v1187_v36, %v1157_v33  ;;  %v1242_v63 = vadd.f32 %v1229_v2, %v1199_v25  ;;  %v1086_v6 = vld [vmem:[#allocation2 + $0x23] sm:$0xff]  ;;  %v870_v10 = vpop.f32.mrb[14].mxu0  ;;  %v1315_v15 = vmul.f32 %v5268_v20, %v1298_v37 }
 0x26e   : > { %v1043_v39 = vld [vmem:[#allocation2 + $0x1a] sm:$0xff]  ;;  %v1017_v55 = vmul.f32 %v5187_v53, %v1000_v38  ;;  %v928_v24 = vadd.f32 %v5172_v45, %v909_v57  ;;  %v910_v28 = vmul.f32 %v5168_v42, %v870_v10  ;;  %v3833_v29 = vpop.f32.mrb[15].mxu0  ;;  %v5294_v33 = vld [vmem:[#allocation24 + $0x38] sm:$0xff]  ;;  %v1316_v36 = vmul.f32 %v5268_v20, %v1299_v3 }
 0x26f   : > { %v1213_v46 = vld [vmem:[#allocation2 + $0x1e] sm:$0xff]  ;;  %v1060_v22 = vmul.f32 %v5201_v1, %v1043_v39  ;;  %v1285_v30 = vadd.f32 %v1272_v19, %v1242_v63  ;;  %v1103_v37 = vmul.f32 %v5220_v17, %v1086_v6  ;;  %v988_v63 = vmul.f32 %v1299_v3, %v5182_v52 }
 0x270   : > { %v1230_v62 = vmul.f32 %v5246_v47, %v1213_v46  ;;  %v1085_v4 = vld [vmem:[#allocation2 + $0x1b] sm:$0xff]  ;;  %v1030_v13 = vadd.f32 %v1017_v55, %v987_v27  ;;  %v5300_v39 = vmul.f32 %v928_v24, %v5287_v7  ;;  %v929_v46 = vadd.f32 %v5172_v45, %v910_v28 }
 0x271   : > { %v1171_v23 = vld [vmem:[#allocation2 + $0x1d] sm:$0xff]  ;;  %v1102_v38 = vmul.f32 %v5220_v17, %v1085_v4  ;;  %v1328_v55 = vadd.f32 %v1315_v15, %v1285_v30  ;;  %v1172_v58 = vld [vmem:[#allocation2 + $0x25] sm:$0xff] }
 0x272   : > { %v1243_v25 = vadd.f32 %v1230_v62, %v1200_v61  ;;  %v1073_v2 = vadd.f32 %v1060_v22, %v1030_v13  ;;  %v1001_v40 = vld [vmem:[#allocation2 + $0x21] sm:$0xff]  ;;  %v1188_v27 = vmul.f32 %v5238_v34, %v1171_v23  ;;  %954 = vst [vmem:[#allocation2 + $0x3c] sm:$0xff] %v5300_v39  ;;  %v5307_v4 = vmul.f32 %v929_v46, %v5294_v33  ;;  %v1002_v29 = vld [vmem:[#allocation2 + $0x29] sm:$0xff] }
 0x273   : > { %v1115_v19 = vadd.f32 %v1102_v38, %v1072_v56  ;;  %v1214_v61 = vld [vmem:[#allocation2 + $0x26] sm:$0xff]  ;;  %v1189_v10 = vmul.f32 %v5238_v34, %v1172_v58  ;;  %v875_v22 = vpop.f32.mrb[16].mxu0  ;;  %v1215_v23 = vld [vmem:[#allocation2 + $0x2e] sm:$0xff] }
 0x274   : > { %v1286_v48 = vadd.f32 %v1273_v11, %v1243_v25  ;;  %v1116_v57 = vadd.f32 %v1103_v37, %v1073_v2  ;;  %v1257_v62 = vld [vmem:[#allocation2 + $0x27] sm:$0xff]  ;;  %v1018_v11 = vmul.f32 %v5187_v53, %v1001_v40  ;;  %v1231_v24 = vmul.f32 %v5246_v47, %v1214_v61  ;;  %v1258_v28 = vld [vmem:[#allocation2 + $0x2f] sm:$0xff]  ;;  %955 = vst [vmem:[#allocation2 + $0x44] sm:$0xff] %v5307_v4  ;;  %v3836_v30 = vpop.f32.mrb[17].mxu0 }
 0x275   : > { %v1300_v13 = vld [vmem:[#allocation2 + $0x28] sm:$0xff]  ;;  %v1158_v15 = vadd.f32 %v1145_v49, %v1115_v19  ;;  %v1274_v3 = vmul.f32 %v5262_v60, %v1257_v62  ;;  %v911_v25 = vmul.f32 %v5168_v42, %v875_v22  ;;  %v1232_v2 = vmul.f32 %v5246_v47, %v1215_v23  ;;  %v878_v40 = vpop.f32.mrb[18].mxu0 }
 0x276   : > { %v1329_v6 = vadd.f32 %v1316_v36, %v1286_v48  ;;  %v1159_v56 = vadd.f32 %v1146_v31, %v1116_v57  ;;  %v1317_v38 = vmul.f32 %v5268_v20, %v1300_v13  ;;  %v1044_v37 = vld [vmem:[#allocation2 + $0x22] sm:$0xff]  ;;  %v1045_v49 = vld [vmem:[#allocation2 + $0x2a] sm:$0xff]  ;;  %v5317_v31 = vld [vmem:[#allocation24 + $0x40] sm:$0xff]  ;;  %v1275_v19 = vmul.f32 %v5262_v60, %v1258_v28  ;;  %v3837_v62 = vpop.f32.mrb[19].mxu0 }
 0x277   : > { %v1201_v46 = vadd.f32 %v1188_v27, %v1158_v15  ;;  %v989_v57 = vmul.f32 %v1300_v13, %v5182_v52  ;;  %v1087_v58 = vld [vmem:[#allocation2 + $0x2b] sm:$0xff]  ;;  %v930_v61 = vadd.f32 %v5172_v45, %v911_v25  ;;  %v1019_v22 = vmul.f32 %v5187_v53, %v1002_v29  ;;  %v5324_v30 = vld [vmem:[#allocation24 + $0x48] sm:$0xff] }
 0x278   : > { %v1341_v36 = vpack.c.bf16 %v1329_v6, %v1328_v55  ;;  %v1202_v48 = vadd.f32 %v1189_v10, %v1159_v56  ;;  %v912_v55 = vmul.f32 %v5168_v42, %v878_v40  ;;  %v1301_v6 = vld [vmem:[#allocation2 + $0x30] sm:$0xff]  ;;  %v1031_v23 = vadd.f32 %v1018_v11, %v988_v63 }
 0x279   : > { %v1244_v27 = vadd.f32 %v1231_v24, %v1201_v46  ;;  %v1061_v13 = vmul.f32 %v5201_v1, %v1044_v37  ;;  %v1062_v15 = vmul.f32 %v5201_v1, %v1045_v49  ;;  %v1088_v56 = vld [vmem:[#allocation2 + $0x33] sm:$0xff]  ;;  %v5331_v28 = vmul.f32 %v930_v61, %v5317_v31 }
 0x27a   : > { %3863 = vmatmul.mubr.bf16.vlgmr.msra.gmra.mrb[0].mxu1 %v1341_v36  ;;  %v1245_v10 = vadd.f32 %v1232_v2, %v1202_v48  ;;  %v931_v25 = vadd.f32 %v5172_v45, %v912_v55  ;;  %v1032_v36 = vadd.f32 %v1019_v22, %v989_v57  ;;  %v1104_v63 = vmul.f32 %v5220_v17, %v1087_v58  ;;  %v1174_v24 = vld [vmem:[#allocation2 + $0x35] sm:$0xff]  ;;  %v1173_v46 = vld [vmem:[#allocation2 + $0x2d] sm:$0xff] }
 0x27b   : > { %3866 = vmatprep.mubr.msk.bf16.mxu1 %vm4680_vm0, %v4679_v0  ;;  %v1287_v11 = vadd.f32 %v1274_v3, %v1244_v27  ;;  %v1318_v40 = vmul.f32 %v5268_v20, %v1301_v6  ;;  %v1074_v0 = vadd.f32 %v1061_v13, %v1031_v23  ;;  %956 = vst [vmem:[#allocation2 + $0x4c] sm:$0xff] %v5331_v28  ;;  %v1216_v48 = vld [vmem:[#allocation2 + $0x36] sm:$0xff]  ;;  %v883_v61 = vpop.f32.mrb[20].mxu0 }
 0x27c   : > { %v1288_v29 = vadd.f32 %v1275_v19, %v1245_v10  ;;  %v5338_v2 = vmul.f32 %v931_v25, %v5324_v30  ;;  %v1075_v37 = vadd.f32 %v1062_v15, %v1032_v36  ;;  %v1105_v49 = vmul.f32 %v5220_v17, %v1088_v56  ;;  %v1217_v19 = vld [vmem:[#allocation2 + $0x3e] sm:$0xff]  ;;  %v3840_v22 = vpop.f32.mrb[21].mxu0  ;;  %v5348_v15 = vld [vmem:[#allocation24 + $0x50] sm:$0xff] }
 0x27d   : > { %v1330_v57 = vadd.f32 %v1317_v38, %v1287_v11  ;;  %v1117_v58 = vadd.f32 %v1104_v63, %v1074_v0  ;;  %v1147_v3 = vmul.f32 %v5229_v26, %v5265_v14  ;;  %v913_v62 = vmul.f32 %v5168_v42, %v883_v61  ;;  %v1259_v13 = vld [vmem:[#allocation2 + $0x37] sm:$0xff]  ;;  %v886_v38 = vpop.f32.mrb[22].mxu0  ;;  %v5363_v22 = vld [vmem:[#allocation2] sm:$0xff] }
 0x27e   : > { %v1331_v55 = vadd.f32 %v1318_v40, %v1288_v29  ;;  %957 = vst [vmem:[#allocation2 + $0x54] sm:$0xff] %v5338_v2  ;;  %v1118_v23 = vadd.f32 %v1105_v49, %v1075_v37  ;;  %v1148_v27 = vmul.f32 %v5229_v26, %v5277_v32  ;;  %v1191_v10 = vmul.f32 %v5238_v34, %v1174_v24  ;;  %v1302_v63 = vld [vmem:[#allocation2 + $0x38] sm:$0xff]  ;;  %v3841_v40 = vpop.f32.mrb[23].mxu0 }
 0x27f   : > { %v1160_v25 = vadd.f32 %v1147_v3, %v1117_v58  ;;  %v1190_v14 = vmul.f32 %v5238_v34, %v1173_v46  ;;  %v1233_v36 = vmul.f32 %v5246_v47, %v1216_v48  ;;  %v932_v11 = vadd.f32 %v5172_v45, %v913_v62  ;;  %v1260_v24 = vld [vmem:[#allocation2 + $0x3f] sm:$0xff]  ;;  %v1003_v37 = vld [vmem:[#allocation2 + $0x31] sm:$0xff] }
 0x280   : > { %v1342_v56 = vpack.c.bf16 %v1331_v55, %v1330_v57  ;;  %v914_v29 = vmul.f32 %v5168_v42, %v886_v38  ;;  %v1161_v0 = vadd.f32 %v1148_v27, %v1118_v23  ;;  %v1234_v32 = vmul.f32 %v5246_v47, %v1217_v19  ;;  %v1004_v49 = vld [vmem:[#allocation2 + $0x39] sm:$0xff]  ;;  %v1090_v40 = vld [vmem:[#allocation2 + $0x43] sm:$0xff] }
 0x281   : > { %v5355_v61 = vld [vmem:[#allocation24 + $0x58] sm:$0xff]  ;;  %v1203_v57 = vadd.f32 %v1190_v14, %v1160_v25  ;;  %v1276_v46 = vmul.f32 %v5262_v60, %v1259_v13  ;;  %v990_v48 = vmul.f32 %v1301_v6, %v5182_v52  ;;  %v1047_v58 = vld [vmem:[#allocation2 + $0x3a] sm:$0xff]  ;;  %v5360_v3 = vmul.f32 %v932_v11, %v5348_v15 }
 0x282   : > { %3867 = vmatmul.mubr.bf16.gmra.mrb[4].mxu1 %v1342_v56  ;;  %v1046_v55 = vld [vmem:[#allocation2 + $0x32] sm:$0xff]  ;;  %v933_v62 = vadd.f32 %v5172_v45, %v914_v29  ;;  %v1204_v19 = vadd.f32 %v1191_v10, %v1161_v0  ;;  %v991_v23 = vmul.f32 %v1302_v63, %v5182_v52  ;;  %v1089_v27 = vld [vmem:[#allocation2 + $0x3b] sm:$0xff]  ;;  %v1277_v13 = vmul.f32 %v5262_v60, %v1260_v24 }
 0x283   : > { %3870 = vmatprep.mubr.msk.bf16.mxu1 %vm4680_vm0, %v5363_v22  ;;  %v1246_v38 = vadd.f32 %v1233_v36, %v1203_v57  ;;  %v1303_v6 = vld [vmem:[#allocation2 + $0x40] sm:$0xff]  ;;  %v1020_v56 = vmul.f32 %v5187_v53, %v1003_v37  ;;  %v1021_v25 = vmul.f32 %v5187_v53, %v1004_v49  ;;  %958 = vst [vmem:[#allocation2 + $0x5c] sm:$0xff] %v5360_v3  ;;  %v891_v0 = vpop.f32.mrb[24].mxu0 }
 0x284   : > { %v5373_v14 = vmul.f32 %v933_v62, %v5355_v61  ;;  %v1247_v11 = vadd.f32 %v1234_v32, %v1204_v19  ;;  %v1063_v29 = vmul.f32 %v5201_v1, %v1046_v55  ;;  %v1064_v10 = vmul.f32 %v5201_v1, %v1047_v58  ;;  %v3844_v49 = vpop.f32.mrb[25].mxu0  ;;  %v1176_v55 = vld [vmem:[#allocation2 + $0x45] sm:$0xff]  ;;  %v5382_v19 = vld [vmem:[#allocation24 + $0x60] sm:$0x1] }
 0x285   : > { %v1289_v36 = vadd.f32 %v1276_v46, %v1246_v38  ;;  %v1033_v57 = vadd.f32 %v1020_v56, %v990_v48  ;;  %v1034_v24 = vadd.f32 %v1021_v25, %v991_v23  ;;  %v1106_v35 = vmul.f32 %v5220_v17, %v1089_v27  ;;  %v894_v58 = vpop.f32.mrb[26].mxu0  ;;  %v1175_v23 = vld [vmem:[#allocation2 + $0x3d] sm:$0xff]  ;;  %v1218_v27 = vld [vmem:[#allocation2 + $0x46] sm:$0xff] }
 0x286   : > { %959 = vst [vmem:[#allocation2 + $0x64] sm:$0xff] %v5373_v14  ;;  %v915_v37 = vmul.f32 %v5168_v42, %v891_v0  ;;  %v1290_v21 = vadd.f32 %v1277_v13, %v1247_v11  ;;  %v1319_v62 = vmul.f32 %v5268_v20, %v1302_v63  ;;  %v1320_v32 = vmul.f32 %v5268_v20, %v1303_v6  ;;  %v3845_v56 = vpop.f32.mrb[27].mxu0  ;;  %v1219_v13 = vld [vmem:[#allocation2 + $0x4e] sm:$0xff]  ;;  %v1005_v11 = vld [vmem:[#allocation2 + $0x41] sm:$0xff] }
 0x287   : > { %v1076_v18 = vadd.f32 %v1063_v29, %v1033_v57  ;;  %v1077_v46 = vadd.f32 %v1064_v10, %v1034_v24  ;;  %v1107_v48 = vmul.f32 %v5220_v17, %v1090_v40  ;;  %v1149_v63 = vmul.f32 %v5229_v26, %v5300_v39  ;;  %v1261_v40 = vld [vmem:[#allocation2 + $0x47] sm:$0xff]  ;;  %v1262_v39 = vld [vmem:[#allocation2 + $0x4f] sm:$0xff] }
 0x288   : > { %v934_v38 = vadd.f32 %v5172_v45, %v915_v37  ;;  %v1332_v25 = vadd.f32 %v1319_v62, %v1289_v36  ;;  %v1333_v0 = vadd.f32 %v1320_v32, %v1290_v21  ;;  %v1150_v29 = vmul.f32 %v5229_v26, %v5307_v4  ;;  %v1304_v57 = vld [vmem:[#allocation2 + $0x48] sm:$0xff] }
 0x289   : > { %v1119_v49 = vadd.f32 %v1106_v35, %v1076_v18  ;;  %v1120_v5 = vadd.f32 %v1107_v48, %v1077_v46  ;;  %v1193_v10 = vmul.f32 %v5238_v34, %v1176_v55  ;;  %v1006_v24 = vld [vmem:[#allocation2 + $0x49] sm:$0xff]  ;;  %v1192_v21 = vmul.f32 %v5238_v34, %v1175_v23 }
 0x28a   : > { %v947_v37 = vmul.f32 %v934_v38, %v5382_v19  ;;  %v1343_v58 = vpack.c.bf16 %v1333_v0, %v1332_v25  ;;  %v1235_v36 = vmul.f32 %v5246_v47, %v1218_v27  ;;  %v1048_v62 = vld [vmem:[#allocation2 + $0x42] sm:$0xff]  ;;  %v1236_v35 = vmul.f32 %v5246_v47, %v1219_v13  ;;  %v1049_v46 = vld [vmem:[#allocation2 + $0x4a] sm:$0xff] }
 0x28b   : > { %v1162_v32 = vadd.f32 %v1149_v63, %v1119_v49  ;;  %v1163_v18 = vadd.f32 %v1150_v29, %v1120_v5  ;;  %v992_v4 = vmul.f32 %v1303_v6, %v5182_v52  ;;  %v1091_v55 = vld [vmem:[#allocation2 + $0x4b] sm:$0xff]  ;;  %v1278_v48 = vmul.f32 %v5262_v60, %v1261_v40  ;;  %v1092_v63 = vld [vmem:[#allocation2 + $0x53] sm:$0xff] }
 0x28c   : > { %960 = vst [vmem:[#allocation2 + $0x6c] sm:$0x1] %v947_v37  ;;  %3871 = vmatmul.mubr.bf16.gmra.mrb[8].mxu1 %v1343_v58  ;;  %v1305_v38 = vld [vmem:[#allocation2 + $0x50] sm:$0xff]  ;;  %v993_v56 = vmul.f32 %v1304_v57, %v5182_v52  ;;  %v1022_v23 = vmul.f32 %v5187_v53, %v1005_v11  ;;  %v1023_v27 = vmul.f32 %v5187_v53, %v1006_v24 }
 0x28d   : > { %3874 = vmatprep.mubr.msk.bf16.mxu1 %vm4680_vm0, %v5363_v22  ;;  %v1205_v5 = vadd.f32 %v1192_v21, %v1162_v32  ;;  %v1206_v25 = vadd.f32 %v1193_v10, %v1163_v18  ;;  %v1279_v6 = vmul.f32 %v5262_v60, %v1262_v39  ;;  %v1065_v0 = vmul.f32 %v5201_v1, %v1048_v62  ;;  %v1177_v37 = vld [vmem:[#allocation2 + $0x4d] sm:$0xff]  ;;  %v1178_v21 = vld [vmem:[#allocation2 + $0x55] sm:$0xff] }
 0x28e   : > { %v1035_v13 = vadd.f32 %v1022_v23, %v992_v4  ;;  %v1036_v49 = vadd.f32 %v1023_v27, %v993_v56  ;;  %v1066_v29 = vmul.f32 %v5201_v1, %v1049_v46  ;;  %v1108_v40 = vmul.f32 %v5220_v17, %v1091_v55  ;;  %v1220_v10 = vld [vmem:[#allocation2 + $0x56] sm:$0xff]  ;;  %v1221_v4 = vld [vmem:[#allocation2 + $0x5e] sm:$0xff] }
 0x28f   : > { %v1248_v11 = vadd.f32 %v1235_v36, %v1205_v5  ;;  %v1249_v58 = vadd.f32 %v1236_v35, %v1206_v25  ;;  %v1321_v24 = vmul.f32 %v5268_v20, %v1304_v57  ;;  %v1322_v12 = vmul.f32 %v5268_v20, %v1305_v38  ;;  %v1306_v57 = vld [vmem:[#allocation2 + $0x58] sm:$0xff] }
 0x290   : > { %v1078_v32 = vadd.f32 %v1065_v0, %v1035_v13  ;;  %v1079_v39 = vadd.f32 %v1066_v29, %v1036_v49  ;;  %v1109_v62 = vmul.f32 %v5220_v17, %v1092_v63  ;;  %v1151_v18 = vmul.f32 %v5229_v26, %v5331_v28  ;;  %v1007_v55 = vld [vmem:[#allocation2 + $0x51] sm:$0xff]  ;;  %v1008_v63 = vld [vmem:[#allocation2 + $0x59] sm:$0xff] }
 0x291   : > { %v1291_v46 = vadd.f32 %v1278_v48, %v1248_v11  ;;  %v1292_v56 = vadd.f32 %v1279_v6, %v1249_v58  ;;  %v1152_v36 = vmul.f32 %v5229_v26, %v5338_v2  ;;  %v1194_v35 = vmul.f32 %v5238_v34, %v1177_v37  ;;  %v1263_v0 = vld [vmem:[#allocation2 + $0x57] sm:$0xff]  ;;  %v1264_v11 = vld [vmem:[#allocation2 + $0x5f] sm:$0xff] }
 0x292   : > { %v1121_v23 = vadd.f32 %v1108_v40, %v1078_v32  ;;  %v1122_v27 = vadd.f32 %v1109_v62, %v1079_v39  ;;  %v1195_v5 = vmul.f32 %v5238_v34, %v1178_v21  ;;  %v1237_v25 = vmul.f32 %v5246_v47, %v1220_v10  ;;  %v1050_v13 = vld [vmem:[#allocation2 + $0x52] sm:$0xff]  ;;  %v1093_v2 = vld [vmem:[#allocation2 + $0x5b] sm:$0xff] }
 0x293   : > { %v1334_v28 = vadd.f32 %v1321_v24, %v1291_v46  ;;  %v1335_v49 = vadd.f32 %v1322_v12, %v1292_v56  ;;  %v1238_v48 = vmul.f32 %v5246_v47, %v1221_v4  ;;  %v994_v6 = vmul.f32 %v1305_v38, %v5182_v52  ;;  %v1051_v21 = vld [vmem:[#allocation2 + $0x5a] sm:$0xff]  ;;  %v1094_v46 = vld [vmem:[#allocation2 + $0x63] sm:$0xff] }
 0x294   : > { %v1164_v29 = vadd.f32 %v1151_v18, %v1121_v23  ;;  %v1165_v37 = vadd.f32 %v1152_v36, %v1122_v27  ;;  %v995_v40 = vmul.f32 %v1306_v57, %v5182_v52  ;;  %v1024_v58 = vmul.f32 %v5187_v53, %v1007_v55  ;;  %v1307_v39 = vld [vmem:[#allocation2 + $0x60] sm:$0xff] }
 0x295   : > { %v1344_v32 = vpack.c.bf16 %v1335_v49, %v1334_v28  ;;  %v1280_v10 = vmul.f32 %v5262_v60, %v1263_v0  ;;  %v1025_v24 = vmul.f32 %v5187_v53, %v1008_v63  ;;  %v1067_v12 = vmul.f32 %v5201_v1, %v1050_v13  ;;  %v1179_v27 = vld [vmem:[#allocation2 + $0x5d] sm:$0xff]  ;;  %v1180_v13 = vld [vmem:[#allocation2 + $0x65] sm:$0xff] }
 0x296   : > { %v1207_v62 = vadd.f32 %v1194_v35, %v1164_v29  ;;  %v1208_v4 = vadd.f32 %v1195_v5, %v1165_v37  ;;  %v1037_v38 = vadd.f32 %v1024_v58, %v994_v6  ;;  %v1110_v18 = vmul.f32 %v5220_v17, %v1093_v2  ;;  %v979_v28 = vld [vmem:[#allocation2 + $0x60] sm:$0x1]  ;;  %v1009_v49 = vld [vmem:[#allocation2 + $0x61] sm:$0x1]  ;;  %v1222_v37 = vld [vmem:[#allocation2 + $0x66] sm:$0xff] }
 0x297   : > { %3875 = vmatmul.mubr.bf16.gmra.mrb[12].mxu1 %v1344_v32  ;;  %v1281_v56 = vmul.f32 %v5262_v60, %v1264_v11  ;;  %v1323_v36 = vmul.f32 %v5268_v20, %v1306_v57  ;;  %v1038_v55 = vadd.f32 %v1025_v24, %v995_v40  ;;  %v1068_v23 = vmul.f32 %v5201_v1, %v1051_v21  ;;  %v1223_v58 = vld [vmem:[#allocation2 + $0x6e] sm:$0xff]  ;;  %v1052_v21 = vld [vmem:[#allocation2 + $0x62] sm:$0x1] }
 0x298   : > { %3878 = vmatprep.mubr.msk.bf16.mxu1 %vm4680_vm0, %v5363_v22  ;;  %v1250_v0 = vadd.f32 %v1237_v25, %v1207_v62  ;;  %v1251_v63 = vadd.f32 %v1238_v48, %v1208_v4  ;;  %v1324_v35 = vmul.f32 %v5268_v20, %v1307_v39  ;;  %v1080_v5 = vadd.f32 %v1067_v12, %v1037_v38  ;;  %v1266_v24 = vld [vmem:[#allocation2 + $0x6f] sm:$0xff] }
 0x299   : > { %v1081_v6 = vadd.f32 %v1068_v23, %v1038_v55  ;;  %v1111_v2 = vmul.f32 %v5220_v17, %v1094_v46  ;;  %v1153_v57 = vmul.f32 %v5229_v26, %v5360_v3  ;;  %v1154_v29 = vmul.f32 %v5229_v26, %v5373_v14  ;;  %v1138_v46 = vld [vmem:[#allocation2 + $0x6c] sm:$0x1] }
 0x29a   : > { %v1293_v11 = vadd.f32 %v1280_v10, %v1250_v0  ;;  %v1294_v40 = vadd.f32 %v1281_v56, %v1251_v63  ;;  %v1123_v25 = vadd.f32 %v1110_v18, %v1080_v5  ;;  %v1196_v48 = vmul.f32 %v5238_v34, %v1179_v27  ;;  %v1095_v10 = vld [vmem:[#allocation2 + $0x6b] sm:$0x1]  ;;  %v1309_v5 = vld [vmem:[#allocation2 + $0x70] sm:$0xff] }
 0x29b   : > { %v1124_v32 = vadd.f32 %v1111_v2, %v1081_v6  ;;  %v1197_v39 = vmul.f32 %v5238_v34, %v1180_v13  ;;  %v996_v12 = vmul.f32 %v5182_v52, %v979_v28  ;;  %v1026_v62 = vmul.f32 %v5187_v53, %v1009_v49  ;;  %v1265_v55 = vld [vmem:[#allocation2 + $0x67] sm:$0xff] }
 0x29c   : > { %v1336_v3 = vadd.f32 %v1323_v36, %v1293_v11  ;;  %v1337_v4 = vadd.f32 %v1324_v35, %v1294_v40  ;;  %v1166_v38 = vadd.f32 %v1153_v57, %v1123_v25  ;;  %v1239_v14 = vmul.f32 %v5246_v47, %v1222_v37  ;;  %v1181_v53 = vld [vmem:[#allocation2 + $0x6d] sm:$0x1]  ;;  %v1224_v57 = vld [vmem:[#allocation2 + $0x76] sm:$0x1]  ;;  %v1267_v25 = vld [vmem:[#allocation2 + $0x77] sm:$0x1] }
 0x29d   : > { %v1167_v18 = vadd.f32 %v1154_v29, %v1124_v32  ;;  %v1240_v56 = vmul.f32 %v5246_v47, %v1223_v58  ;;  %v1039_v23 = vadd.f32 %v1026_v62, %v996_v12  ;;  %v1069_v27 = vmul.f32 %v5201_v1, %v1052_v21  ;;  %v1308_v2 = vld [vmem:[#allocation2 + $0x68] sm:$0xff]  ;;  %v1310_v21 = vld [vmem:[#allocation2 + $0x78] sm:$0x1] }
 0x29e   : > { %v1345_v0 = vpack.c.bf16 %v1337_v4, %v1336_v3  ;;  %v1209_v63 = vadd.f32 %v1196_v48, %v1166_v38  ;;  %v1283_v52 = vmul.f32 %v5262_v60, %v1266_v24  ;;  %v1112_v13 = vmul.f32 %v5220_v17, %v1095_v10  ;;  %v4155_v10 = vld [vmem:[#allocation17 + $0x18] sm:$0xff]  }
 0x29f   : > { %v1210_v36 = vadd.f32 %v1197_v39, %v1167_v18  ;;  %v1082_v35 = vadd.f32 %v1069_v27, %v1039_v23  ;;  %v1155_v28 = vmul.f32 %v5229_v26, %v1138_v46  ;;  %v1282_v6 = vmul.f32 %v5262_v60, %v1265_v55  ;;  %3897 = vmatpush3.bf16.msra.mxu0 %v4155_v10  ;;  %v4157_v18 = vld [vmem:[#allocation17 + $0x28] sm:$0xff]   ;;  %v4158_v55 = vld [vmem:[#allocation17 + $0x30] sm:$0xff]  }
 0x2a0   : > { %3879 = vmatmul.mubr.bf16.gmra.mrb[16].mxu1 %v1345_v0  ;;  %v1252_v49 = vadd.f32 %v1239_v14, %v1209_v63  ;;  %v1326_v29 = vmul.f32 %v5268_v20, %v1309_v5  ;;  %v1198_v11 = vmul.f32 %v5238_v34, %v1181_v53  ;;  %v1325_v26 = vmul.f32 %v5268_v20, %v1308_v2  ;;  %v1601_v23 = vld [vmem:[#allocation3 + $0x1] sm:$0xff] }
 0x2a1   : > { %3882 = vmatprep.mubr.msk.bf16.mxu1 %vm4680_vm0, %v5363_v22  ;;  %v1253_v1 = vadd.f32 %v1240_v56, %v1210_v36  ;;  %v1125_v37 = vadd.f32 %v1112_v13, %v1082_v35  ;;  %v1241_v58 = vmul.f32 %v5246_v47, %v1224_v57  ;;  %v1284_v12 = vmul.f32 %v5262_v60, %v1267_v25  ;;  %v4156_v47 = vld [vmem:[#allocation17 + $0x20] sm:$0xff]   ;;  %v5458_v60 = vld [vmem:[#allocation15] sm:$0xff] }
 0x2a2   : > { %v1295_v40 = vadd.f32 %v1282_v6, %v1252_v49  ;;  %v1327_v4 = vmul.f32 %v5268_v20, %v1310_v21  ;;  %3898 = vmatprep.subr.bf16.mxu0 %v5363_v22  ;;  %v5463_v20 = vrot.slane %v5458_v60, %v982_v43  ;;  %v5468_v46 = vrot.slane %v5458_v60, %v1012_v44  ;;  %v1644_v0 = vld [vmem:[#allocation3 + $0x2] sm:$0xff] }
 0x2a3   : > { %v1296_v17 = vadd.f32 %v1283_v52, %v1253_v1  ;;  %v1168_v48 = vadd.f32 %v1155_v28, %v1125_v37  ;;  %3899 = vmatpush3.bf16.msra.mxu0 %v4156_v47  ;;  %v5473_v56 = vrot.slane %v5458_v60, %v1055_v54  ;;  %v4159_v54 = vld [vmem:[#allocation17 + $0x38] sm:$0xff]   ;;  %v5886_v6 = vsub.s32 4, %v5166_v41 }
 0x2a4   : > { %v1338_v32 = vadd.f32 %v1325_v26, %v1295_v40  ;;  %3900 = vmatprep.subr.bf16.mxu0 %v5363_v22  ;;  %v1588_v43 = vmul.f32 %v5363_v22, %v5463_v20  ;;  %v1618_v27 = vmul.f32 %v5468_v46, %v1601_v23  ;;  %v5888_v47 = vsub.s32 5, %v5166_v41 }
 0x2a5   : > { %v1339_v39 = vadd.f32 %v1326_v29, %v1296_v17  ;;  %v1211_v24 = vadd.f32 %v1198_v11, %v1168_v48  ;;  %v1661_v44 = vmul.f32 %v5473_v56, %v1644_v0  ;;  %v5487_v2 = vrot.slane %v5458_v60, %v5886_v6 }
 0x2a6   : > { %v1631_v63 = vadd.f32 %v1618_v27, %v1588_v43 }
 0x2a7   : > { %v1346_v62 = vpack.c.bf16 %v1339_v39, %v1338_v32  ;;  %v1254_v3 = vadd.f32 %v1241_v58, %v1211_v24  ;;  %3901 = vmatpush3.bf16.msra.mxu0 %v4157_v18  ;;  %v5509_v18 = vrot.slane %v5458_v60, %v5888_v47 }
 0x2a8   : > { %3902 = vmatprep.subr.bf16.mxu0 %v5363_v22  ;;  %v1674_v52 = vadd.f32 %v1661_v44, %v1631_v63 }
 0x2a9   : > { %3883 = vmatmul.mubr.bf16.gmra.mrb[20].mxu1 %v1346_v62  ;;  %v1297_v34 = vadd.f32 %v1284_v12, %v1254_v3 }
 0x2aa   : > { %3886 = vmatprep.mubr.msk.bf16.mxu1 %vm4680_vm0, %v5363_v22 }
 0x2ab   : > { %v1340_v38 = vadd.f32 %v1327_v4, %v1297_v34  ;;  %3903 = vmatpush3.bf16.msra.mxu0 %v4158_v55 }
 0x2ac   : > { %3904 = vmatprep.subr.bf16.mxu0 %v5363_v22 }
 0x2ad   : > { %v1347_v14 = vpack.c.bf16 %v1340_v38, %v1340_v38 }
 0x2af   : > { %3905 = vmatpush3.bf16.msra.mxu0 %v4159_v54 }
 0x2b1   : > { %3887 = vmatmul.mubr.bf16.gmra.mrb[24].mxu1 %v1347_v14 }
 0x34d   : > { %v1446_v5 = vpop.f32.mrb[0].mxu1 }
 0x34e   : > { %v1500_v53 = vmul.f32 %v5168_v42, %v1446_v5  ;;  %v3864_v36 = vpop.f32.mrb[1].mxu1 }
 0x34f   : > { %v1449_v35 = vpop.f32.mrb[2].mxu1 }
 0x350   : > { %v1513_v13 = vadd.f32 %v5172_v45, %v1500_v53  ;;  %v1501_v28 = vmul.f32 %v5168_v42, %v1449_v35  ;;  %v3865_v49 = vpop.f32.mrb[3].mxu1  ;;  %v5889_v53 = vsub.s32 6, %v5166_v41 }
 0x351   : > { %v5890_v49 = vsub.s32 7, %v5166_v41 }
 0x352   : > { %v1526_v57 = vmax.f32 %v1513_v13, 0.0  ;;  %v1514_v1 = vadd.f32 %v5172_v45, %v1501_v28  ;;  %v5521_v36 = vrot.slane %v5458_v60, %v5889_v53 }
 0x353   : > { %v5530_v6 = vrot.slane %v5458_v60, %v5890_v49 }
 0x354   : > { %v1539_v29 = vmul.f32 %v1526_v57, %v5177_v50  ;;  %v1527_v37 = vmax.f32 %v1514_v1, 0.0  ;;  %v5887_v50 = vsub.s32 3, %v5166_v41  ;;  %v5532_v57 = vld [vmem:[#allocation9] ss:$0 sm:$0xff] }
 0x355   : > { %v1454_v40 = vpop.f32.mrb[4].mxu1 }
 0x356   : > { %1552 = vst [vmem:[#allocation3 + $0xc] sm:$0xff] %v1539_v29  ;;  %v1540_v11 = vmul.f32 %v1527_v37, %v5192_v59  ;;  %v1747_v25 = vmul.f32 %v5487_v2, %v1539_v29  ;;  %v1502_v17 = vmul.f32 %v5168_v42, %v1454_v40  ;;  %v3868_v26 = vpop.f32.mrb[5].mxu1  ;;  %v5500_v24 = vrot.slane %v5458_v60, %v5887_v50  ;;  %v5542_v50 = vld [vmem:[#allocation15 + $0x8] ss:$0 sm:$0xff] }
 0x357   : > { %v1457_v48 = vpop.f32.mrb[6].mxu1 }
 0x358   : > { %1553 = vst [vmem:[#allocation3 + $0x14] sm:$0xff] %v1540_v11  ;;  %v1748_v58 = vmul.f32 %v5487_v2, %v1540_v11  ;;  %v1515_v21 = vadd.f32 %v5172_v45, %v1502_v17  ;;  %v1503_v32 = vmul.f32 %v5168_v42, %v1457_v48  ;;  %v3869_v39 = vpop.f32.mrb[7].mxu1 }
 0x35a   : > { %v1528_v59 = vmax.f32 %v1515_v21, 0.0  ;;  %v1516_v12 = vadd.f32 %v5172_v45, %v1503_v32  ;;  %v5538_v21 = vld [vmem:[#allocation11] ss:$0 sm:$0xff] }
 0x35c   : > { %v1541_v62 = vmul.f32 %v1528_v59, %v5209_v8  ;;  %v1529_v3 = vmax.f32 %v1516_v12, 0.0 }
 0x35d   : > { %v1572_v4 = vld [vmem:[#allocation3 + $0x8] sm:$0xff] }
 0x35e   : > { %v1602_v34 = vld [vmem:[#allocation3 + $0x9] sm:$0xff]  ;;  %v1589_v14 = vmul.f32 %v5463_v20, %v1572_v4  ;;  %1554 = vst [vmem:[#allocation3 + $0x1c] sm:$0xff] %v1541_v62  ;;  %v1542_v55 = vmul.f32 %v1529_v3, %v5215_v16  ;;  %v5514_v43 = vmul.f32 %v5487_v2, %v1541_v62 }
 0x35f   : > { %v1645_v38 = vld [vmem:[#allocation3 + $0xa] sm:$0xff]  ;;  %v1619_v10 = vmul.f32 %v5468_v46, %v1602_v34  ;;  %v1688_v45 = vld [vmem:[#allocation3 + $0x13] sm:$0xff]  ;;  %v1462_v16 = vpop.f32.mrb[8].mxu1 }
 0x360   : > { %v1687_v42 = vld [vmem:[#allocation3 + $0xb] sm:$0xff]  ;;  %v1662_v0 = vmul.f32 %v5473_v56, %v1645_v38  ;;  %1555 = vst [vmem:[#allocation3 + $0x24] sm:$0xff] %v1542_v55  ;;  %v5525_v28 = vmul.f32 %v5487_v2, %v1542_v55  ;;  %v1504_v1 = vmul.f32 %v5532_v57, %v1462_v16  ;;  %v3872_v29 = vpop.f32.mrb[9].mxu1  ;;  %v1705_v11 = vmul.f32 %v5500_v24, %v1688_v45 }
 0x361   : > { %v1704_v8 = vmul.f32 %v5500_v24, %v1687_v42  ;;  %v1573_v23 = vld [vmem:[#allocation3 + $0x10] sm:$0xff]  ;;  %v1632_v27 = vadd.f32 %v1619_v10, %v1589_v14  ;;  %v1465_v40 = vpop.f32.mrb[10].mxu1 }
 0x362   : > { %v1773_v63 = vld [vmem:[#allocation3 + $0xd] sm:$0xff]  ;;  %v1590_v44 = vmul.f32 %v5463_v20, %v1573_v23  ;;  %v1517_v41 = vadd.f32 %v5538_v21, %v1504_v1  ;;  %v1505_v60 = vmul.f32 %v5532_v57, %v1465_v40  ;;  %v3873_v32 = vpop.f32.mrb[11].mxu1 }
 0x363   : > { %v1603_v54 = vld [vmem:[#allocation3 + $0x11] sm:$0xff]  ;;  %v1717_v35 = vadd.f32 %v1704_v8, %v1674_v52  ;;  %v1675_v37 = vadd.f32 %v1662_v0, %v1632_v27  ;;  %v1790_v17 = vmul.f32 %v5509_v18, %v1773_v63 }
 0x364   : > { %v1646_v5 = vld [vmem:[#allocation3 + $0x12] sm:$0xff]  ;;  %v1620_v13 = vmul.f32 %v5468_v46, %v1603_v54  ;;  %v1530_v62 = vmax.f32 %v1517_v41, 0.0 }
 0x365   : > { %v1760_v52 = vadd.f32 %v1747_v25, %v1717_v35  ;;  %v1663_v48 = vmul.f32 %v5473_v56, %v1646_v5  ;;  %v1718_v39 = vadd.f32 %v1705_v11, %v1675_v37  ;;  %v1518_v25 = vadd.f32 %v5538_v21, %v1505_v60  ;;  %v1774_v4 = vld [vmem:[#allocation3 + $0x15] sm:$0xff] }
 0x366   : > { %v1633_v26 = vadd.f32 %v1620_v13, %v1590_v44  ;;  %v1816_v34 = vld [vmem:[#allocation3 + $0x16] sm:$0xff]  ;;  %v1791_v14 = vmul.f32 %v5509_v18, %v1774_v4  ;;  %v1543_v8 = vmul.f32 %v1530_v62, %v5248_v51 }
 0x367   : > { %v1803_v59 = vadd.f32 %v1790_v17, %v1760_v52  ;;  %v1761_v3 = vadd.f32 %v1748_v58, %v1718_v39  ;;  %v1859_v38 = vld [vmem:[#allocation3 + $0x17] sm:$0xff]  ;;  %v1833_v10 = vmul.f32 %v5521_v36, %v1816_v34  ;;  %v1531_v23 = vmax.f32 %v1518_v25, 0.0  ;;  %v1860_v0 = vld [vmem:[#allocation3 + $0x1f] sm:$0xff] }
 0x368   : > { %v1676_v12 = vadd.f32 %v1663_v48, %v1633_v26  ;;  %v1876_v42 = vmul.f32 %v5530_v6, %v1859_v38  ;;  %v1902_v47 = vld [vmem:[#allocation3 + $0x18] sm:$0xff]  ;;  %v1903_v63 = vld [vmem:[#allocation3 + $0x20] sm:$0xff]  ;;  %v1877_v16 = vmul.f32 %v5530_v6, %v1860_v0  ;;  %1556 = vst [vmem:[#allocation3 + $0x2c] sm:$0xff] %v1543_v8 }
 0x369   : > { %v1604_v55 = vld [vmem:[#allocation3 + $0x19] sm:$0xff]  ;;  %v1919_v58 = vmul.f32 %v5542_v50, %v1902_v47  ;;  %v1591_v44 = vmul.f32 %v1902_v47, %v5463_v20  ;;  %v1804_v54 = vadd.f32 %v1791_v14, %v1761_v3  ;;  %v1846_v53 = vadd.f32 %v1833_v10, %v1803_v59  ;;  %v1690_v13 = vld [vmem:[#allocation3 + $0x23] sm:$0xff] }
 0x36a   : > { %v1647_v45 = vld [vmem:[#allocation3 + $0x1a] sm:$0xff]  ;;  %v1544_v51 = vmul.f32 %v1531_v23, %v5256_v9  ;;  %v1920_v1 = vmul.f32 %v5542_v50, %v1903_v63  ;;  %v1621_v29 = vmul.f32 %v5468_v46, %v1604_v55  ;;  %v1707_v26 = vmul.f32 %v5500_v24, %v1690_v13  ;;  %v1648_v48 = vld [vmem:[#allocation3 + $0x22] sm:$0xff]  ;;  %v1470_v41 = vpop.f32.mrb[12].mxu1 }
 0x36b   : > { %v1817_v27 = vld [vmem:[#allocation3 + $0x1e] sm:$0xff]  ;;  %v1664_v37 = vmul.f32 %v5473_v56, %v1647_v45  ;;  %v1889_v52 = vadd.f32 %v1876_v42, %v1846_v53  ;;  %v1592_v9 = vmul.f32 %v1903_v63, %v5463_v20  ;;  %v1506_v59 = vmul.f32 %v5532_v57, %v1470_v41  ;;  %v3876_v62 = vpop.f32.mrb[13].mxu1 }
 0x36c   : > { %v1834_v5 = vmul.f32 %v5521_v36, %v1817_v27  ;;  %v1689_v35 = vld [vmem:[#allocation3 + $0x1b] sm:$0xff]  ;;  %1557 = vst [vmem:[#allocation3 + $0x34] sm:$0xff] %v1544_v51  ;;  %v1634_v60 = vadd.f32 %v1621_v29, %v1591_v44  ;;  %v1473_v34 = vpop.f32.mrb[14].mxu1  ;;  %v1665_v10 = vmul.f32 %v5473_v56, %v1648_v48  ;;  %v5565_v42 = vmul.f32 %v5487_v2, %v1543_v8 }
 0x36d   : > { %v1775_v49 = vld [vmem:[#allocation3 + $0x1d] sm:$0xff]  ;;  %v1706_v17 = vmul.f32 %v5500_v24, %v1689_v35  ;;  %v1932_v3 = vadd.f32 %v1919_v58, %v1889_v52  ;;  %v1519_v47 = vadd.f32 %v5538_v21, %v1506_v59  ;;  %v1507_v55 = vmul.f32 %v5532_v57, %v1473_v34  ;;  %v3877_v45 = vpop.f32.mrb[15].mxu1 }
 0x36e   : > { %v1605_v11 = vld [vmem:[#allocation3 + $0x21] sm:$0xff]  ;;  %v1847_v40 = vadd.f32 %v1834_v5, %v1804_v54  ;;  %v1792_v32 = vmul.f32 %v5509_v18, %v1775_v49  ;;  %v1677_v38 = vadd.f32 %v1664_v37, %v1634_v60 }
 0x36f   : > { %v1622_v39 = vmul.f32 %v5468_v46, %v1605_v11  ;;  %v1719_v4 = vadd.f32 %v1706_v17, %v1676_v12  ;;  %v5571_v12 = vmul.f32 %v5487_v2, %v1544_v51  ;;  %v1532_v58 = vmax.f32 %v1519_v47, 0.0  ;;  %v1776_v5 = vld [vmem:[#allocation3 + $0x25] sm:$0xff] }
 0x370   : > { %v1890_v25 = vadd.f32 %v1877_v16, %v1847_v40  ;;  %v1720_v0 = vadd.f32 %v1707_v26, %v1677_v38  ;;  %v1520_v44 = vadd.f32 %v5538_v21, %v1507_v55  ;;  %v1818_v53 = vld [vmem:[#allocation3 + $0x26] sm:$0xff]  ;;  %v1793_v13 = vmul.f32 %v5509_v18, %v1776_v5 }
 0x371   : > { %v1635_v14 = vadd.f32 %v1622_v39, %v1592_v9  ;;  %v1762_v27 = vadd.f32 %v5514_v43, %v1719_v4  ;;  %v1861_v16 = vld [vmem:[#allocation3 + $0x27] sm:$0xff]  ;;  %v1835_v49 = vmul.f32 %v5521_v36, %v1818_v53  ;;  %v1545_v29 = vmul.f32 %v1532_v58, %v5287_v7 }
 0x372   : > { %v1933_v23 = vadd.f32 %v1920_v1, %v1890_v25  ;;  %v1763_v35 = vadd.f32 %v5525_v28, %v1720_v0  ;;  %v1904_v43 = vld [vmem:[#allocation3 + $0x28] sm:$0xff]  ;;  %v1533_v51 = vmax.f32 %v1520_v44, 0.0  ;;  %v1878_v40 = vmul.f32 %v5530_v6, %v1861_v16 }
 0x373   : > { %v1678_v63 = vadd.f32 %v1665_v10, %v1635_v14  ;;  %v1805_v8 = vadd.f32 %v1792_v32, %v1762_v27  ;;  %v1606_v1 = vld [vmem:[#allocation3 + $0x29] sm:$0xff]  ;;  %v1593_v17 = vmul.f32 %v1904_v43, %v5463_v20  ;;  %v1921_v41 = vmul.f32 %v5542_v50, %v1904_v43  ;;  %v1692_v32 = vld [vmem:[#allocation3 + $0x33] sm:$0xff]  ;;  %1558 = vst [vmem:[#allocation3 + $0x3c] sm:$0xff] %v1545_v29  ;;  %v1478_v39 = vpop.f32.mrb[16].mxu1 }
 0x374   : > { %v1945_v54 = vpack.c.bf16 %v1933_v23, %v1932_v3  ;;  %v1819_v37 = vld [vmem:[#allocation3 + $0x2e] sm:$0xff]  ;;  %v1806_v28 = vadd.f32 %v1793_v13, %v1763_v35  ;;  %v1546_v9 = vmul.f32 %v1533_v51, %v5294_v33  ;;  %v1623_v25 = vmul.f32 %v5468_v46, %v1606_v1  ;;  %v3880_v34 = vpop.f32.mrb[17].mxu1 }
 0x375   : > { %v1862_v11 = vld [vmem:[#allocation3 + $0x2f] sm:$0xff]  ;;  %v1836_v26 = vmul.f32 %v5521_v36, %v1819_v37  ;;  %v1848_v48 = vadd.f32 %v1835_v49, %v1805_v8  ;;  %v1508_v4 = vmul.f32 %v5532_v57, %v1478_v39  ;;  %v1481_v55 = vpop.f32.mrb[18].mxu1  ;;  %v1709_v23 = vmul.f32 %v5500_v24, %v1692_v32 }
 0x376   : > { %3907 = vmatmul.mubr.bf16.vlgmr.msra.gmra.mrb[28].mxu0 %v1945_v54  ;;  %v1905_v52 = vld [vmem:[#allocation3 + $0x30] sm:$0xff]  ;;  %v1879_v59 = vmul.f32 %v5530_v6, %v1862_v11  ;;  %1559 = vst [vmem:[#allocation3 + $0x44] sm:$0xff] %v1546_v9  ;;  %v1636_v45 = vadd.f32 %v1623_v25, %v1593_v17  ;;  %v1509_v58 = vmul.f32 %v5532_v57, %v1481_v55  ;;  %v3881_v44 = vpop.f32.mrb[19].mxu1 }
 0x377   : > { %3910 = vmatprep.mubr.msk.bf16.mxu0 %vm4680_vm0, %v5363_v22  ;;  %v1649_v60 = vld [vmem:[#allocation3 + $0x2a] sm:$0xff]  ;;  %v1922_v62 = vmul.f32 %v5542_v50, %v1905_v52  ;;  %v1849_v38 = vadd.f32 %v1836_v26, %v1806_v28  ;;  %v1891_v14 = vadd.f32 %v1878_v40, %v1848_v48  ;;  %v1594_v27 = vmul.f32 %v1905_v52, %v5463_v20  ;;  %v1650_v13 = vld [vmem:[#allocation3 + $0x32] sm:$0xff] }
 0x378   : > { %v1691_v7 = vld [vmem:[#allocation3 + $0x2b] sm:$0xff]  ;;  %v1666_v33 = vmul.f32 %v5473_v56, %v1649_v60  ;;  %v1521_v0 = vadd.f32 %v5538_v21, %v1508_v4  ;;  %v1522_v43 = vadd.f32 %v5538_v21, %v1509_v58  ;;  %v5599_v51 = vmul.f32 %v5487_v2, %v1545_v29 }
 0x379   : > { %v1777_v3 = vld [vmem:[#allocation3 + $0x2d] sm:$0xff]  ;;  %v1708_v10 = vmul.f32 %v5500_v24, %v1691_v7  ;;  %v1892_v54 = vadd.f32 %v1879_v59, %v1849_v38  ;;  %v1934_v8 = vadd.f32 %v1921_v41, %v1891_v14  ;;  %v5603_v52 = vmul.f32 %v5487_v2, %v1546_v9 }
 0x37a   : > { %v1607_v47 = vld [vmem:[#allocation3 + $0x31] sm:$0xff]  ;;  %v1794_v5 = vmul.f32 %v5509_v18, %v1777_v3  ;;  %v1679_v53 = vadd.f32 %v1666_v33, %v1636_v45  ;;  %v1534_v49 = vmax.f32 %v1521_v0, 0.0  ;;  %v1667_v60 = vmul.f32 %v5473_v56, %v1650_v13  ;;  %v1608_v9 = vld [vmem:[#allocation3 + $0x39] sm:$0xff] }
 0x37b   : > { %v1721_v16 = vadd.f32 %v1708_v10, %v1678_v63  ;;  %v1624_v35 = vmul.f32 %v5468_v46, %v1607_v47  ;;  %v1935_v1 = vadd.f32 %v1922_v62, %v1892_v54  ;;  %v1535_v63 = vmax.f32 %v1522_v43, 0.0  ;;  %v1778_v26 = vld [vmem:[#allocation3 + $0x35] sm:$0xff] }
 0x37c   : > { %v1722_v37 = vadd.f32 %v1709_v23, %v1679_v53  ;;  %v5606_v17 = vmul.f32 %v1534_v49, %v5317_v31  ;;  %v1820_v48 = vld [vmem:[#allocation3 + $0x36] sm:$0xff]  ;;  %v1795_v7 = vmul.f32 %v5509_v18, %v1778_v26  ;;  %v1486_v62 = vpop.f32.mrb[20].mxu1  ;;  %v1625_v58 = vmul.f32 %v5468_v46, %v1608_v9 }
 0x37d   : > { %v1764_v11 = vadd.f32 %v5565_v42, %v1721_v16  ;;  %v1637_v40 = vadd.f32 %v1624_v35, %v1594_v27  ;;  %v1946_v28 = vpack.c.bf16 %v1935_v1, %v1934_v8  ;;  %v1863_v41 = vld [vmem:[#allocation3 + $0x37] sm:$0xff]  ;;  %v1837_v42 = vmul.f32 %v5521_v36, %v1820_v48  ;;  %v1864_v3 = vld [vmem:[#allocation3 + $0x3f] sm:$0xff]  ;;  %v3884_v10 = vpop.f32.mrb[21].mxu1 }
 0x37e   : > { %v1765_v29 = vadd.f32 %v5571_v12, %v1722_v37  ;;  %v1906_v39 = vld [vmem:[#allocation3 + $0x38] sm:$0xff]  ;;  %1560 = vst [vmem:[#allocation3 + $0x4c] sm:$0xff] %v5606_v17  ;;  %v5614_v31 = vmul.f32 %v1535_v63, %v5324_v30  ;;  %v1880_v4 = vmul.f32 %v5530_v6, %v1863_v41  ;;  %v1907_v12 = vld [vmem:[#allocation3 + $0x40] sm:$0xff]  ;;  %v1510_v14 = vmul.f32 %v5532_v57, %v1486_v62  ;;  %v1489_v23 = vpop.f32.mrb[22].mxu1 }
 0x37f   : > { %v1807_v32 = vadd.f32 %v1794_v5, %v1764_v11  ;;  %v1651_v59 = vld [vmem:[#allocation3 + $0x3a] sm:$0xff]  ;;  %3911 = vmatmul.mubr.bf16.gmra.mrb[32].mxu0 %v1946_v28  ;;  %v1923_v34 = vmul.f32 %v5542_v50, %v1906_v39  ;;  %v1595_v38 = vmul.f32 %v1906_v39, %v5463_v20  ;;  %v1694_v33 = vld [vmem:[#allocation3 + $0x43] sm:$0xff]  ;;  %v1881_v27 = vmul.f32 %v5530_v6, %v1864_v3  ;;  %v3885_v5 = vpop.f32.mrb[23].mxu1 }
 0x380   : > { %v1821_v25 = vld [vmem:[#allocation3 + $0x3e] sm:$0xff]  ;;  %3914 = vmatprep.mubr.msk.bf16.mxu0 %vm4680_vm0, %v5363_v22  ;;  %v1808_v47 = vadd.f32 %v1795_v7, %v1765_v29  ;;  %1561 = vst [vmem:[#allocation3 + $0x54] sm:$0xff] %v5614_v31  ;;  %v1924_v0 = vmul.f32 %v5542_v50, %v1907_v12  ;;  %v1668_v44 = vmul.f32 %v5473_v56, %v1651_v59 }
 0x381   : > { %v1838_v30 = vmul.f32 %v5521_v36, %v1821_v25  ;;  %v1850_v55 = vadd.f32 %v1837_v42, %v1807_v32  ;;  %v1693_v45 = vld [vmem:[#allocation3 + $0x3b] sm:$0xff]  ;;  %v1523_v54 = vadd.f32 %v5538_v21, %v1510_v14  ;;  %v1511_v22 = vmul.f32 %v5532_v57, %v1489_v23 }
 0x382   : > { %v1779_v16 = vld [vmem:[#allocation3 + $0x3d] sm:$0xff]  ;;  %v1638_v35 = vadd.f32 %v1625_v58, %v1595_v38  ;;  %v1680_v13 = vadd.f32 %v1667_v60, %v1637_v40  ;;  %v1710_v49 = vmul.f32 %v5500_v24, %v1693_v45  ;;  %v1711_v43 = vmul.f32 %v5500_v24, %v1694_v33 }
 0x383   : > { %v1851_v8 = vadd.f32 %v1838_v30, %v1808_v47  ;;  %v1893_v53 = vadd.f32 %v1880_v4, %v1850_v55  ;;  %v1609_v1 = vld [vmem:[#allocation3 + $0x41] sm:$0xff]  ;;  %v1536_v37 = vmax.f32 %v1523_v54, 0.0  ;;  %v1524_v11 = vadd.f32 %v5538_v21, %v1511_v22 }
 0x384   : > { %v1681_v26 = vadd.f32 %v1668_v44, %v1638_v35  ;;  %v1723_v48 = vadd.f32 %v1710_v49, %v1680_v13  ;;  %v1796_v41 = vmul.f32 %v5509_v18, %v1779_v16  ;;  %v1596_v29 = vmul.f32 %v1907_v12, %v5463_v20  ;;  %v1494_v9 = vpop.f32.mrb[24].mxu1  ;;  %v1652_v23 = vld [vmem:[#allocation3 + $0x42] sm:$0xff] }
 0x385   : > { %v1894_v63 = vadd.f32 %v1881_v27, %v1851_v8  ;;  %v1936_v28 = vadd.f32 %v1923_v34, %v1893_v53  ;;  %v5636_v7 = vmul.f32 %v1536_v37, %v5348_v15  ;;  %v1537_v40 = vmax.f32 %v1524_v11, 0.0  ;;  %v1780_v32 = vld [vmem:[#allocation3 + $0x45] sm:$0xff]  ;;  %v3888_v38 = vpop.f32.mrb[25].mxu1 }
 0x386   : > { %v1822_v42 = vld [vmem:[#allocation3 + $0x46] sm:$0xff]  ;;  %v1626_v39 = vmul.f32 %v5468_v46, %v1609_v1  ;;  %v1724_v59 = vadd.f32 %v1711_v43, %v1681_v26  ;;  %v1766_v62 = vadd.f32 %v5599_v51, %v1723_v48  ;;  %v1797_v25 = vmul.f32 %v5509_v18, %v1780_v32  ;;  %v1497_v55 = vpop.f32.mrb[26].mxu1 }
 0x387   : > { %v1937_v60 = vadd.f32 %v1924_v0, %v1894_v63  ;;  %v1839_v3 = vmul.f32 %v5521_v36, %v1822_v42  ;;  %v1865_v4 = vld [vmem:[#allocation3 + $0x47] sm:$0xff]  ;;  %1562 = vst [vmem:[#allocation3 + $0x5c] sm:$0xff] %v5636_v7  ;;  %v5644_v15 = vmul.f32 %v1537_v40, %v5355_v61  ;;  %v1512_v12 = vmul.f32 %v5532_v57, %v1494_v9  ;;  %v1866_v47 = vld [vmem:[#allocation3 + $0x4f] sm:$0xff]  ;;  %v3889_v0 = vpop.f32.mrb[27].mxu1 }
 0x388   : > { %v1908_v34 = vld [vmem:[#allocation3 + $0x48] sm:$0xff]  ;;  %v1767_v51 = vadd.f32 %v5603_v52, %v1724_v59  ;;  %v1809_v45 = vadd.f32 %v1796_v41, %v1766_v62  ;;  %v1882_v57 = vmul.f32 %v5530_v6, %v1865_v4  ;;  %v1883_v58 = vmul.f32 %v5530_v6, %v1866_v47  ;;  %v5654_v22 = vld [vmem:[#allocation2] sm:$0xff]  ;;  %v1909_v16 = vld [vmem:[#allocation3 + $0x50] sm:$0xff] }
 0x389   : > { %v1947_v14 = vpack.c.bf16 %v1937_v60, %v1936_v28  ;;  %v1823_v10 = vld [vmem:[#allocation3 + $0x4e] sm:$0xff]  ;;  %1563 = vst [vmem:[#allocation3 + $0x64] sm:$0xff] %v5644_v15  ;;  %v1525_v61 = vadd.f32 %v5538_v21, %v1512_v12  ;;  %v1597_v44 = vmul.f32 %v1908_v34, %v5463_v20  ;;  %v1639_v53 = vadd.f32 %v1626_v39, %v1596_v29 }
 0x38a   : > { %v1610_v30 = vld [vmem:[#allocation3 + $0x49] sm:$0xff]  ;;  %v1840_v33 = vmul.f32 %v5521_v36, %v1823_v10  ;;  %v1810_v52 = vadd.f32 %v1797_v25, %v1767_v51  ;;  %v1852_v5 = vadd.f32 %v1839_v3, %v1809_v45  ;;  %v1925_v35 = vmul.f32 %v5542_v50, %v1908_v34  ;;  %v1696_v49 = vld [vmem:[#allocation3 + $0x53] sm:$0xff] }
 0x38b   : > { %v1695_v27 = vld [vmem:[#allocation3 + $0x4b] sm:$0xff]  ;;  %3915 = vmatmul.mubr.bf16.gmra.mrb[36].mxu0 %v1947_v14  ;;  %v1627_v8 = vmul.f32 %v5468_v46, %v1610_v30  ;;  %v1538_v21 = vmax.f32 %v1525_v61, 0.0  ;;  %v1669_v13 = vmul.f32 %v5473_v56, %v1652_v23  ;;  %v1755_v48 = vmul.f32 %v5487_v2, %v5606_v17 }
 0x38c   : > { %v1653_v54 = vld [vmem:[#allocation3 + $0x4a] sm:$0xff]  ;;  %3918 = vmatprep.mubr.msk.bf16.mxu0 %vm4680_vm0, %v5654_v22  ;;  %v1712_v43 = vmul.f32 %v5500_v24, %v1695_v27  ;;  %v1853_v1 = vadd.f32 %v1840_v33, %v1810_v52  ;;  %v1895_v37 = vadd.f32 %v1882_v57, %v1852_v5  ;;  %v1756_v41 = vmul.f32 %v5487_v2, %v5614_v31  ;;  %v1654_v3 = vld [vmem:[#allocation3 + $0x52] sm:$0xff] }
 0x38d   : > { %v1640_v11 = vadd.f32 %v1627_v8, %v1597_v44  ;;  %v1670_v63 = vmul.f32 %v5473_v56, %v1653_v54  ;;  %v1551_v28 = vmul.f32 %v1538_v21, %v5382_v19  ;;  %v1682_v26 = vadd.f32 %v1669_v13, %v1639_v53  ;;  %v1781_v42 = vld [vmem:[#allocation3 + $0x4d] sm:$0xff] }
 0x38e   : > { %v1896_v29 = vadd.f32 %v1883_v58, %v1853_v1  ;;  %v1926_v40 = vmul.f32 %v5542_v50, %v1909_v16  ;;  %v1713_v32 = vmul.f32 %v5500_v24, %v1696_v49  ;;  %v1782_v39 = vld [vmem:[#allocation3 + $0x55] sm:$0xff]  ;;  %v1938_v59 = vadd.f32 %v1925_v35, %v1895_v37 }
 0x38f   : > { %v1683_v60 = vadd.f32 %v1670_v63, %v1640_v11  ;;  %v1824_v9 = vld [vmem:[#allocation3 + $0x56] sm:$0xff]  ;;  %1564 = vst [vmem:[#allocation3 + $0x6c] sm:$0x1] %v1551_v28  ;;  %v1725_v62 = vadd.f32 %v1712_v43, %v1682_v26  ;;  %v1799_v34 = vmul.f32 %v5509_v18, %v1782_v39  ;;  %v1598_v38 = vmul.f32 %v1909_v16, %v5463_v20  ;;  %v1583_v16 = vld [vmem:[#allocation3 + $0x60] sm:$0x1] }
 0x390   : > { %v1910_v19 = vld [vmem:[#allocation3 + $0x58] sm:$0xff]  ;;  %v1939_v4 = vadd.f32 %v1926_v40, %v1896_v29  ;;  %v1798_v47 = vmul.f32 %v5509_v18, %v1781_v42  ;;  %v1841_v30 = vmul.f32 %v5521_v36, %v1824_v9  ;;  %v1671_v54 = vmul.f32 %v5473_v56, %v1654_v3  ;;  %v1698_v53 = vld [vmem:[#allocation3 + $0x63] sm:$0xff]  ;;  %v1827_v9 = vld [vmem:[#allocation3 + $0x6e] sm:$0xff] }
 0x391   : > { %v1611_v25 = vld [vmem:[#allocation3 + $0x51] sm:$0xff]  ;;  %v1726_v17 = vadd.f32 %v1713_v32, %v1683_v60  ;;  %v1825_v31 = vld [vmem:[#allocation3 + $0x5e] sm:$0xff]  ;;  %v1768_v10 = vadd.f32 %v1755_v48, %v1725_v62  ;;  %v1599_v27 = vmul.f32 %v1910_v19, %v5463_v20  ;;  %v1757_v43 = vmul.f32 %v5487_v2, %v5636_v7 }
 0x392   : > { %v1867_v12 = vld [vmem:[#allocation3 + $0x57] sm:$0xff]  ;;  %v1842_v55 = vmul.f32 %v5521_v36, %v1825_v31  ;;  %v1948_v33 = vpack.c.bf16 %v1939_v4, %v1938_v59  ;;  %v1628_v61 = vmul.f32 %v5468_v46, %v1611_v25  ;;  %v1868_v57 = vld [vmem:[#allocation3 + $0x5f] sm:$0xff]  ;;  %v1758_v1 = vmul.f32 %v5487_v2, %v5644_v15  ;;  %v1870_v4 = vld [vmem:[#allocation3 + $0x6f] sm:$0xff] }
 0x393   : > { %v1612_v14 = vld [vmem:[#allocation3 + $0x59] sm:$0xff]  ;;  %v1769_v23 = vadd.f32 %v1756_v41, %v1726_v17  ;;  %v1811_v0 = vadd.f32 %v1798_v47, %v1768_v10  ;;  %v1884_v58 = vmul.f32 %v5530_v6, %v1867_v12  ;;  %v1885_v11 = vmul.f32 %v5530_v6, %v1868_v57  ;;  %v1613_v48 = vld [vmem:[#allocation3 + $0x61] sm:$0x1]  ;;  %v1656_v59 = vld [vmem:[#allocation3 + $0x62] sm:$0x1] }
 0x394   : > { %v1655_v51 = vld [vmem:[#allocation3 + $0x5a] sm:$0xff]  ;;  %v1629_v44 = vmul.f32 %v5468_v46, %v1612_v14  ;;  %3919 = vmatmul.mubr.bf16.gmra.mrb[40].mxu0 %v1948_v33  ;;  %v1641_v5 = vadd.f32 %v1628_v61, %v1598_v38  ;;  %v1715_v40 = vmul.f32 %v5500_v24, %v1698_v53  ;;  %v1600_v32 = vmul.f32 %v5463_v20, %v1583_v16  ;;  %v1699_v38 = vld [vmem:[#allocation3 + $0x6b] sm:$0x1]  ;;  %v1871_v16 = vld [vmem:[#allocation3 + $0x77] sm:$0x1] }
 0x395   : > { %v1697_v45 = vld [vmem:[#allocation3 + $0x5b] sm:$0xff]  ;;  %v1812_v52 = vadd.f32 %v1799_v34, %v1769_v23  ;;  %v1672_v8 = vmul.f32 %v5473_v56, %v1655_v51  ;;  %3922 = vmatprep.mubr.msk.bf16.mxu0 %vm4680_vm0, %v5654_v22  ;;  %v1854_v35 = vadd.f32 %v1841_v30, %v1811_v0  ;;  %v1927_v7 = vmul.f32 %v5542_v50, %v1910_v19  ;;  %v1913_v23 = vld [vmem:[#allocation3 + $0x70] sm:$0xff] }
 0x396   : > { %v1714_v21 = vmul.f32 %v5500_v24, %v1697_v45  ;;  %v1911_v13 = vld [vmem:[#allocation3 + $0x60] sm:$0xff]  ;;  %v1642_v49 = vadd.f32 %v1629_v44, %v1599_v27  ;;  %v1684_v63 = vadd.f32 %v1671_v54, %v1641_v5  ;;  %v1630_v17 = vmul.f32 %v5468_v46, %v1613_v48  ;;  %v1742_v19 = vld [vmem:[#allocation3 + $0x6c] sm:$0x1]  ;;  %v1785_v46 = vld [vmem:[#allocation3 + $0x6d] sm:$0x1] }
 0x397   : > { %v1855_v37 = vadd.f32 %v1842_v55, %v1812_v52  ;;  %v1783_v28 = vld [vmem:[#allocation3 + $0x5d] sm:$0xff]  ;;  %v1784_v26 = vld [vmem:[#allocation3 + $0x65] sm:$0xff]  ;;  %v1897_v41 = vadd.f32 %v1884_v58, %v1854_v35  ;;  %v1928_v39 = vmul.f32 %v5542_v50, %v1911_v13  ;;  %v1844_v10 = vmul.f32 %v5521_v36, %v1827_v9  ;;  %v1828_v52 = vld [vmem:[#allocation3 + $0x76] sm:$0x1] }
 0x398   : > { %v1685_v29 = vadd.f32 %v1672_v8, %v1642_v49  ;;  %v1826_v60 = vld [vmem:[#allocation3 + $0x66] sm:$0xff]  ;;  %v1727_v15 = vadd.f32 %v1714_v21, %v1684_v63  ;;  %v1800_v25 = vmul.f32 %v5509_v18, %v1783_v28  ;;  %v1801_v3 = vmul.f32 %v5509_v18, %v1784_v26  ;;  %v1914_v49 = vld [vmem:[#allocation3 + $0x78] sm:$0x1] }
 0x399   : > { %v1898_v42 = vadd.f32 %v1885_v11, %v1855_v37  ;;  %v1940_v34 = vadd.f32 %v1927_v7, %v1897_v41  ;;  %v1843_v20 = vmul.f32 %v5521_v36, %v1826_v60  ;;  %v1869_v47 = vld [vmem:[#allocation3 + $0x67] sm:$0xff]  ;;  %v1643_v30 = vadd.f32 %v1630_v17, %v1600_v32  ;;  %v4167_v7 = vld [vmem:[#allocation21 + $0x18] sm:$0xff]   ;;  %v4170_v9 = vld [vmem:[#allocation21 + $0x140] sm:$0xff]  }
 0x39a   : > { %v1728_v62 = vadd.f32 %v1715_v40, %v1685_v29  ;;  %v1770_v12 = vadd.f32 %v1757_v43, %v1727_v15  ;;  %v1673_v55 = vmul.f32 %v5473_v56, %v1656_v59  ;;  %v1887_v33 = vmul.f32 %v5530_v6, %v1870_v4  ;;  %v1912_v54 = vld [vmem:[#allocation3 + $0x68] sm:$0xff]  ;;  %v4161_v40 = vld [vmem:[#allocation21] sm:$0xff]   ;;  %v4163_v60 = vld [vmem:[#allocation21 + $0x8] sm:$0xff]   ;;  %3723 = vmatprep.subr.bf16.mxu0 %v4170_v9 }
 0x39b   : > { %v1941_v31 = vadd.f32 %v1928_v39, %v1898_v42  ;;  %v1716_v0 = vmul.f32 %v5500_v24, %v1699_v38  ;;  %v1759_v57 = vmul.f32 %v5487_v2, %v1742_v19  ;;  %v1886_v44 = vmul.f32 %v5530_v6, %v1869_v47  ;;  %v4165_v32 = vld [vmem:[#allocation21 + $0x10] sm:$0xff]   ;;  %v4166_v42 = vld [vmem:[#allocation21 + $0x58] sm:$0xff]   ;;  %v4168_v39 = vld [vmem:[#allocation21 + $0x60] sm:$0xff]  }
 0x39c   : > { %v1771_v14 = vadd.f32 %v1758_v1, %v1728_v62  ;;  %v1813_v45 = vadd.f32 %v1800_v25, %v1770_v12  ;;  %v1686_v61 = vadd.f32 %v1673_v55, %v1643_v30  ;;  %v1930_v5 = vmul.f32 %v5542_v50, %v1913_v23  ;;  %v4169_v15 = vld [vmem:[#allocation21 + $0x20] sm:$0xff]   ;;  %v4174_v62 = vld [vmem:[#allocation21 + $0x148] sm:$0xff]   ;;  %v4176_v17 = vld [vmem:[#allocation21 + $0x150] sm:$0xff]  }
 0x39d   : > { %v1949_v51 = vpack.c.bf16 %v1941_v31, %v1940_v34  ;;  %v1802_v53 = vmul.f32 %v5509_v18, %v1785_v46  ;;  %v1929_v2 = vmul.f32 %v5542_v50, %v1912_v54  ;;  %v1845_v13 = vmul.f32 %v5521_v36, %v1828_v52  ;;  %v4160_v36 = vld [vmem:[#allocation21 + $0x40] sm:$0xff]   ;;  %v4175_v25 = vld [vmem:[#allocation21 + $0x108] sm:$0xff]   ;;  %v4178_v34 = vld [vmem:[#allocation21 + $0x110] sm:$0xff]  }
 0x39e   : > { %v1814_v27 = vadd.f32 %v1801_v3, %v1771_v14  ;;  %v1856_v58 = vadd.f32 %v1843_v20, %v1813_v45  ;;  %v1729_v8 = vadd.f32 %v1716_v0, %v1686_v61  ;;  %v1888_v11 = vmul.f32 %v5530_v6, %v1871_v16  ;;  %3655 = vmatprep.subr.bf16.mxu1 %v4160_v36  ;;  %v4162_v6 = vld [vmem:[#allocation21 + $0x48] sm:$0xff]   ;;  %v4171_v59 = vld [vmem:[#allocation21 + $0x100] sm:$0xff]   ;;  %v4177_v31 = vld [vmem:[#allocation21 + $0x70] sm:$0xff]  }
 0x39f   : > { %3923 = vmatmul.mubr.bf16.gmra.mrb[44].mxu0 %v1949_v51  ;;  %v1931_v26 = vmul.f32 %v5542_v50, %v1914_v49  ;;  %v4681_v29 = vmov -1e+30   ;;  %3656 = vmatpush3.bf16.msra.mxu1 %v4161_v40  ;;  %v4164_v50 = vld [vmem:[#allocation21 + $0x50] sm:$0xff]   ;;  %v4172_v3 = vld [vmem:[#allocation21 + $0x68] sm:$0xff]   ;;  %v4180_v20 = vld [vmem:[#allocation21 + $0x158] sm:$0xff]  }
 0x3a0   : > { %3926 = vmatprep.mubr.msk.bf16.mxu0 %vm4680_vm0, %v5654_v22  ;;  %v1857_v56 = vadd.f32 %v1844_v10, %v1814_v27  ;;  %v1899_v21 = vadd.f32 %v1886_v44, %v1856_v58  ;;  %v1772_v35 = vadd.f32 %v1759_v57, %v1729_v8  ;;  %2169 = vst [vmem:[#allocation4 + $0x8] sm:$0xf] %v4681_v29  ;;  %2170 = vst [vmem:[#allocation4 + $0x6d] sm:$0xff] %v4681_v29  ;;  %v4173_v4 = vld [vmem:[#allocation21 + $0x28] sm:$0xff]   ;;  %v4179_v12 = vld [vmem:[#allocation21 + $0x30] sm:$0xff]  }
 0x3a1   : > { %2171 = vst [vmem:[#allocation4 + $0x75] sm:$0xf] %v4681_v29  ;;  %3657 = vmatprep.subr.bf16.mxu1 %v4162_v6  ;;  %3724 = vmatpush3.bf16.msra.mxu0 %v4171_v59  ;;  %v4181_v38 = vld [vmem:[#allocation21 + $0x118] sm:$0xff]   ;;  %v4184_v10 = vld [vmem:[#allocation21 + $0x160] sm:$0xff]   ;;  %v4186_v30 = vld [vmem:[#allocation21 + $0x168] sm:$0xff]  }
 0x3a2   : > { %v1900_v24 = vadd.f32 %v1887_v33, %v1857_v56  ;;  %v1942_v43 = vadd.f32 %v1929_v2, %v1899_v21  ;;  %v1815_v37 = vadd.f32 %v1802_v53, %v1772_v35  ;;  %3725 = vmatprep.subr.bf16.mxu0 %v4174_v62  ;;  %v4182_v19 = vld [vmem:[#allocation21 + $0x78] sm:$0xff]   ;;  %v4185_v47 = vld [vmem:[#allocation21 + $0x120] sm:$0xff]   ;;  %v4187_v55 = vld [vmem:[#allocation21 + $0x128] sm:$0xff]  }
 0x3a3   : > { %3658 = vmatpush3.bf16.msra.mxu1 %v4163_v60  ;;  %v4183_v14 = vld [vmem:[#allocation21 + $0x38] sm:$0xff]   ;;  %v4188_v51 = vld [vmem:[#allocation21 + $0xc0] sm:$0xff]   ;;  %v4190_v45 = vld [vmem:[#allocation21 + $0x170] sm:$0xff]  }
 0x3a4   : > { %v1943_v1 = vadd.f32 %v1930_v5, %v1900_v24  ;;  %v1858_v28 = vadd.f32 %v1845_v13, %v1815_v37  ;;  %3659 = vmatprep.subr.bf16.mxu1 %v4164_v50  ;;  %v4191_v33 = vld [vmem:[#allocation21 + $0x130] sm:$0xff]   ;;  %v4194_v23 = vld [vmem:[#allocation21 + $0x178] sm:$0xff]   ;;  %v4248_v44 = vld [vmem:[#allocation24] sm:$0xff] }
 0x3a5   : > { %3726 = vmatpush3.bf16.msra.mxu0 %v4175_v25  ;;  %v4195_v46 = vld [vmem:[#allocation21 + $0x138] sm:$0xff]   ;;  %vm665_vm2 = vcmp.gt.f32.partialorder %v4248_v44, 0.5  ;;  %v4249_v8 = vld [vmem:[#allocation24 + $0x8] sm:$0xff] }
 0x3a6   : > { %v1950_v63 = vpack.c.bf16 %v1943_v1, %v1942_v43  ;;  %v1901_v18 = vadd.f32 %v1888_v11, %v1858_v28  ;;  %3727 = vmatprep.subr.bf16.mxu0 %v4176_v17  ;;  %v5714_v27 = vld [vmem:[#allocation18] ss:$0 sm:$0xff]  ;;  %v5716_v61 = vld [vmem:[#allocation20] ss:$0 sm:$0xff]  ;;  %vm666_vm3 = vcmp.gt.f32.partialorder %v4249_v8, 0.5  ;;  %v4250_v13 = vld [vmem:[#allocation24 + $0x10] sm:$0xff] }
 0x3a7   : > { %3660 = vmatpush3.bf16.msra.mxu1 %v4165_v32  ;;  %vm667_vm4 = vcmp.gt.f32.partialorder %v4250_v13, 0.5  ;;  %v4251_v11 = vld [vmem:[#allocation24 + $0x18] sm:$0xff] }
 0x3a8   : > { %3927 = vmatmul.mubr.bf16.gmra.mrb[48].mxu0 %v1950_v63  ;;  %v1944_v48 = vadd.f32 %v1931_v26, %v1901_v18  ;;  %3661 = vmatprep.subr.bf16.mxu1 %v4166_v42  ;;  %vm668_vm5 = vcmp.gt.f32.partialorder %v4251_v11, 0.5  ;;  %v4252_v42 = vld [vmem:[#allocation24 + $0x20] sm:$0xff] }
 0x3a9   : > { %3930 = vmatprep.mubr.msk.bf16.mxu0 %vm4680_vm0, %v5654_v22  ;;  %3728 = vmatpush3.bf16.msra.mxu0 %v4178_v34  ;;  %vm669_vm6 = vcmp.gt.f32.partialorder %v4252_v42, 0.5 }
 0x3aa   : > { %v1951_v41 = vpack.c.bf16 %v1944_v48, %v1944_v48  ;;  %3729 = vmatprep.subr.bf16.mxu0 %v4180_v20  ;;  %v2180_v48 = vld [vmem:[#allocation4 + $0x8] sm:$0x7] }
 0x3ab   : > { %3662 = vmatpush3.bf16.msra.mxu1 %v4167_v7 }
 0x3ac   : > { %3663 = vmatprep.subr.bf16.mxu1 %v4168_v39 }
 0x3ad   : > { %3730 = vmatpush3.bf16.msra.mxu0 %v4181_v38 }
 0x3ae   : > { %3731 = vmatprep.subr.bf16.mxu0 %v4184_v10 }
 0x3af   : > { %3664 = vmatpush3.bf16.msra.mxu1 %v4169_v15 }
 0x3b0   : > { %3931 = vmatmul.mubr.bf16.gmra.mrb[52].mxu0 %v1951_v41  ;;  %3665 = vmatprep.subr.bf16.mxu1 %v4172_v3  ;;  %v4253_v3 = vld [vmem:[#allocation24 + $0x28] sm:$0xff] }
 0x3b1   : > { %3732 = vmatpush3.bf16.msra.mxu0 %v4185_v47  ;;  %vm670_vm7 = vcmp.gt.f32.partialorder %v4253_v3, 0.5  ;;  %v4259_v3 = vld [vmem:[#allocation24 + $0x58] sm:$0xff] }
 0x3b2   : > { %3733 = vmatprep.subr.bf16.mxu0 %v4186_v30  ;;  %vm676_vm13 = vcmp.gt.f32.partialorder %v4259_v3, 0.5  ;;  %v5761_v3 = vld [vmem:[#allocation21 + $0x208] sm:$0xff]  }
 0x3b3   : > { %3666 = vmatpush3.bf16.msra.mxu1 %v4173_v4 }
 0x3b4   : > { %3667 = vmatprep.subr.bf16.mxu1 %v4177_v31 }
 0x3b5   : > { %3734 = vmatpush3.bf16.msra.mxu0 %v4187_v55 }
 0x3b6   : > { %3735 = vmatprep.subr.bf16.mxu0 %v4190_v45 }
 0x3b7   : > { %3668 = vmatpush3.bf16.msra.mxu1 %v4179_v12 }
 0x3b8   : > { %3669 = vmatprep.subr.bf16.mxu1 %v4182_v19  ;;  %v4254_v19 = vld [vmem:[#allocation24 + $0x30] sm:$0xff] }
 0x3b9   : > { %3736 = vmatpush3.bf16.msra.mxu0 %v4191_v33  ;;  %vm671_vm8 = vcmp.gt.f32.partialorder %v4254_v19, 0.5 }
 0x3ba   : > { %3737 = vmatprep.subr.bf16.mxu0 %v4194_v23 }
 0x3bb   : > { %3670 = vmatpush3.bf16.msra.mxu1 %v4183_v14 }
 0x3bc   : > { %3689 = vmatprep.subr.bf16.mxu1 %v4188_v51 }
 0x3bd   : > { %3738 = vmatpush3.bf16.msra.mxu0 %v4195_v46 }
 0x3be   : > { %3934 = vmatprep.subr.bf16.mxu0 %v5654_v22 }
 0x449   : > { %v2050_v0 = vpop.f32.mrb[28].mxu0 }
 0x44a   : > { %v2110_v57 = vmul.f32 %v5714_v27, %v2050_v0  ;;  %v3908_v58 = vpop.f32.mrb[29].mxu0 }
 0x44b   : > { %v2053_v54 = vpop.f32.mrb[30].mxu0  ;;  %v4255_v58 = vld [vmem:[#allocation24 + $0x38] sm:$0xff] }
 0x44c   : > { %v2129_v52 = vadd.f32 %v5716_v61, %v2110_v57  ;;  %v2111_v56 = vmul.f32 %v5714_v27, %v2053_v54  ;;  %v3909_v5 = vpop.f32.mrb[31].mxu0  ;;  %vm672_vm9 = vcmp.gt.f32.partialorder %v4255_v58, 0.5 }
 0x44e   : > { %v2142_v53 = vsel %vm665_vm2, %v2129_v52, -1e+30  ;;  %v2130_v21 = vadd.f32 %v5716_v61, %v2111_v56 }
 0x44f   : > { %2155 = vst [vmem:[#allocation4 + $0xc] sm:$0xff] %v2142_v53 }
 0x450   : > { %v2143_v16 = vsel %vm666_vm3, %v2130_v21, -1e+30 }
 0x451   : > { %2156 = vst [vmem:[#allocation4 + $0x14] sm:$0xff] %v2143_v16 }
 0x452   : > { %v2058_v24 = vpop.f32.mrb[32].mxu0 }
 0x453   : > { %v2112_v2 = vmul.f32 %v5714_v27, %v2058_v24  ;;  %v3912_v35 = vpop.f32.mrb[33].mxu0  ;;  %v4256_v24 = vld [vmem:[#allocation24 + $0x40] sm:$0xff] }
 0x454   : > { %v2061_v49 = vpop.f32.mrb[34].mxu0  ;;  %vm673_vm10 = vcmp.gt.f32.partialorder %v4256_v24, 0.5 }
 0x455   : > { %v2131_v43 = vadd.f32 %v5716_v61, %v2112_v2  ;;  %v2113_v1 = vmul.f32 %v5714_v27, %v2061_v49  ;;  %v3913_v37 = vpop.f32.mrb[35].mxu0  ;;  %v4257_v49 = vld [vmem:[#allocation24 + $0x48] sm:$0xff] }
 0x456   : > { %v2181_v18 = vld [vmem:[#allocation4 + $0xb] sm:$0xff]  ;;  %vm674_vm11 = vcmp.gt.f32.partialorder %v4257_v49, 0.5 }
 0x457   : > { %v2144_v63 = vsel %vm667_vm4, %v2131_v43, -1e+30  ;;  %v2132_v28 = vadd.f32 %v5716_v61, %v2113_v1  ;;  %v2185_v36 = vmax.f32 %v2181_v18, -1e+30  ;;  %v4197_v49 = vld [vmem:[#allocation21 + $0x90] sm:$0xff]  }
 0x458   : > { %2157 = vst [vmem:[#allocation4 + $0x1c] sm:$0xff] %v2144_v63  ;;  %v2182_v41 = vld [vmem:[#allocation4 + $0x13] sm:$0x7] }
 0x459   : > { %v2145_v26 = vsel %vm668_vm5, %v2132_v28, -1e+30  ;;  %v2186_v40 = vmax.f32 %v2180_v48, %v2182_v41 }
 0x45a   : > { %2158 = vst [vmem:[#allocation4 + $0x24] sm:$0xff] %v2145_v26 }
 0x45e   : > { %v2066_v29 = vpop.f32.mrb[36].mxu0 }
 0x45f   : > { %v2114_v6 = vmul.f32 %v5714_v27, %v2066_v29  ;;  %v3916_v60 = vpop.f32.mrb[37].mxu0  ;;  %v2183_v50 = vld [vmem:[#allocation4 + $0x16] sm:$0xff]  ;;  %v2184_v32 = vld [vmem:[#allocation4 + $0x1e] sm:$0x7] }
 0x460   : > { %v2069_v7 = vpop.f32.mrb[38].mxu0  ;;  %v2187_v39 = vmax.f32 %v2185_v36, %v2183_v50  ;;  %v2188_v15 = vmax.f32 %v2186_v40, %v2184_v32  ;;  %v2192_v30 = vld [vmem:[#allocation4 + $0x1e] sm:$0x7] }
 0x461   : > { %v2133_v9 = vadd.f32 %v5716_v61, %v2114_v6  ;;  %v2115_v59 = vmul.f32 %v5714_v27, %v2069_v7  ;;  %v3917_v62 = vpop.f32.mrb[39].mxu0  ;;  %v2193_v25 = vld [vmem:[#allocation4 + $0x21] sm:$0xff]  ;;  %v2194_v20 = vld [vmem:[#allocation4 + $0x29] sm:$0x7] }
 0x462   : > { %2189 = vst [vmem:[#allocation5] sm:$0xff] %v2187_v39  ;;  %2190 = vst [vmem:[#allocation5 + $0x8] sm:$0x7] %v2188_v15  ;;  %v2197_v4 = vmax.f32 %v2183_v50, %v2193_v25  ;;  %v2198_v45 = vmax.f32 %v2192_v30, %v2194_v20  ;;  %v4258_v7 = vld [vmem:[#allocation24 + $0x50] sm:$0xff] }
 0x463   : > { %v2146_v17 = vsel %vm669_vm6, %v2133_v9, -1e+30  ;;  %v2134_v34 = vadd.f32 %v5716_v61, %v2115_v59  ;;  %vm675_vm12 = vcmp.gt.f32.partialorder %v4258_v7, 0.5 }
 0x464   : > { %v2199_v31 = vmax.f32 %v2197_v4, %v2146_v17 }
 0x465   : > { %v2147_v12 = vsel %vm670_vm7, %v2134_v34, -1e+30 }
 0x466   : > { %2160 = vst [vmem:[#allocation4 + $0x34] sm:$0xff] %v2147_v12  ;;  %2201 = vst [vmem:[#allocation5 + $0xb] sm:$0xff] %v2199_v31 }
 0x467   : > { %v2074_v38 = vpop.f32.mrb[40].mxu0 }
 0x468   : > { %v2116_v14 = vmul.f32 %v5714_v27, %v2074_v38  ;;  %v3920_v10 = vpop.f32.mrb[41].mxu0 }
 0x469   : > { %v2239_v47 = vld [vmem:[#allocation5] ss:$2 sm:$0x1f]  ;;  %v2077_v55 = vpop.f32.mrb[42].mxu0 }
 0x46a   : > { %v2241_v51 = vld [vmem:[#allocation5 + $0x1] ss:$2 sm:$0x1f]  ;;  %v2135_v33 = vadd.f32 %v5716_v61, %v2116_v14  ;;  %v2117_v23 = vmul.f32 %v5714_v27, %v2077_v55  ;;  %v3921_v46 = vpop.f32.mrb[43].mxu0 }
 0x46b   : > { %v2244_v0 = vmax.f32 %v2239_v47, %v2241_v51  ;;  %v2243_v44 = vld [vmem:[#allocation5 + $0x2] ss:$2 sm:$0x1f]  ;;  %v4189_v47 = vld [vmem:[#allocation21 + $0x80] sm:$0xff]  }
 0x46c   : > { %v2148_v52 = vsel %vm671_vm8, %v2135_v33, -1e+30  ;;  %v2136_v56 = vadd.f32 %v5716_v61, %v2117_v23  ;;  %v4192_v33 = vld [vmem:[#allocation21 + $0xc8] sm:$0xff]  }
 0x46d   : > { %v2196_v57 = vld [vmem:[#allocation4 + $0x34] sm:$0x7]  ;;  %v2245_v5 = vmax.f32 %v2244_v0, %v2243_v44  ;;  %2161 = vst [vmem:[#allocation4 + $0x3c] sm:$0xff] %v2148_v52  ;;  %v4260_v0 = vld [vmem:[#allocation24 + $0x60] sm:$0x1]  ;;  %v4193_v52 = vld [vmem:[#allocation21 + $0x88] sm:$0xff]  }
 0x46e   : > { %v2200_v54 = vmax.f32 %v2198_v45, %v2196_v57  ;;  %v2149_v8 = vsel %vm672_vm9, %v2136_v56, -1e+30  ;;  %v2204_v42 = vld [vmem:[#allocation4 + $0x34] sm:$0x7]  ;;  %vm677_vm14 = vcmp.gt.f32.partialorder %v4260_v0, 0.5 }
 0x46f   : > { %2246 = vst [vmem:[#allocation6 + $0x8] sm:$0x1f] %v2245_v5  ;;  %2162 = vst [vmem:[#allocation4 + $0x44] sm:$0xff] %v2149_v8 }
 0x470   : > { %2202 = vst [vmem:[#allocation5 + $0x13] sm:$0x7] %v2200_v54 }
 0x472   : > { %v2082_v53 = vpop.f32.mrb[44].mxu0 }
 0x473   : > { %v2118_v21 = vmul.f32 %v5714_v27, %v2082_v53  ;;  %v3924_v16 = vpop.f32.mrb[45].mxu0 }
 0x474   : > { %v2085_v2 = vpop.f32.mrb[46].mxu0  ;;  %v2205_v35 = vld [vmem:[#allocation4 + $0x37] sm:$0xff]  ;;  %v2206_v6 = vld [vmem:[#allocation4 + $0x3f] sm:$0x7] }
 0x475   : > { %v2137_v13 = vadd.f32 %v5716_v61, %v2118_v21  ;;  %v2119_v43 = vmul.f32 %v5714_v27, %v2085_v2  ;;  %v3925_v1 = vpop.f32.mrb[47].mxu0  ;;  %v2209_v37 = vmax.f32 %v2146_v17, %v2205_v35  ;;  %v2210_v15 = vmax.f32 %v2204_v42, %v2206_v6  ;;  %v2231_v2 = vld [vmem:[#allocation4 + $0x6e] sm:$0xff]  ;;  %v4203_v6 = vld [vmem:[#allocation21 + $0xa0] sm:$0xff]  }
 0x476   : > { %v5738_v28 = vld [vmem:[#allocation4 + $0x42] sm:$0xff]  ;;  %v2288_v12 = vld [vmem:[#allocation6 + $0x1] sm:$0xff]  ;;  %v4198_v1 = vld [vmem:[#allocation21 + $0xd8] sm:$0xff]  }
 0x477   : > { %v2248_v11 = vld [vmem:[#allocation5 + $0xb] ss:$2 sm:$0x1f]  ;;  %v2250_v63 = vld [vmem:[#allocation5 + $0xc] ss:$2 sm:$0x1f]  ;;  %v2138_v18 = vadd.f32 %v5716_v61, %v2119_v43  ;;  %v2211_v41 = vmax.f32 %v2209_v37, %v5738_v28 }
 0x478   : > { %v2150_v26 = vsel %vm673_vm10, %v2137_v13, -1e+30  ;;  %v2253_v48 = vmax.f32 %v2248_v11, %v2250_v63  ;;  %v2252_v29 = vld [vmem:[#allocation5 + $0xd] ss:$2 sm:$0x1f] }
 0x479   : > { %2163 = vst [vmem:[#allocation4 + $0x4c] sm:$0xff] %v2150_v26  ;;  %v2151_v36 = vsel %vm674_vm11, %v2138_v18, -1e+30  ;;  %2213 = vst [vmem:[#allocation5 + $0x16] sm:$0xff] %v2211_v41  ;;  %v4200_v63 = vld [vmem:[#allocation21 + $0x98] sm:$0xff]  }
 0x47a   : > { %v2254_v40 = vmax.f32 %v2253_v48, %v2252_v29  ;;  %2164 = vst [vmem:[#allocation4 + $0x54] sm:$0xff] %v2151_v36  ;;  %v2232_v48 = vld [vmem:[#allocation4 + $0x76] sm:$0x7] }
 0x47b   : > { %v2090_v60 = vpop.f32.mrb[48].mxu0 }
 0x47c   : > { %2255 = vst [vmem:[#allocation6 + $0xf] sm:$0x1f] %v2254_v40  ;;  %v2120_v50 = vmul.f32 %v5714_v27, %v2090_v60  ;;  %v3928_v32 = vpop.f32.mrb[49].mxu0 }
 0x47d   : > { %v2093_v39 = vpop.f32.mrb[50].mxu0  ;;  %v4204_v32 = vld [vmem:[#allocation21 + $0xe8] sm:$0xff]  }
 0x47e   : > { %v2139_v9 = vadd.f32 %v5716_v61, %v2120_v50  ;;  %v2121_v59 = vmul.f32 %v5714_v27, %v2093_v39  ;;  %v3929_v62 = vpop.f32.mrb[51].mxu0 }
 0x47f   : > { %v4206_v62 = vld [vmem:[#allocation21 + $0xa8] sm:$0xff]  }
 0x480   : > { %v2208_v25 = vld [vmem:[#allocation4 + $0x4a] sm:$0x7]  ;;  %v2152_v17 = vsel %vm675_vm12, %v2139_v9, -1e+30  ;;  %v2140_v34 = vadd.f32 %v5716_v61, %v2121_v59  ;;  %v5758_v59 = vld [vmem:[#allocation21 + $0x200] sm:$0xff]  }
 0x481   : > { %v2212_v4 = vmax.f32 %v2210_v15, %v2208_v25  ;;  %2165 = vst [vmem:[#allocation4 + $0x5c] sm:$0xff] %v2152_v17  ;;  %v2217_v30 = vld [vmem:[#allocation4 + $0x4d] sm:$0xff]  ;;  %v2218_v55 = vld [vmem:[#allocation4 + $0x55] sm:$0x7]  ;;  %v2216_v46 = vld [vmem:[#allocation4 + $0x4a] sm:$0x7] }
 0x482   : > { %v2153_v31 = vsel %vm676_vm13, %v2140_v34, -1e+30  ;;  %v2221_v44 = vmax.f32 %v5738_v28, %v2217_v30  ;;  %v2222_v54 = vmax.f32 %v2216_v46, %v2218_v55  ;;  %v4201_v28 = vld [vmem:[#allocation21 + $0xe0] sm:$0xff]   ;;  %v4207_v25 = vld [vmem:[#allocation21 + $0xf0] sm:$0xff]   ;;  %v4210_v17 = vld [vmem:[#allocation21 + $0xf8] sm:$0xff]  }
 0x483   : > { %2214 = vst [vmem:[#allocation5 + $0x1e] sm:$0x7] %v2212_v4  ;;  %v5746_v20 = vld [vmem:[#allocation6 + $0x9] sm:$0xff]  ;;  %2166 = vst [vmem:[#allocation4 + $0x64] sm:$0xff] %v2153_v31  ;;  %v2098_v19 = vpop.f32.mrb[52].mxu0 }
 0x484   : > { %v5748_v38 = vld [vmem:[#allocation6 + $0x8] sm:$0xff]  ;;  %v2320_v14 = vpack.c.bf16 %v5746_v20, %v2288_v12  ;;  %v2122_v51 = vmul.f32 %v5714_v27, %v2098_v19  ;;  %v3932_v45 = vpop.f32.mrb[53].mxu0  ;;  %v4196_v27 = vld [vmem:[#allocation21 + $0xd0] sm:$0xff]  }
 0x485   : > { %v2319_v10 = vpack.c.bf16 %v5748_v38, %v5654_v22  ;;  %v2101_v23 = vpop.f32.mrb[54].mxu0  ;;  %v4209_v4 = vld [vmem:[#allocation21 + $0xb0] sm:$0xff]  }
 0x486   : > { %2961 = vmatprep.mubr.bf16.mxu1 %v2320_v14  ;;  %v2141_v57 = vadd.f32 %v5716_v61, %v2122_v51  ;;  %v3933_v58 = vpop.f32.mrb[55].mxu0  ;;  %v4212_v51 = vld [vmem:[#allocation21 + $0xb8] sm:$0xff]  }
 0x487   : > { %2962 = vmatmul.mubr.bf16.vlgmr.msra.gmra.mrb[28].mxu1 %v2319_v10  ;;  %v5772_v23 = vld [vmem:[#allocation21 + $0x218] sm:$0xff]   ;;  %v2306_v58 = vld [vmem:[#allocation6 + $0x29] sm:$0x1] }
 0x488   : > { %3690 = vmatpush3.bf16.msra.mxu1 %v4189_v47  ;;  %v2219_v56 = vld [vmem:[#allocation4 + $0x58] sm:$0xff]  ;;  %v2220_v5 = vld [vmem:[#allocation4 + $0x60] sm:$0x7]  ;;  %v2154_v21 = vsel %vm677_vm14, %v2141_v57, -1e+30  ;;  %v5767_v47 = vld [vmem:[#allocation21 + $0x210] sm:$0xff]  }
 0x489   : > { %3691 = vmatprep.subr.bf16.mxu1 %v4192_v33  ;;  %v2223_v8 = vmax.f32 %v2221_v44, %v2219_v56  ;;  %v2224_v53 = vmax.f32 %v2222_v54, %v2220_v5  ;;  %2167 = vst [vmem:[#allocation4 + $0x6c] sm:$0x1] %v2154_v21  ;;  %v2228_v26 = vld [vmem:[#allocation4 + $0x60] sm:$0x7]  ;;  %v4213_v33 = vld [vmem:[#allocation21 + $0x1c0] sm:$0xff]  }
 0x48a   : > { %v2257_v16 = vld [vmem:[#allocation5 + $0x16] ss:$2 sm:$0x1f]  ;;  %v2229_v24 = vld [vmem:[#allocation4 + $0x63] sm:$0xff] }
 0x48b   : > { %v2259_v35 = vld [vmem:[#allocation5 + $0x17] ss:$2 sm:$0x1f]  ;;  %2225 = vst [vmem:[#allocation5 + $0x21] sm:$0xff] %v2223_v8  ;;  %2226 = vst [vmem:[#allocation5 + $0x29] sm:$0x7] %v2224_v53  ;;  %v2233_v61 = vmax.f32 %v2219_v56, %v2229_v24  ;;  %v2342_v53 = vpack.c.bf16 %v2306_v58, %v2306_v58 }
 0x48c   : > { %3692 = vmatpush3.bf16.msra.mxu1 %v4193_v52  ;;  %v2262_v13 = vmax.f32 %v2257_v16, %v2259_v35  ;;  %v2261_v43 = vld [vmem:[#allocation5 + $0x18] ss:$2 sm:$0x1f]  ;;  %v2294_v16 = vld [vmem:[#allocation6 + $0xa] sm:$0xff] }
 0x48d   : > { %3693 = vmatprep.subr.bf16.mxu1 %v4196_v27  ;;  %v2235_v37 = vmax.f32 %v2233_v61, %v2231_v2  ;;  %v5778_v57 = vld [vmem:[#allocation21 + $0x220] sm:$0xff]   ;;  %v5786_v21 = vld [vmem:[#allocation21 + $0x228] sm:$0xff]  }
 0x48e   : > { %v2263_v11 = vmax.f32 %v2262_v13, %v2261_v43  ;;  %v2298_v54 = vld [vmem:[#allocation6 + $0x7] sm:$0xff] }
 0x48f   : > { %2237 = vst [vmem:[#allocation5 + $0x2c] sm:$0xff] %v2235_v37  ;;  %v2293_v2 = vld [vmem:[#allocation6 + $0x2] sm:$0xff] }
 0x490   : > { %2264 = vst [vmem:[#allocation6 + $0x16] sm:$0x1f] %v2263_v11  ;;  %3694 = vmatpush3.bf16.msra.mxu1 %v4197_v49  ;;  %v2230_v18 = vld [vmem:[#allocation4 + $0x6b] sm:$0x7]  ;;  %v4215_v35 = vld [vmem:[#allocation21 + $0x180] sm:$0xff]   ;;  %v4216_v61 = vld [vmem:[#allocation21 + $0x1c8] sm:$0xff]   ;;  %v2321_v13 = vpack.c.bf16 %v2294_v16, %v2293_v2 }
 0x491   : > { %3695 = vmatprep.subr.bf16.mxu1 %v4198_v1  ;;  %v2234_v41 = vmax.f32 %v2228_v26, %v2230_v18  ;;  %v5793_v1 = vld [vmem:[#allocation21 + $0x230] sm:$0xff]   ;;  %v5797_v26 = vld [vmem:[#allocation21 + $0x238] sm:$0xff]  }
 0x492   : > { %v2266_v29 = vld [vmem:[#allocation5 + $0x21] ss:$2 sm:$0x1f]  ;;  %v2268_v36 = vld [vmem:[#allocation5 + $0x22] ss:$2 sm:$0x1f] }
 0x493   : > { %v2271_v40 = vmax.f32 %v2266_v29, %v2268_v36  ;;  %v2236_v60 = vmax.f32 %v2234_v41, %v2232_v48  ;;  %v2270_v50 = vld [vmem:[#allocation5 + $0x23] ss:$2 sm:$0x1f] }
 0x494   : > { %3696 = vmatpush3.bf16.msra.mxu1 %v4200_v63  ;;  %v4218_v63 = vld [vmem:[#allocation21 + $0x188] sm:$0xff]   ;;  %v4221_v29 = vld [vmem:[#allocation21 + $0x190] sm:$0xff]  }
 0x495   : > { %3697 = vmatprep.subr.bf16.mxu1 %v4201_v28  ;;  %v2272_v42 = vmax.f32 %v2271_v40, %v2270_v50  ;;  %2238 = vst [vmem:[#allocation5 + $0x34] sm:$0x7] %v2236_v60  ;;  %v4219_v28 = vld [vmem:[#allocation21 + $0x1d0] sm:$0xff]   ;;  %v4222_v40 = vld [vmem:[#allocation21 + $0x1d8] sm:$0xff]   ;;  %v2297_v50 = vld [vmem:[#allocation6 + $0x22] sm:$0x1] }
 0x496   : > { %v4223_v60 = vld [vmem:[#allocation21 + $0x198] sm:$0xff]  }
 0x497   : > { %v2290_v7 = vld [vmem:[#allocation6 + $0x11] sm:$0xff]  ;;  %2273 = vst [vmem:[#allocation6 + $0x1d] sm:$0x1f] %v2272_v42  ;;  %v2339_v42 = vpack.c.bf16 %v2297_v50, %v2297_v50 }
 0x498   : > { %v2285_v39 = vld [vmem:[#allocation6 + $0x10] sm:$0xff]  ;;  %v2324_v15 = vpack.c.bf16 %v2290_v7, %v5746_v20  ;;  %3698 = vmatpush3.bf16.msra.mxu1 %v4203_v6 }
 0x499   : > { %v2323_v9 = vpack.c.bf16 %v2285_v39, %v5748_v38  ;;  %3699 = vmatprep.subr.bf16.mxu1 %v4204_v32  ;;  %v5775_v0 = vld [vmem:[#allocation6 + $0xf] sm:$0xff]  ;;  %v4224_v32 = vld [vmem:[#allocation21 + $0x1e0] sm:$0xff]  }
 0x49a   : > { %3073 = vmatprep.mubr.bf16.mxu0 %v2324_v15  ;;  %v2322_v52 = vpack.c.bf16 %v5775_v0, %v2298_v54  ;;  %v2295_v41 = vld [vmem:[#allocation6 + $0x12] sm:$0xff]  ;;  %v4226_v15 = vld [vmem:[#allocation21 + $0x1e8] sm:$0xff]  }
 0x49b   : > { %3074 = vmatmul.mubr.bf16.vlgmr.msra.gmra.mrb[56].mxu0 %v2323_v9 }
 0x49c   : > { %3935 = vmatpush3.bf16.msra.mxu0 %v5758_v59  ;;  %3700 = vmatpush3.bf16.msra.mxu1 %v4206_v62  ;;  %v2275_v34 = vld [vmem:[#allocation5 + $0x2c] ss:$2 sm:$0x1f]  ;;  %v2277_v31 = vld [vmem:[#allocation5 + $0x2d] ss:$2 sm:$0x1f] }
 0x49d   : > { %3936 = vmatprep.subr.bf16.mxu0 %v5654_v22  ;;  %3701 = vmatprep.subr.bf16.mxu1 %v4207_v25  ;;  %v2280_v19 = vmax.f32 %v2275_v34, %v2277_v31  ;;  %v2279_v30 = vld [vmem:[#allocation5 + $0x2e] ss:$2 sm:$0x1f]  ;;  %v4227_v25 = vld [vmem:[#allocation21 + $0x1a8] sm:$0xff]  }
 0x49e   : > { %v2291_v12 = vld [vmem:[#allocation6 + $0x19] sm:$0xff]  ;;  %v2292_v38 = vld [vmem:[#allocation6 + $0x21] sm:$0x1] }
 0x49f   : > { %v2286_v20 = vld [vmem:[#allocation6 + $0x18] sm:$0xff]  ;;  %v2329_v14 = vpack.c.bf16 %v2291_v12, %v2290_v7  ;;  %v2281_v55 = vmax.f32 %v2280_v19, %v2279_v30  ;;  %v2338_v45 = vpack.c.bf16 %v2292_v38, %v2292_v38  ;;  %v2287_v46 = vld [vmem:[#allocation6 + $0x20] sm:$0x1]  ;;  %v2307_v38 = vld [vmem:[#allocation6 + $0xe] sm:$0xff] }
 0x4a0   : > { %3937 = vmatpush3.bf16.msra.mxu0 %v5761_v3  ;;  %v5765_v10 = vpack.c.bf16 %v2286_v20, %v2285_v39  ;;  %3702 = vmatpush3.bf16.msra.mxu1 %v4209_v4  ;;  %v2337_v44 = vpack.c.bf16 %v2287_v46, %v2287_v46  ;;  %v2300_v49 = vld [vmem:[#allocation6 + $0x17] sm:$0xff]  ;;  %v4225_v7 = vld [vmem:[#allocation21 + $0x1a0] sm:$0xff]  }
 0x4a1   : > { %3938 = vmatprep.subr.bf16.mxu0 %v5654_v22  ;;  %3703 = vmatprep.subr.bf16.mxu1 %v4210_v17  ;;  %2282 = vst [vmem:[#allocation6 + $0x24] sm:$0x1f] %v2281_v55  ;;  %v2296_v18 = vld [vmem:[#allocation6 + $0x1a] sm:$0xff]  ;;  %v2326_v9 = vpack.c.bf16 %v2300_v49, %v5775_v0  ;;  %v4228_v4 = vld [vmem:[#allocation21 + $0x1f0] sm:$0xff]  }
 0x4a2   : > { %2969 = vmatprep.mubr.bf16.mxu1 %v2329_v14  ;;  %v2330_v36 = vpack.c.bf16 %v2296_v18, %v2295_v41  ;;  %v4229_v17 = vld [vmem:[#allocation21 + $0x1b0] sm:$0xff]   ;;  %v4230_v34 = vld [vmem:[#allocation21 + $0x1f8] sm:$0xff]   ;;  %v3534_v18 = vld [vmem:[#allocation23] ss:$0 sm:$0xff] }
 0x4a3   : > { %2970 = vmatmul.mubr.bf16.gmra.mrb[32].mxu1 %v5765_v10  ;;  %v4231_v31 = vld [vmem:[#allocation21 + $0x1b8] sm:$0xff]  }
 0x4a4   : > { %2977 = vmatprep.mubr.bf16.mxu1 %v2338_v45  ;;  %3939 = vmatpush3.bf16.msra.mxu0 %v5767_v47 }
 0x4a5   : > { %3940 = vmatprep.subr.bf16.mxu0 %v5654_v22  ;;  %3704 = vmatpush3.bf16.msra.mxu1 %v4212_v51 }
 0x4a6   : > { %3757 = vmatprep.subr.bf16.mxu1 %v4213_v33  ;;  %v2311_v33 = vld [vmem:[#allocation6 + $0x2e] sm:$0x1] }
 0x4a7   : > { %v2343_v46 = vpack.c.bf16 %v2311_v33, %v2311_v33 }
 0x4a8   : > { %3941 = vmatpush3.bf16.msra.mxu0 %v5772_v23  ;;  %v2305_v56 = vld [vmem:[#allocation6 + $0x21] sm:$0xff] }
 0x4a9   : > { %3942 = vmatprep.subr.bf16.mxu0 %v5654_v22  ;;  %v5782_v5 = vld [vmem:[#allocation6 + $0x20] sm:$0xff]  ;;  %v2333_v27 = vpack.c.bf16 %v2305_v56, %v2291_v12  ;;  %v2304_v43 = vld [vmem:[#allocation6 + $0x28] sm:$0x1]  ;;  %v2308_v12 = vld [vmem:[#allocation6 + $0x16] sm:$0xff] }
 0x4aa   : > { %v2332_v8 = vpack.c.bf16 %v5782_v5, %v2286_v20  ;;  %v5789_v24 = vld [vmem:[#allocation6 + $0x1f] sm:$0xff]  ;;  %v2341_v11 = vpack.c.bf16 %v2304_v43, %v2304_v43  ;;  %v2302_v48 = vld [vmem:[#allocation6 + $0x27] sm:$0x1]  ;;  %v2317_v39 = vld [vmem:[#allocation6 + $0x28] sm:$0xff]  ;;  %v2325_v19 = vpack.c.bf16 %v2308_v12, %v2307_v38 }
 0x4ab   : > { %2978 = vmatmul.mubr.bf16.gmra.mrb[36].mxu1 %v2337_v44  ;;  %3081 = vmatprep.mubr.bf16.mxu0 %v2333_v27  ;;  %v2331_v37 = vpack.c.bf16 %v5789_v24, %v2300_v49  ;;  %v2340_v6 = vpack.c.bf16 %v2302_v48, %v2302_v48  ;;  %v2336_v62 = vpack.c.bf16 %v2317_v39, %v5782_v5  ;;  %v2312_v20 = vld [vmem:[#allocation6 + $0x27] sm:$0xff]  ;;  %v2309_v30 = vld [vmem:[#allocation6 + $0x1e] sm:$0xff] }
 0x4ac   : > { %3017 = vmatprep.mubr.bf16.mxu1 %v2322_v52  ;;  %3943 = vmatpush3.bf16.msra.mxu0 %v5778_v57  ;;  %v2335_v14 = vpack.c.bf16 %v2312_v20, %v5789_v24  ;;  %v2310_v55 = vld [vmem:[#allocation6 + $0x26] sm:$0xff] }
 0x4ad   : > { %3944 = vmatprep.subr.bf16.mxu0 %v5654_v22  ;;  %3082 = vmatmul.mubr.bf16.gmra.mrb[60].mxu0 %v2332_v8  ;;  %v2334_v45 = vpack.c.bf16 %v2310_v55, %v2309_v30 }
 0x4ae   : > { %3089 = vmatprep.mubr.bf16.mxu0 %v2342_v53 }
 0x4b0   : > { %3945 = vmatpush3.bf16.msra.mxu0 %v5786_v21 }
 0x4b1   : > { %3946 = vmatprep.subr.bf16.mxu0 %v5654_v22 }
 0x4b3   : > { %3018 = vmatmul.mubr.bf16.vlgmr.msra.gmra.mrb[40].mxu1 %v2321_v13 }
 0x4b4   : > { %3758 = vmatpush3.bf16.msra.mxu1 %v4215_v35  ;;  %3025 = vmatprep.mubr.bf16.mxu1 %v2331_v37 }
 0x4b5   : > { %3759 = vmatprep.subr.bf16.mxu1 %v4216_v61  ;;  %3947 = vmatpush3.bf16.msra.mxu0 %v5793_v1 }
 0x4b6   : > { %3090 = vmatmul.mubr.bf16.gmra.mrb[64].mxu0 %v2341_v11  ;;  %3948 = vmatprep.subr.bf16.mxu0 %v5654_v22 }
 0x4b7   : > { %3950 = vmatprep.mubr.msk.bf16.mxu0 %vm4680_vm0, %v5654_v22  ;;  %v4261_v22 = vld [vmem:[#allocation2] sm:$0xff] }
 0x4b8   : > { %3760 = vmatpush3.bf16.msra.mxu1 %v4218_v63 }
 0x4b9   : > { %3761 = vmatprep.subr.bf16.mxu1 %v4219_v28  ;;  %3949 = vmatpush3.bf16.msra.mxu0 %v5797_v26 }
 0x4bb   : > { %3026 = vmatmul.mubr.bf16.gmra.mrb[44].mxu1 %v2330_v36 }
 0x4bc   : > { %3762 = vmatpush3.bf16.msra.mxu1 %v4221_v29  ;;  %3033 = vmatprep.mubr.bf16.mxu1 %v2340_v6 }
 0x4bd   : > { %3763 = vmatprep.subr.bf16.mxu1 %v4222_v40 }
 0x4be   : > { %3951 = vmatmul.mubr.bf16.vlgmr.msra.gmra.mrb[68].mxu0 %v5765_v10  ;;  %v2313_v10 = vld [vmem:[#allocation6 + $0x2f] sm:$0x1] }
 0x4bf   : > { %3954 = vmatprep.mubr.msk.bf16.mxu0 %vm4680_vm0, %v4261_v22  ;;  %v2344_v51 = vpack.c.bf16 %v2313_v10, %v2313_v10 }
 0x4c0   : > { %3764 = vmatpush3.bf16.msra.mxu1 %v4223_v60 }
 0x4c1   : > { %3765 = vmatprep.subr.bf16.mxu1 %v4224_v32 }
 0x4c3   : > { %3034 = vmatmul.mubr.bf16.gmra.mrb[48].mxu1 %v2339_v42 }
 0x4c4   : > { %3766 = vmatpush3.bf16.msra.mxu1 %v4225_v7  ;;  %3129 = vmatprep.mubr.bf16.mxu1 %v2326_v9 }
 0x4c5   : > { %3767 = vmatprep.subr.bf16.mxu1 %v4226_v15 }
 0x4c6   : > { %3955 = vmatmul.mubr.bf16.gmra.mrb[72].mxu0 %v2336_v62 }
 0x4c8   : > { %3768 = vmatpush3.bf16.msra.mxu1 %v4227_v25 }
 0x4c9   : > { %3769 = vmatprep.subr.bf16.mxu1 %v4228_v4 }
 0x4cc   : > { %3770 = vmatpush3.bf16.msra.mxu1 %v4229_v17 }
 0x4cd   : > { %3771 = vmatprep.subr.bf16.mxu1 %v4230_v34 }
 0x4d0   : > { %3772 = vmatpush3.bf16.msra.mxu1 %v4231_v31 }
 0x4d1   : > { %3962 = vmatprep.subr.bf16.mxu1 %v4261_v22 }
 0x4d3   : > { %3130 = vmatmul.mubr.bf16.vlgmr.msra.gmra.mrb[52].mxu1 %v2325_v19 }
 0x4d4   : > { %3137 = vmatprep.mubr.bf16.mxu1 %v2335_v14  ;;  %3970 = vmatpush3.bf16.msra.mxu1 %v5758_v59  ;;  %v2318_v59 = vld [vmem:[#allocation6 + $0x30] sm:$0x1] }
 0x4d5   : > { %3963 = vmatprep.subr.bf16.mxu1 %v4261_v22 }
 0x4d8   : > { %3971 = vmatpush3.bf16.msra.mxu1 %v5761_v3  ;;  %v2345_v3 = vpack.c.bf16 %v2318_v59, %v2318_v59 }
 0x4d9   : > { %3964 = vmatprep.subr.bf16.mxu1 %v4261_v22 }
 0x4db   : > { %3138 = vmatmul.mubr.bf16.gmra.mrb[56].mxu1 %v2334_v45 }
 0x4dc   : > { %3972 = vmatpush3.bf16.msra.mxu1 %v5767_v47  ;;  %3145 = vmatprep.mubr.bf16.mxu1 %v2344_v51 }
 0x4dd   : > { %3965 = vmatprep.subr.bf16.mxu1 %v4261_v22 }
 0x4e0   : > { %3973 = vmatpush3.bf16.msra.mxu1 %v5772_v23 }
 0x4e1   : > { %3966 = vmatprep.subr.bf16.mxu1 %v4261_v22 }
 0x4e3   : > { %3146 = vmatmul.mubr.bf16.gmra.mrb[60].mxu1 %v2343_v46 }
 0x4e4   : > { %3974 = vmatpush3.bf16.msra.mxu1 %v5778_v57  ;;  %3958 = vmatprep.mubr.msk.bf16.mxu1 %vm4680_vm0, %v4261_v22  ;;  %vm3224_vm0 = vcmask 1040384  }
 0x4e5   : > { %3967 = vmatprep.subr.bf16.mxu1 %v4261_v22 }
 0x4e8   : > { %3975 = vmatpush3.bf16.msra.mxu1 %v5786_v21 }
 0x4e9   : > { %3968 = vmatprep.subr.bf16.mxu1 %v4261_v22 }
 0x4ec   : > { %3976 = vmatpush3.bf16.msra.mxu1 %v5793_v1 }
 0x4ed   : > { %3969 = vmatprep.subr.bf16.mxu1 %v4261_v22 }
 0x4f0   : > { %3977 = vmatpush3.bf16.msra.mxu1 %v5797_v26 }
 0x4f3   : > { %3959 = vmatmul.mubr.bf16.vlgmr.msra.gmra.mrb[64].mxu1 %v2345_v3 }
 0x55a   : > { %v3671_v47 = vpop.f32.mrb[28].mxu1 }
 0x55b   : > { %v3672_v23 = vpop.f32.mrb[29].mxu1 }
 0x55c   : > { %v3673_v0 = vadd.f32 %v3672_v23, %v3671_v47  ;;  %v3674_v58 = vpop.f32.mrb[30].mxu1 }
 0x55d   : > { %v3675_v44 = vpop.f32.mrb[31].mxu1 }
 0x55e   : > { %v3676_v57 = vadd.f32 %v3675_v44, %v3674_v58  ;;  %v2964_v36 = vadd.f32 %v3673_v0, %v3534_v18 }
 0x560   : > { %v2967_v32 = vadd.f32 %v3676_v57, %v3534_v18 }
 0x56e   : > { %v3739_v54 = vpop.f32.mrb[56].mxu0 }
 0x56f   : > { %v3740_v52 = vpop.f32.mrb[57].mxu0 }
 0x570   : > { %v3741_v56 = vadd.f32 %v3740_v52, %v3739_v54  ;;  %v3742_v5 = vpop.f32.mrb[58].mxu0 }
 0x571   : > { %v3743_v27 = vpop.f32.mrb[59].mxu0 }
 0x572   : > { %v3744_v8 = vadd.f32 %v3743_v27, %v3742_v5 }
 0x576   : > { %v3677_v53 = vpop.f32.mrb[32].mxu1 }
 0x577   : > { %v3678_v21 = vpop.f32.mrb[33].mxu1 }
 0x578   : > { %v3679_v16 = vadd.f32 %v3678_v21, %v3677_v53  ;;  %v3680_v24 = vpop.f32.mrb[34].mxu1 }
 0x579   : > { %v3681_v2 = vpop.f32.mrb[35].mxu1 }
 0x57a   : > { %v3682_v35 = vadd.f32 %v3681_v2, %v3680_v24  ;;  %v2972_v31 = vadd.f32 %v3679_v16, %v3534_v18 }
 0x57c   : > { %v2975_v14 = vadd.f32 %v3682_v35, %v3534_v18 }
 0x57e   : > { %v3683_v61 = vpop.f32.mrb[36].mxu1 }
 0x57f   : > { %v3684_v13 = vpop.f32.mrb[37].mxu1 }
 0x580   : > { %v3685_v49 = vadd.f32 %v3684_v13, %v3683_v61  ;;  %v3686_v43 = vpop.f32.mrb[38].mxu1  ;;  %v3745_v1 = vpop.f32.mrb[60].mxu0 }
 0x581   : > { %v3687_v37 = vpop.f32.mrb[39].mxu1  ;;  %v3746_v11 = vpop.f32.mrb[61].mxu0 }
 0x582   : > { %v3747_v63 = vadd.f32 %v3746_v11, %v3745_v1  ;;  %v3748_v28 = vpop.f32.mrb[62].mxu0  ;;  %v2980_v23 = vadd.f32 %v3685_v49, %v3534_v18 }
 0x583   : > { %v3749_v26 = vpop.f32.mrb[63].mxu0 }
 0x584   : > { %v3750_v48 = vadd.f32 %v3749_v26, %v3748_v28 }
 0x586   : > { %v3705_v41 = vpop.f32.mrb[40].mxu1 }
 0x587   : > { %v3706_v29 = vpop.f32.mrb[41].mxu1 }
 0x588   : > { %v3707_v40 = vadd.f32 %v3706_v29, %v3705_v41  ;;  %v3708_v6 = vpop.f32.mrb[42].mxu1 }
 0x589   : > { %v3751_v60 = vpop.f32.mrb[64].mxu0  ;;  %v3709_v50 = vpop.f32.mrb[43].mxu1 }
 0x58a   : > { %v3020_v42 = vadd.f32 %v3707_v40, %v2964_v36  ;;  %v3710_v22 = vadd.f32 %v3709_v50, %v3708_v6  ;;  %v3752_v7 = vpop.f32.mrb[65].mxu0 }
 0x58b   : > { %v3753_v39 = vadd.f32 %v3752_v7, %v3751_v60  ;;  %v3754_v15 = vpop.f32.mrb[66].mxu0 }
 0x58c   : > { %v3023_v9 = vadd.f32 %v3710_v22, %v2967_v32  ;;  %v3755_v62 = vpop.f32.mrb[67].mxu0  ;;  %v3076_v25 = vadd.f32 %v3741_v56, %v3020_v42  ;;  %v3213_v32 = vld [vmem:[#allocation26 + $0x20] sm:$0x1]  ;;  %v3212_v22 = vld [vmem:[#allocation26 + $0x18] sm:$0xff]  ;;  %v3211_v15 = vld [vmem:[#allocation26 + $0x10] sm:$0xff] }
 0x58d   : > { %v3209_v42 = vld [vmem:[#allocation26] sm:$0xff]  ;;  %vm3218_vm15 = vcmp.gt.f32.partialorder %v3213_v32, 0.5  ;;  %vm3217_vm2 = vcmp.gt.f32.partialorder %v3212_v22, 0.5  ;;  %vm3216_vm4 = vcmp.gt.f32.partialorder %v3211_v15, 0.5 }
 0x58e   : > { %v3711_v4 = vpop.f32.mrb[44].mxu1  ;;  %v3079_v17 = vadd.f32 %v3744_v8, %v3023_v9  ;;  %vm3214_vm1 = vcmp.gt.f32.partialorder %v3209_v42, 0.5 }
 0x58f   : > { %v3712_v34 = vpop.f32.mrb[45].mxu1 }
 0x590   : > { %v3713_v12 = vadd.f32 %v3712_v34, %v3711_v4  ;;  %v3714_v20 = vpop.f32.mrb[46].mxu1 }
 0x591   : > { %v3187_v38 = vpop.f32.mrb[68].mxu0  ;;  %v3715_v19 = vpop.f32.mrb[47].mxu1 }
 0x592   : > { %v3028_v10 = vadd.f32 %v3713_v12, %v2972_v31  ;;  %v3716_v30 = vadd.f32 %v3715_v19, %v3714_v20  ;;  %v3952_v55 = vpop.f32.mrb[69].mxu0 }
 0x593   : > { %v3190_v51 = vpop.f32.mrb[70].mxu0 }
 0x594   : > { %v3031_v45 = vadd.f32 %v3716_v30, %v2975_v14  ;;  %v3953_v33 = vpop.f32.mrb[71].mxu0  ;;  %v3084_v46 = vadd.f32 %v3747_v63, %v3028_v10 }
 0x596   : > { %v3717_v59 = vpop.f32.mrb[48].mxu1  ;;  %v3087_v3 = vadd.f32 %v3750_v48, %v3031_v45 }
 0x597   : > { %v3718_v47 = vpop.f32.mrb[49].mxu1 }
 0x598   : > { %v3719_v0 = vadd.f32 %v3718_v47, %v3717_v59  ;;  %v3720_v58 = vpop.f32.mrb[50].mxu1 }
 0x599   : > { %v3195_v44 = vpop.f32.mrb[72].mxu0  ;;  %v3721_v57 = vpop.f32.mrb[51].mxu1 }
 0x59a   : > { %v3036_v54 = vadd.f32 %v3719_v0, %v2980_v23  ;;  %v3956_v52 = vpop.f32.mrb[73].mxu0 }
 0x59b   : > { %v3198_v56 = vpop.f32.mrb[74].mxu0 }
 0x59c   : > { %v3957_v5 = vpop.f32.mrb[75].mxu0  ;;  %v3092_v27 = vadd.f32 %v3753_v39, %v3036_v54  ;;  %v3210_v39 = vld [vmem:[#allocation26 + $0x8] sm:$0xff] }
 0x59d   : > { %vm3215_vm3 = vcmp.gt.f32.partialorder %v3210_v39, 0.5 }
 0x5a6   : > { %v3773_v8 = vpop.f32.mrb[52].mxu1 }
 0x5a7   : > { %v3774_v53 = vpop.f32.mrb[53].mxu1 }
 0x5a8   : > { %v3775_v21 = vadd.f32 %v3774_v53, %v3773_v8  ;;  %v3776_v16 = vpop.f32.mrb[54].mxu1 }
 0x5a9   : > { %v3777_v24 = vpop.f32.mrb[55].mxu1 }
 0x5aa   : > { %v3132_v2 = vadd.f32 %v3775_v21, %v3076_v25  ;;  %v3778_v35 = vadd.f32 %v3777_v24, %v3776_v16 }
 0x5ac   : > { %v3188_v61 = vadd.f32 %v3187_v38, %v3132_v2  ;;  %v3135_v13 = vadd.f32 %v3778_v35, %v3079_v17 }
 0x5ae   : > { %v3191_v43 = vadd.f32 %v3190_v51, %v3135_v13  ;;  %v3779_v49 = vpop.f32.mrb[56].mxu1  ;;  %v3219_v31 = vsel %vm3214_vm1, %v3188_v61, -1e+30 }
 0x5af   : > { %v3780_v1 = vpop.f32.mrb[57].mxu1 }
 0x5b0   : > { %v3781_v37 = vadd.f32 %v3780_v1, %v3779_v49  ;;  %v3782_v11 = vpop.f32.mrb[58].mxu1  ;;  %v3220_v38 = vsel %vm3215_vm3, %v3191_v43, -1e+30 }
 0x5b1   : > { %v3783_v63 = vpop.f32.mrb[59].mxu1 }
 0x5b2   : > { %v3140_v28 = vadd.f32 %v3781_v37, %v3084_v46  ;;  %v3784_v26 = vadd.f32 %v3783_v63, %v3782_v11 }
 0x5b4   : > { %v3196_v18 = vadd.f32 %v3195_v44, %v3140_v28  ;;  %v3143_v48 = vadd.f32 %v3784_v26, %v3087_v3 }
 0x5b6   : > { %v3199_v41 = vadd.f32 %v3198_v56, %v3143_v48  ;;  %v3785_v29 = vpop.f32.mrb[60].mxu1  ;;  %v3221_v19 = vsel %vm3216_vm4, %v3196_v18, -1e+30 }
 0x5b7   : > { %v3786_v36 = vpop.f32.mrb[61].mxu1 }
 0x5b8   : > { %v3787_v40 = vadd.f32 %v3786_v36, %v3785_v29  ;;  %v3788_v6 = vpop.f32.mrb[62].mxu1  ;;  %v3222_v12 = vsel %vm3217_vm2, %v3199_v41, -1e+30 }
 0x5b9   : > { %v3789_v60 = vpop.f32.mrb[63].mxu1  ;;  %v3228_v10 = vmax.f32 %v3221_v19, %v3222_v12 }
 0x5ba   : > { %v3148_v50 = vadd.f32 %v3787_v40, %v3092_v27 }
 0x5c6   : > { %v3203_v7 = vpop.f32.mrb[64].mxu1 }
 0x5c7   : > { %v3204_v9 = vadd.f32 %v3203_v7, %v3148_v50  ;;  %v3960_v62 = vpop.f32.mrb[65].mxu1 }
 0x5c8   : > { %v3206_v25 = vpop.f32.mrb[66].mxu1 }
 0x5c9   : > { %v3223_v4 = vsel %vm3218_vm15, %v3204_v9, -1e+30  ;;  %v3961_v17 = vpop.f32.mrb[67].mxu1 }
 0x5ca   : > { %v3225_v34 = vsel %vm3224_vm0, %v3223_v4, -inf }
 0x5cb   : > { %v3226_v20 = vmax.f32 %v3219_v31, %v3225_v34 }
 0x5cd   : > { %v3227_v14 = vmax.f32 %v3226_v20, %v3220_v38 }
 0x5cf   : > { %v3229_v30 = vmax.f32 %v3227_v14, %v3228_v10 }
 0x5d1   : > { %3230 = vmax.xlane.f32.xlu0 %v3229_v30 }
 0x65e   : > { %v3231_v55 = vpop.xlane.xlu0 %3230 }
 0x65f   : > { %v3232_v51 = vrot.slane %v3231_v55, 4 }
 0x661   : > { %v3233_v45 = vmax.f32 %v3231_v55, %v3232_v51 }
 0x663   : > { %v3234_v33 = vrot.slane %v3233_v45, 2 }
 0x665   : > { %v3235_v46 = vmax.f32 %v3233_v45, %v3234_v33 }
 0x667   : > { %v3236_v59 = vrot.slane %v3235_v46, 1 }
 0x669   : > { %v3237_v3 = vmax.f32 %v3235_v46, %v3236_v59 }
 0x66b   : > { %3979 = vpush %v3237_v3 }
 0x69c   : > { %s3980_s2 = spop %3979 }
 0x69d   : > { %v3239_v47 = vstv %s3980_s2 }
 0x69e   : > { %v3240_v23 = vsub.f32 %v3219_v31, %v3239_v47  ;;  %v3241_v0 = vsub.f32 %v3220_v38, %v3239_v47  ;;  %v3242_v58 = vsub.f32 %v3221_v19, %v3239_v47  ;;  %v3243_v44 = vsub.f32 %v3222_v12, %v3239_v47 }
 0x69f   : > { %v3244_v57 = vsub.f32 %v3223_v4, %v3239_v47 }
 0x6a0   : > { %v3245_v54 = vmul.f32 1.442695, %v3240_v23  ;;  %v3247_v52 = vmul.f32 1.442695, %v3241_v0  ;;  %v3249_v56 = vmul.f32 1.442695, %v3242_v58 }
 0x6a1   : > { %v3253_v5 = vmul.f32 1.442695, %v3244_v57  ;;  %v3251_v27 = vmul.f32 1.442695, %v3243_v44 }
 0x6a2   : > { %4232 = vpow2.f32 %v3245_v54 }
 0x6a3   : > { %4234 = vpow2.f32 %v3247_v52 }
 0x6a4   : > { %4236 = vpow2.f32 %v3249_v56 }
 0x6a5   : > { %4238 = vpow2.f32 %v3253_v5 }
 0x6a6   : > { %4240 = vpow2.f32 %v3251_v27 }
 0x6ac   : > { %v4233_v8 = vpop.eup %4232 }
 0x6ad   : > { %v4235_v53 = vpop.eup %4234 }
 0x6ae   : > { %v3255_v21 = vadd.f32 %v4235_v53, %v4233_v8  ;;  %v4237_v16 = vpop.eup %4236 }
 0x6af   : > { %v4239_v24 = vpop.eup %4238 }
 0x6b0   : > { %v3256_v2 = vadd.f32 %v4237_v16, %v3255_v21  ;;  %v4241_v35 = vpop.eup %4240  ;;  %v3258_v13 = vsel %vm3224_vm0, %v4239_v24, 0.0 }
 0x6b2   : > { %v3257_v61 = vadd.f32 %v4241_v35, %v3256_v2 }
 0x6b4   : > { %v3259_v43 = vadd.f32 %v3258_v13, %v3257_v61 }
 0x6b6   : > { %3260 = vadd.xlane.f32.xlu0 %v3259_v43 }
 0x743   : > { %v3261_v49 = vpop.xlane.xlu0 %3260 }
 0x744   : > { %v3262_v1 = vrot.slane %v3261_v49, 4 }
 0x746   : > { %v3263_v37 = vadd.f32 %v3262_v1, %v3261_v49 }
 0x748   : > { %v3264_v11 = vrot.slane %v3263_v37, 2 }
 0x74a   : > { %v3265_v63 = vadd.f32 %v3264_v11, %v3263_v37 }
 0x74c   : > { %v3266_v28 = vrot.slane %v3265_v63, 1 }
 0x74e   : > { %v3267_v26 = vadd.f32 %v3266_v28, %v3265_v63 }
 0x750   : > { %3981 = vpush %v3267_v26 }
 0x781   : > { %s3982_s27 = spop %3981 }
 0x782   : > { %v3269_v18 = vstv %s3982_s27 }
 0x783   : > { %4242 = vrcp.f32 %v3269_v18 }
 0x78d   : > { %v4243_v48 = vpop.eup %4242 }
 0x78e   : > { %v3272_v41 = vmul.f32 %v4243_v48, %v4233_v8  ;;  %v3273_v29 = vmul.f32 %v4243_v48, %v4235_v53  ;;  %v3274_v36 = vmul.f32 %v4243_v48, %v4237_v16  ;;  %v3275_v40 = vmul.f32 %v4243_v48, %v4241_v35 }
 0x78f   : > { %v3276_v6 = vmul.f32 %v4243_v48, %v4239_v24 }
 0x790   : > { %3277 = vst [vmem:[%s646_s26] sm:$0xff] %v3272_v41  ;;  %3278 = vst [vmem:[%s646_s26 + $0x8] sm:$0xff] %v3273_v29 }
 0x791   : > { %3279 = vst [vmem:[%s646_s26 + $0x10] sm:$0xff] %v3274_v36  ;;  %3280 = vst [vmem:[%s646_s26 + $0x18] sm:$0xff] %v3275_v40 }
 0x792   : > { %3281 = vst [vmem:[%s646_s26 + $0x20] sm:$0x1] %v3276_v6 }
 0x793 PF: > { %s5892_s24 = sld [smem:[#allocation34_spill]] }
 0x799   : > { %s31_s29 = sadd.s32 1, %s5892_s24  }
 0x79a   : > { %p28_p3 = scmp.ge.s32.totalorder %s31_s29, 4  }
 0x79c   :  { %30 = sbr.rel (!%p28_p3) target bundleno = 12 (0xc), region = 173 }
 0x7a3   :  { %3303 = vsyncpa [#allocation8], 1 }
 0x7a4   :  { %3305 = vsyncpa [#allocation8 + $0x1], 1 }
 0x7a5   :  { %3306 = vsyncpa [#allocation10], 1 }
 0x7a6   :  { %3307 = vsyncpa [#allocation13], 1 }
 0x7a7   :  { %3308 = vsyncpa [#allocation16], 1 }
 0x7a8   :  { %3309 = vsyncpa [#allocation19], 1 }
 0x7a9   :  { %3310 = vsyncpa [#allocation22], 1 }
 0x7aa   :  { %3311 = vsyncpa [#allocation25], 1 }

</bundles_post_ra>
